<compile_context>
chip_gen: v6e
topology: v6e:2x2x1
jax: 0.10.0
libtpu: 0.0.40
codegen_flags: <defaults>
</compile_context>

<pallas_src>
import functools

import jax
import jax.numpy as jnp
from jax.experimental import pallas as pl
from jax.experimental.pallas import tpu as pltpu


# ----------------------------------------------------------------------------
# Kernel helpers
# ----------------------------------------------------------------------------
def _shift_zero(v, d):
    """out[:, i] = v[:, i + d] where i + d is inside the array, else 0.

    d is a static Python int; implemented with static lane slices + concat so
    the zero fill exactly reproduces the conv's zero padding along the shifted
    direction (no wrap-around)."""
    if d == 0:
        return v
    n = v.shape[1]
    pad = jnp.zeros((v.shape[0], abs(d)), v.dtype)
    if d > 0:
        return jnp.concatenate([v[:, d:], pad], axis=1)
    return jnp.concatenate([pad, v[:, : n + d]], axis=1)


# ----------------------------------------------------------------------------
# Kernel
# ----------------------------------------------------------------------------
def _cbam_kernel(x_ref,
                 w1m_ref, b1m_ref, w2m_ref, b2m_ref,
                 w1a_ref, b1a_ref, w2a_ref, b2a_ref,
                 cw_ref, cb_ref,
                 o_ref, *, H, W):
    # x block: (Bb, C, HW) -- HW is the lane-dense flattened spatial axis.
    Bb, C, HW = x_ref.shape
    xb = x_ref[...]                                      # slab stays in x dtype

    # ------------------------- Channel attention -------------------------
    xm = jnp.max(xb, axis=2).astype(jnp.float32)         # (Bb, C)
    xa = jnp.mean(xb, axis=2).astype(jnp.float32)        # (Bb, C)

    def fc(v, w1, b1, w2, b2):
        h = jnp.dot(v, w1[...], preferred_element_type=jnp.float32) + b1[...]
        h = jnp.maximum(h, 0.0)                          # ReLU
        z = jnp.dot(h, w2[...], preferred_element_type=jnp.float32) + b2[...]
        return jax.nn.sigmoid(z)

    om = fc(xm, w1m_ref, b1m_ref, w2m_ref, b2m_ref)      # (Bb, C)
    oa = fc(xa, w1a_ref, b1a_ref, w2a_ref, b2a_ref)      # (Bb, C)
    weight = jax.nn.sigmoid(om + oa).astype(xb.dtype)    # (Bb, C)

    xc = weight[:, :, None] * xb                         # (Bb, C, HW), x dtype

    # ------------------------- Spatial attention -------------------------
    maxc = jnp.max(xc, axis=1).astype(jnp.float32)       # (Bb, HW)
    avgc = jnp.mean(xc, axis=1).astype(jnp.float32)      # (Bb, HW)

    # 7x7, 2->1 conv (padding=3) computed directly on the lane-flat maps:
    # x-direction taps first (lane shift + in-row validity mask), then
    # whole-row y shifts (zero fill == zero padding along y).
    col = jax.lax.broadcasted_iota(jnp.int32, (Bb, HW), 1) % W

    pooled = (maxc, avgc)
    xtaps = []
    for c in range(2):
        taps_c = []
        for dx in range(-3, 4):
            t = _shift_zero(pooled[c], dx)
            if dx != 0:
                ok = jnp.logical_and(col + dx >= 0, col + dx < W)
                t = jnp.where(ok, t, 0.0)
            taps_c.append(t)
        xtaps.append(taps_c)

    conv = jnp.full((Bb, HW), cb_ref[0], dtype=jnp.float32)
    for ky in range(7):
        dy = ky - 3
        q = None
        for c in range(2):
            for kx in range(7):
                term = cw_ref[c * 49 + ky * 7 + kx] * xtaps[c][kx]
                q = term if q is None else q + term
        conv = conv + _shift_zero(q, dy * W)

    ms = jax.nn.sigmoid(conv).astype(xb.dtype)           # (Bb, HW)
    o_ref[...] = (ms[:, None, :] * xc).astype(o_ref.dtype)


# ----------------------------------------------------------------------------
# Wrapper
# ----------------------------------------------------------------------------
def cbam_pallas(x, params, block_b=8, target_steps=4):
    B, C, H, W = x.shape
    HW = H * W
    mid = params["w1m"].shape[1]

    # Batch block: keep the grid >= 2 steps (DMA/compute overlap + both v7x
    # TensorCores) and pad awkward batch sizes up instead of collapsing the
    # block size.
    bb = max(1, min(block_b, pl.cdiv(B, target_steps)))
    Bp = pl.cdiv(B, bb) * bb

    # Lane-dense working layout (last dim = H*W).
    xf = x.reshape(B, C, HW)
    if Bp != B:
        xf = jnp.concatenate([xf, jnp.zeros((Bp - B, C, HW), x.dtype)], axis=0)

    cw = params["conv_w"].reshape(-1).astype(jnp.float32)    # (2*7*7,) = (98,)
    cb = params["conv_b"].astype(jnp.float32)                # (1,)

    # VMEM budget from the computed working set: double-buffered in/out blocks,
    # constants, and the (Bb, HW) conv-tap temporaries, clamped to a range that
    # is safe on v5e/v6e (128 MiB) and v7x (64 MiB).
    itemsize = x.dtype.itemsize
    block_bytes = bb * C * HW * itemsize
    const_bytes = 4 * 2 * (C * mid + mid + mid * C + C)
    tap_bytes = 24 * bb * HW * 4
    vmem_limit = int(min(56 * 2 ** 20,
                         max(8 * 2 ** 20,
                             4 * block_bytes + 2 * const_bytes + tap_bytes
                             + (2 << 20))))

    def const_spec(shape):
        return pl.BlockSpec(shape, lambda b: (0, 0))

    grid_spec = pltpu.PrefetchScalarGridSpec(
        num_scalar_prefetch=0,
        grid=(Bp // bb,),
        in_specs=[
            pl.BlockSpec((bb, C, HW), lambda b: (b, 0, 0)),        # x block
            const_spec((C, mid)), const_spec((1, mid)),            # max-branch FC
            const_spec((mid, C)), const_spec((1, C)),
            const_spec((C, mid)), const_spec((1, mid)),            # avg-branch FC
            const_spec((mid, C)), const_spec((1, C)),
            pl.BlockSpec(memory_space=pltpu.MemorySpace.SMEM),     # conv weights (98,)
            pl.BlockSpec(memory_space=pltpu.MemorySpace.SMEM),     # conv bias (1,)
        ],
        out_specs=pl.BlockSpec((bb, C, HW), lambda b: (b, 0, 0)),
    )

    out = pl.pallas_call(
        functools.partial(_cbam_kernel, H=H, W=W),
        out_shape=jax.ShapeDtypeStruct((Bp, C, HW), x.dtype),
        grid_spec=grid_spec,
        compiler_params=pltpu.CompilerParams(
            dimension_semantics=("parallel",),
            vmem_limit_bytes=vmem_limit),
    )(xf,
      params["w1m"], params["b1m"], params["w2m"], params["b2m"],
      params["w1a"], params["b1a"], params["w2a"], params["b2a"],
      cw, cb)

    return out[:B].reshape(B, C, H, W)


# ----------------------------------------------------------------------------
# Pure-JAX reference (matches the PyTorch module semantics)
# ----------------------------------------------------------------------------
def cbam_reference(x, params):
    xm = jnp.max(x, axis=(2, 3))
    xa = jnp.mean(x, axis=(2, 3))

    def fc(v, w1, b1, w2, b2):
        h = jnp.maximum(v @ w1 + b1, 0.0)
        return jax.nn.sigmoid(h @ w2 + b2)

    wm = fc(xm, params["w1m"], params["b1m"][0], params["w2m"], params["b2m"][0])
    wa = fc(xa, params["w1a"], params["b1a"][0], params["w2a"], params["b2a"][0])
    weight = jax.nn.sigmoid(wm + wa)
    xc = weight[:, :, None, None] * x

    maxc = jnp.max(xc, axis=1, keepdims=True)
    avgc = jnp.mean(xc, axis=1, keepdims=True)
    cat = jnp.concatenate([maxc, avgc], axis=1)
    conv = jax.lax.conv_general_dilated(
        cat, params["conv_w"], window_strides=(1, 1),
        padding=[(3, 3), (3, 3)],
        dimension_numbers=("NCHW", "OIHW", "NCHW"))
    ms = jax.nn.sigmoid(conv + params["conv_b"][0])
    return ms * xc


def init_params(key, C, r=0.5):
    mid = max(int(C * r), 1)
    ks = jax.random.split(key, 10)
    return {
        # Linear weights stored pre-transposed: (in, out); biases as (1, out).
        "w1m": jax.random.normal(ks[0], (C, mid), jnp.float32) * 0.2,
        "b1m": jax.random.normal(ks[1], (1, mid), jnp.float32) * 0.1,
        "w2m": jax.random.normal(ks[2], (mid, C), jnp.float32) * 0.2,
        "b2m": jax.random.normal(ks[3], (1, C), jnp.float32) * 0.1,
        "w1a": jax.random.normal(ks[4], (C, mid), jnp.float32) * 0.2,
        "b1a": jax.random.normal(ks[5], (1, mid), jnp.float32) * 0.1,
        "w2a": jax.random.normal(ks[6], (mid, C), jnp.float32) * 0.2,
        "b2a": jax.random.normal(ks[7], (1, C), jnp.float32) * 0.1,
        "conv_w": jax.random.normal(ks[8], (1, 2, 7, 7), jnp.float32) * 0.1,
        "conv_b": jax.random.normal(ks[9], (1,), jnp.float32) * 0.1,
    }


if __name__ == "__main__":
    key = jax.random.PRNGKey(0)
    kx, kp = jax.random.split(key)

    B, C, H, W = 2, 4, 16, 16
    x = jax.random.normal(kx, (B, C, H, W), jnp.float32)
    params = init_params(kp, C, r=0.5)

    out = jax.block_until_ready(cbam_pallas(x, params))

    ref = cbam_reference(x, params)
    assert out.shape == ref.shape == (B, C, H, W)
    assert jnp.allclose(out, ref, rtol=1e-4, atol=1e-5), (
        float(jnp.max(jnp.abs(out - ref))))

    print("KERNEL_OK")
</pallas_src>

<mosaic_0001>
module attributes {stable_mosaic.version = 11 : i64} {
  func.func @_cbam_kernel(%arg0: i32, %arg1: memref<1x4x256xf32, #tpu.memory_space<vmem>>, %arg2: memref<4x2xf32, #tpu.memory_space<vmem>>, %arg3: memref<1x2xf32, #tpu.memory_space<vmem>>, %arg4: memref<2x4xf32, #tpu.memory_space<vmem>>, %arg5: memref<1x4xf32, #tpu.memory_space<vmem>>, %arg6: memref<4x2xf32, #tpu.memory_space<vmem>>, %arg7: memref<1x2xf32, #tpu.memory_space<vmem>>, %arg8: memref<2x4xf32, #tpu.memory_space<vmem>>, %arg9: memref<1x4xf32, #tpu.memory_space<vmem>>, %arg10: memref<98xf32, #tpu.memory_space<smem>>, %arg11: memref<1xf32, #tpu.memory_space<smem>>, %arg12: memref<1x4x256xf32, #tpu.memory_space<vmem>>) attributes {dimension_semantics = [#tpu.dimension_semantics<parallel>], iteration_bounds = array<i64: 2>, scalar_prefetch = 0 : i64, scratch_operands = 0 : i64, tpu.core_type = #tpu.core_type<tc>, window_params = [{transform_indices = @transform_0, window_bounds = array<i64: 1, 4, 256>}, {pipeline_mode = #tpu.pipeline_mode<synchronous>, transform_indices = @transform_1, window_bounds = array<i64: 4, 2>}, {pipeline_mode = #tpu.pipeline_mode<synchronous>, transform_indices = @transform_2, window_bounds = array<i64: 1, 2>}, {pipeline_mode = #tpu.pipeline_mode<synchronous>, transform_indices = @transform_3, window_bounds = array<i64: 2, 4>}, {pipeline_mode = #tpu.pipeline_mode<synchronous>, transform_indices = @transform_4, window_bounds = array<i64: 1, 4>}, {pipeline_mode = #tpu.pipeline_mode<synchronous>, transform_indices = @transform_5, window_bounds = array<i64: 4, 2>}, {pipeline_mode = #tpu.pipeline_mode<synchronous>, transform_indices = @transform_6, window_bounds = array<i64: 1, 2>}, {pipeline_mode = #tpu.pipeline_mode<synchronous>, transform_indices = @transform_7, window_bounds = array<i64: 2, 4>}, {pipeline_mode = #tpu.pipeline_mode<synchronous>, transform_indices = @transform_8, window_bounds = array<i64: 1, 4>}, {transform_indices = @transform_9, window_bounds = array<i64: 98>}, {transform_indices = @transform_10, window_bounds = array<i64: 1>}, {transform_indices = @transform_11, window_bounds = array<i64: 1, 4, 256>}]} {
    %c0 = arith.constant 0 : index
    %c0_0 = arith.constant 0 : index
    %c0_1 = arith.constant 0 : index
    %0 = vector.load %arg1[%c0, %c0_0, %c0_1] : memref<1x4x256xf32, #tpu.memory_space<vmem>>, vector<1x4x256xf32>
    %cst = arith.constant dense<0xFF800000> : vector<1x4xf32>
    %1 = vector.multi_reduction <maximumf>, %0, %cst [2] : vector<1x4x256xf32> to vector<1x4xf32>
    %cst_2 = arith.constant dense<0.000000e+00> : vector<1x4xf32>
    %2 = vector.multi_reduction <add>, %0, %cst_2 [2] : vector<1x4x256xf32> to vector<1x4xf32>
    %cst_3 = arith.constant 2.560000e+02 : f32
    %3 = vector.broadcast %cst_3 : f32 to vector<1x4xf32>
    %4 = arith.divf %2, %3 : vector<1x4xf32>
    %c0_4 = arith.constant 0 : index
    %c0_5 = arith.constant 0 : index
    %5 = vector.load %arg2[%c0_4, %c0_5] : memref<4x2xf32, #tpu.memory_space<vmem>>, vector<4x2xf32>
    %cst_6 = arith.constant dense<0.000000e+00> : vector<1x2xf32>
    %6 = tpu.matmul %1, %5, %cst_6 {dimension_numbers = #tpu.dot_dimension_numbers<[1], [0], [0], [1], [0, 0, 1, 1], [], []>} : vector<1x4xf32>, vector<4x2xf32>, vector<1x2xf32> -> vector<1x2xf32>
    %c0_7 = arith.constant 0 : index
    %c0_8 = arith.constant 0 : index
    %7 = vector.load %arg3[%c0_7, %c0_8] : memref<1x2xf32, #tpu.memory_space<vmem>>, vector<1x2xf32>
    %8 = arith.addf %6, %7 : vector<1x2xf32>
    %cst_9 = arith.constant 0.000000e+00 : f32
    %9 = vector.broadcast %cst_9 : f32 to vector<1x2xf32>
    %10 = arith.maximumf %8, %9 : vector<1x2xf32>
    %c0_10 = arith.constant 0 : index
    %c0_11 = arith.constant 0 : index
    %11 = vector.load %arg4[%c0_10, %c0_11] : memref<2x4xf32, #tpu.memory_space<vmem>>, vector<2x4xf32>
    %cst_12 = arith.constant dense<0.000000e+00> : vector<1x4xf32>
    %12 = tpu.matmul %10, %11, %cst_12 {dimension_numbers = #tpu.dot_dimension_numbers<[1], [0], [0], [1], [0, 0, 1, 1], [], []>} : vector<1x2xf32>, vector<2x4xf32>, vector<1x4xf32> -> vector<1x4xf32>
    %c0_13 = arith.constant 0 : index
    %c0_14 = arith.constant 0 : index
    %13 = vector.load %arg5[%c0_13, %c0_14] : memref<1x4xf32, #tpu.memory_space<vmem>>, vector<1x4xf32>
    %14 = arith.addf %12, %13 : vector<1x4xf32>
    %15 = arith.negf %14 : vector<1x4xf32>
    %16 = math.exp %15 : vector<1x4xf32>
    %cst_15 = arith.constant 1.000000e+00 : f32
    %17 = vector.broadcast %cst_15 : f32 to vector<1x4xf32>
    %18 = arith.addf %17, %16 : vector<1x4xf32>
    %19 = arith.divf %17, %18 : vector<1x4xf32>
    %c0_16 = arith.constant 0 : index
    %c0_17 = arith.constant 0 : index
    %20 = vector.load %arg6[%c0_16, %c0_17] : memref<4x2xf32, #tpu.memory_space<vmem>>, vector<4x2xf32>
    %cst_18 = arith.constant dense<0.000000e+00> : vector<1x2xf32>
    %21 = tpu.matmul %4, %20, %cst_18 {dimension_numbers = #tpu.dot_dimension_numbers<[1], [0], [0], [1], [0, 0, 1, 1], [], []>} : vector<1x4xf32>, vector<4x2xf32>, vector<1x2xf32> -> vector<1x2xf32>
    %c0_19 = arith.constant 0 : index
    %c0_20 = arith.constant 0 : index
    %22 = vector.load %arg7[%c0_19, %c0_20] : memref<1x2xf32, #tpu.memory_space<vmem>>, vector<1x2xf32>
    %23 = arith.addf %21, %22 : vector<1x2xf32>
    %cst_21 = arith.constant 0.000000e+00 : f32
    %24 = vector.broadcast %cst_21 : f32 to vector<1x2xf32>
    %25 = arith.maximumf %23, %24 : vector<1x2xf32>
    %c0_22 = arith.constant 0 : index
    %c0_23 = arith.constant 0 : index
    %26 = vector.load %arg8[%c0_22, %c0_23] : memref<2x4xf32, #tpu.memory_space<vmem>>, vector<2x4xf32>
    %cst_24 = arith.constant dense<0.000000e+00> : vector<1x4xf32>
    %27 = tpu.matmul %25, %26, %cst_24 {dimension_numbers = #tpu.dot_dimension_numbers<[1], [0], [0], [1], [0, 0, 1, 1], [], []>} : vector<1x2xf32>, vector<2x4xf32>, vector<1x4xf32> -> vector<1x4xf32>
    %c0_25 = arith.constant 0 : index
    %c0_26 = arith.constant 0 : index
    %28 = vector.load %arg9[%c0_25, %c0_26] : memref<1x4xf32, #tpu.memory_space<vmem>>, vector<1x4xf32>
    %29 = arith.addf %27, %28 : vector<1x4xf32>
    %30 = arith.negf %29 : vector<1x4xf32>
    %31 = math.exp %30 : vector<1x4xf32>
    %cst_27 = arith.constant 1.000000e+00 : f32
    %32 = vector.broadcast %cst_27 : f32 to vector<1x4xf32>
    %33 = arith.addf %32, %31 : vector<1x4xf32>
    %34 = arith.divf %32, %33 : vector<1x4xf32>
    %35 = arith.addf %19, %34 : vector<1x4xf32>
    %36 = arith.negf %35 : vector<1x4xf32>
    %37 = math.exp %36 : vector<1x4xf32>
    %cst_28 = arith.constant 1.000000e+00 : f32
    %38 = vector.broadcast %cst_28 : f32 to vector<1x4xf32>
    %39 = arith.addf %38, %37 : vector<1x4xf32>
    %40 = arith.divf %38, %39 : vector<1x4xf32>
    %41 = vector.shape_cast %40 : vector<1x4xf32> to vector<1x4x1xf32>
    %42 = vector.broadcast %41 : vector<1x4x1xf32> to vector<1x4x256xf32>
    %43 = arith.mulf %42, %0 : vector<1x4x256xf32>
    %cst_29 = arith.constant dense<0xFF800000> : vector<1x256xf32>
    %44 = vector.multi_reduction <maximumf>, %43, %cst_29 [1] : vector<1x4x256xf32> to vector<1x256xf32>
    %cst_30 = arith.constant dense<0.000000e+00> : vector<1x256xf32>
    %45 = vector.multi_reduction <add>, %43, %cst_30 [1] : vector<1x4x256xf32> to vector<1x256xf32>
    %cst_31 = arith.constant 4.000000e+00 : f32
    %46 = vector.broadcast %cst_31 : f32 to vector<1x256xf32>
    %47 = arith.divf %45, %46 : vector<1x256xf32>
    %48 = tpu.iota {dimensions = array<i32: 1>} : vector<1x256xi32>
    %c16_i32 = arith.constant 16 : i32
    %c0_i32 = arith.constant 0 : i32
    %49 = arith.cmpi eq, %c16_i32, %c0_i32 : i32
    %c1_i32 = arith.constant 1 : i32
    %50 = arith.select %49, %c1_i32, %c16_i32 : i32
    %51 = vector.broadcast %50 : i32 to vector<1x256xi32>
    %52 = arith.remsi %48, %51 : vector<1x256xi32>
    %c0_i32_32 = arith.constant 0 : i32
    %53 = vector.broadcast %c0_i32_32 : i32 to vector<1x256xi32>
    %54 = arith.cmpi ne, %52, %53 : vector<1x256xi32>
    %c0_i32_33 = arith.constant 0 : i32
    %55 = vector.broadcast %c0_i32_33 : i32 to vector<1x256xi32>
    %56 = arith.cmpi slt, %52, %55 : vector<1x256xi32>
    %c0_i32_34 = arith.constant 0 : i32
    %57 = arith.cmpi slt, %50, %c0_i32_34 : i32
    %58 = vector.broadcast %57 : i1 to vector<1x256xi1>
    %59 = vector.broadcast %58 : vector<1x256xi1> to vector<1x256xi1>
    %60 = arith.xori %56, %59 : vector<1x256xi1>
    %61 = arith.andi %60, %54 : vector<1x256xi1>
    %62 = vector.broadcast %50 : i32 to vector<1x256xi32>
    %63 = arith.addi %52, %62 : vector<1x256xi32>
    %64 = arith.select %61, %63, %52 : vector<1x256xi1>, vector<1x256xi32>
    %cst_35 = arith.constant 0.000000e+00 : f32
    %65 = vector.broadcast %cst_35 : f32 to vector<1x3xf32>
    %66 = vector.extract_strided_slice %44 {offsets = [0, 0], sizes = [1, 253], strides = [1, 1]} : vector<1x256xf32> to vector<1x253xf32>
    %67 = tpu.concatenate %65, %66 in 1 : vector<1x3xf32>, vector<1x253xf32> -> vector<1x256xf32>
    %c-3_i32 = arith.constant -3 : i32
    %68 = vector.broadcast %c-3_i32 : i32 to vector<1x256xi32>
    %69 = arith.addi %64, %68 : vector<1x256xi32>
    %c0_i32_36 = arith.constant 0 : i32
    %70 = vector.broadcast %c0_i32_36 : i32 to vector<1x256xi32>
    %71 = arith.cmpi sge, %69, %70 : vector<1x256xi32>
    %c-3_i32_37 = arith.constant -3 : i32
    %72 = vector.broadcast %c-3_i32_37 : i32 to vector<1x256xi32>
    %73 = arith.addi %64, %72 : vector<1x256xi32>
    %c16_i32_38 = arith.constant 16 : i32
    %74 = vector.broadcast %c16_i32_38 : i32 to vector<1x256xi32>
    %75 = arith.cmpi slt, %73, %74 : vector<1x256xi32>
    %76 = arith.andi %71, %75 : vector<1x256xi1>
    %cst_39 = arith.constant 0.000000e+00 : f32
    %77 = vector.broadcast %cst_39 : f32 to vector<1x256xf32>
    %78 = arith.select %76, %67, %77 : vector<1x256xi1>, vector<1x256xf32>
    %cst_40 = arith.constant 0.000000e+00 : f32
    %79 = vector.broadcast %cst_40 : f32 to vector<1x2xf32>
    %80 = vector.extract_strided_slice %44 {offsets = [0, 0], sizes = [1, 254], strides = [1, 1]} : vector<1x256xf32> to vector<1x254xf32>
    %81 = tpu.concatenate %79, %80 in 1 : vector<1x2xf32>, vector<1x254xf32> -> vector<1x256xf32>
    %c-2_i32 = arith.constant -2 : i32
    %82 = vector.broadcast %c-2_i32 : i32 to vector<1x256xi32>
    %83 = arith.addi %64, %82 : vector<1x256xi32>
    %c0_i32_41 = arith.constant 0 : i32
    %84 = vector.broadcast %c0_i32_41 : i32 to vector<1x256xi32>
    %85 = arith.cmpi sge, %83, %84 : vector<1x256xi32>
    %c-2_i32_42 = arith.constant -2 : i32
    %86 = vector.broadcast %c-2_i32_42 : i32 to vector<1x256xi32>
    %87 = arith.addi %64, %86 : vector<1x256xi32>
    %c16_i32_43 = arith.constant 16 : i32
    %88 = vector.broadcast %c16_i32_43 : i32 to vector<1x256xi32>
    %89 = arith.cmpi slt, %87, %88 : vector<1x256xi32>
    %90 = arith.andi %85, %89 : vector<1x256xi1>
    %cst_44 = arith.constant 0.000000e+00 : f32
    %91 = vector.broadcast %cst_44 : f32 to vector<1x256xf32>
    %92 = arith.select %90, %81, %91 : vector<1x256xi1>, vector<1x256xf32>
    %cst_45 = arith.constant 0.000000e+00 : f32
    %93 = vector.broadcast %cst_45 : f32 to vector<1x1xf32>
    %94 = vector.extract_strided_slice %44 {offsets = [0, 0], sizes = [1, 255], strides = [1, 1]} : vector<1x256xf32> to vector<1x255xf32>
    %95 = tpu.concatenate %93, %94 in 1 : vector<1x1xf32>, vector<1x255xf32> -> vector<1x256xf32>
    %c-1_i32 = arith.constant -1 : i32
    %96 = vector.broadcast %c-1_i32 : i32 to vector<1x256xi32>
    %97 = arith.addi %64, %96 : vector<1x256xi32>
    %c0_i32_46 = arith.constant 0 : i32
    %98 = vector.broadcast %c0_i32_46 : i32 to vector<1x256xi32>
    %99 = arith.cmpi sge, %97, %98 : vector<1x256xi32>
    %c-1_i32_47 = arith.constant -1 : i32
    %100 = vector.broadcast %c-1_i32_47 : i32 to vector<1x256xi32>
    %101 = arith.addi %64, %100 : vector<1x256xi32>
    %c16_i32_48 = arith.constant 16 : i32
    %102 = vector.broadcast %c16_i32_48 : i32 to vector<1x256xi32>
    %103 = arith.cmpi slt, %101, %102 : vector<1x256xi32>
    %104 = arith.andi %99, %103 : vector<1x256xi1>
    %cst_49 = arith.constant 0.000000e+00 : f32
    %105 = vector.broadcast %cst_49 : f32 to vector<1x256xf32>
    %106 = arith.select %104, %95, %105 : vector<1x256xi1>, vector<1x256xf32>
    %cst_50 = arith.constant 0.000000e+00 : f32
    %107 = vector.broadcast %cst_50 : f32 to vector<1x1xf32>
    %108 = vector.extract_strided_slice %44 {offsets = [0, 1], sizes = [1, 255], strides = [1, 1]} : vector<1x256xf32> to vector<1x255xf32>
    %109 = tpu.concatenate %108, %107 in 1 : vector<1x255xf32>, vector<1x1xf32> -> vector<1x256xf32>
    %c1_i32_51 = arith.constant 1 : i32
    %110 = vector.broadcast %c1_i32_51 : i32 to vector<1x256xi32>
    %111 = arith.addi %64, %110 : vector<1x256xi32>
    %c0_i32_52 = arith.constant 0 : i32
    %112 = vector.broadcast %c0_i32_52 : i32 to vector<1x256xi32>
    %113 = arith.cmpi sge, %111, %112 : vector<1x256xi32>
    %c1_i32_53 = arith.constant 1 : i32
    %114 = vector.broadcast %c1_i32_53 : i32 to vector<1x256xi32>
    %115 = arith.addi %64, %114 : vector<1x256xi32>
    %c16_i32_54 = arith.constant 16 : i32
    %116 = vector.broadcast %c16_i32_54 : i32 to vector<1x256xi32>
    %117 = arith.cmpi slt, %115, %116 : vector<1x256xi32>
    %118 = arith.andi %113, %117 : vector<1x256xi1>
    %cst_55 = arith.constant 0.000000e+00 : f32
    %119 = vector.broadcast %cst_55 : f32 to vector<1x256xf32>
    %120 = arith.select %118, %109, %119 : vector<1x256xi1>, vector<1x256xf32>
    %cst_56 = arith.constant 0.000000e+00 : f32
    %121 = vector.broadcast %cst_56 : f32 to vector<1x2xf32>
    %122 = vector.extract_strided_slice %44 {offsets = [0, 2], sizes = [1, 254], strides = [1, 1]} : vector<1x256xf32> to vector<1x254xf32>
    %123 = tpu.concatenate %122, %121 in 1 : vector<1x254xf32>, vector<1x2xf32> -> vector<1x256xf32>
    %c2_i32 = arith.constant 2 : i32
    %124 = vector.broadcast %c2_i32 : i32 to vector<1x256xi32>
    %125 = arith.addi %64, %124 : vector<1x256xi32>
    %c0_i32_57 = arith.constant 0 : i32
    %126 = vector.broadcast %c0_i32_57 : i32 to vector<1x256xi32>
    %127 = arith.cmpi sge, %125, %126 : vector<1x256xi32>
    %c2_i32_58 = arith.constant 2 : i32
    %128 = vector.broadcast %c2_i32_58 : i32 to vector<1x256xi32>
    %129 = arith.addi %64, %128 : vector<1x256xi32>
    %c16_i32_59 = arith.constant 16 : i32
    %130 = vector.broadcast %c16_i32_59 : i32 to vector<1x256xi32>
    %131 = arith.cmpi slt, %129, %130 : vector<1x256xi32>
    %132 = arith.andi %127, %131 : vector<1x256xi1>
    %cst_60 = arith.constant 0.000000e+00 : f32
    %133 = vector.broadcast %cst_60 : f32 to vector<1x256xf32>
    %134 = arith.select %132, %123, %133 : vector<1x256xi1>, vector<1x256xf32>
    %cst_61 = arith.constant 0.000000e+00 : f32
    %135 = vector.broadcast %cst_61 : f32 to vector<1x3xf32>
    %136 = vector.extract_strided_slice %44 {offsets = [0, 3], sizes = [1, 253], strides = [1, 1]} : vector<1x256xf32> to vector<1x253xf32>
    %137 = tpu.concatenate %136, %135 in 1 : vector<1x253xf32>, vector<1x3xf32> -> vector<1x256xf32>
    %c3_i32 = arith.constant 3 : i32
    %138 = vector.broadcast %c3_i32 : i32 to vector<1x256xi32>
    %139 = arith.addi %64, %138 : vector<1x256xi32>
    %c0_i32_62 = arith.constant 0 : i32
    %140 = vector.broadcast %c0_i32_62 : i32 to vector<1x256xi32>
    %141 = arith.cmpi sge, %139, %140 : vector<1x256xi32>
    %c3_i32_63 = arith.constant 3 : i32
    %142 = vector.broadcast %c3_i32_63 : i32 to vector<1x256xi32>
    %143 = arith.addi %64, %142 : vector<1x256xi32>
    %c16_i32_64 = arith.constant 16 : i32
    %144 = vector.broadcast %c16_i32_64 : i32 to vector<1x256xi32>
    %145 = arith.cmpi slt, %143, %144 : vector<1x256xi32>
    %146 = arith.andi %141, %145 : vector<1x256xi1>
    %cst_65 = arith.constant 0.000000e+00 : f32
    %147 = vector.broadcast %cst_65 : f32 to vector<1x256xf32>
    %148 = arith.select %146, %137, %147 : vector<1x256xi1>, vector<1x256xf32>
    %cst_66 = arith.constant 0.000000e+00 : f32
    %149 = vector.broadcast %cst_66 : f32 to vector<1x3xf32>
    %150 = vector.extract_strided_slice %47 {offsets = [0, 0], sizes = [1, 253], strides = [1, 1]} : vector<1x256xf32> to vector<1x253xf32>
    %151 = tpu.concatenate %149, %150 in 1 : vector<1x3xf32>, vector<1x253xf32> -> vector<1x256xf32>
    %c-3_i32_67 = arith.constant -3 : i32
    %152 = vector.broadcast %c-3_i32_67 : i32 to vector<1x256xi32>
    %153 = arith.addi %64, %152 : vector<1x256xi32>
    %c0_i32_68 = arith.constant 0 : i32
    %154 = vector.broadcast %c0_i32_68 : i32 to vector<1x256xi32>
    %155 = arith.cmpi sge, %153, %154 : vector<1x256xi32>
    %c-3_i32_69 = arith.constant -3 : i32
    %156 = vector.broadcast %c-3_i32_69 : i32 to vector<1x256xi32>
    %157 = arith.addi %64, %156 : vector<1x256xi32>
    %c16_i32_70 = arith.constant 16 : i32
    %158 = vector.broadcast %c16_i32_70 : i32 to vector<1x256xi32>
    %159 = arith.cmpi slt, %157, %158 : vector<1x256xi32>
    %160 = arith.andi %155, %159 : vector<1x256xi1>
    %cst_71 = arith.constant 0.000000e+00 : f32
    %161 = vector.broadcast %cst_71 : f32 to vector<1x256xf32>
    %162 = arith.select %160, %151, %161 : vector<1x256xi1>, vector<1x256xf32>
    %cst_72 = arith.constant 0.000000e+00 : f32
    %163 = vector.broadcast %cst_72 : f32 to vector<1x2xf32>
    %164 = vector.extract_strided_slice %47 {offsets = [0, 0], sizes = [1, 254], strides = [1, 1]} : vector<1x256xf32> to vector<1x254xf32>
    %165 = tpu.concatenate %163, %164 in 1 : vector<1x2xf32>, vector<1x254xf32> -> vector<1x256xf32>
    %c-2_i32_73 = arith.constant -2 : i32
    %166 = vector.broadcast %c-2_i32_73 : i32 to vector<1x256xi32>
    %167 = arith.addi %64, %166 : vector<1x256xi32>
    %c0_i32_74 = arith.constant 0 : i32
    %168 = vector.broadcast %c0_i32_74 : i32 to vector<1x256xi32>
    %169 = arith.cmpi sge, %167, %168 : vector<1x256xi32>
    %c-2_i32_75 = arith.constant -2 : i32
    %170 = vector.broadcast %c-2_i32_75 : i32 to vector<1x256xi32>
    %171 = arith.addi %64, %170 : vector<1x256xi32>
    %c16_i32_76 = arith.constant 16 : i32
    %172 = vector.broadcast %c16_i32_76 : i32 to vector<1x256xi32>
    %173 = arith.cmpi slt, %171, %172 : vector<1x256xi32>
    %174 = arith.andi %169, %173 : vector<1x256xi1>
    %cst_77 = arith.constant 0.000000e+00 : f32
    %175 = vector.broadcast %cst_77 : f32 to vector<1x256xf32>
    %176 = arith.select %174, %165, %175 : vector<1x256xi1>, vector<1x256xf32>
    %cst_78 = arith.constant 0.000000e+00 : f32
    %177 = vector.broadcast %cst_78 : f32 to vector<1x1xf32>
    %178 = vector.extract_strided_slice %47 {offsets = [0, 0], sizes = [1, 255], strides = [1, 1]} : vector<1x256xf32> to vector<1x255xf32>
    %179 = tpu.concatenate %177, %178 in 1 : vector<1x1xf32>, vector<1x255xf32> -> vector<1x256xf32>
    %c-1_i32_79 = arith.constant -1 : i32
    %180 = vector.broadcast %c-1_i32_79 : i32 to vector<1x256xi32>
    %181 = arith.addi %64, %180 : vector<1x256xi32>
    %c0_i32_80 = arith.constant 0 : i32
    %182 = vector.broadcast %c0_i32_80 : i32 to vector<1x256xi32>
    %183 = arith.cmpi sge, %181, %182 : vector<1x256xi32>
    %c-1_i32_81 = arith.constant -1 : i32
    %184 = vector.broadcast %c-1_i32_81 : i32 to vector<1x256xi32>
    %185 = arith.addi %64, %184 : vector<1x256xi32>
    %c16_i32_82 = arith.constant 16 : i32
    %186 = vector.broadcast %c16_i32_82 : i32 to vector<1x256xi32>
    %187 = arith.cmpi slt, %185, %186 : vector<1x256xi32>
    %188 = arith.andi %183, %187 : vector<1x256xi1>
    %cst_83 = arith.constant 0.000000e+00 : f32
    %189 = vector.broadcast %cst_83 : f32 to vector<1x256xf32>
    %190 = arith.select %188, %179, %189 : vector<1x256xi1>, vector<1x256xf32>
    %cst_84 = arith.constant 0.000000e+00 : f32
    %191 = vector.broadcast %cst_84 : f32 to vector<1x1xf32>
    %192 = vector.extract_strided_slice %47 {offsets = [0, 1], sizes = [1, 255], strides = [1, 1]} : vector<1x256xf32> to vector<1x255xf32>
    %193 = tpu.concatenate %192, %191 in 1 : vector<1x255xf32>, vector<1x1xf32> -> vector<1x256xf32>
    %c1_i32_85 = arith.constant 1 : i32
    %194 = vector.broadcast %c1_i32_85 : i32 to vector<1x256xi32>
    %195 = arith.addi %64, %194 : vector<1x256xi32>
    %c0_i32_86 = arith.constant 0 : i32
    %196 = vector.broadcast %c0_i32_86 : i32 to vector<1x256xi32>
    %197 = arith.cmpi sge, %195, %196 : vector<1x256xi32>
    %c1_i32_87 = arith.constant 1 : i32
    %198 = vector.broadcast %c1_i32_87 : i32 to vector<1x256xi32>
    %199 = arith.addi %64, %198 : vector<1x256xi32>
    %c16_i32_88 = arith.constant 16 : i32
    %200 = vector.broadcast %c16_i32_88 : i32 to vector<1x256xi32>
    %201 = arith.cmpi slt, %199, %200 : vector<1x256xi32>
    %202 = arith.andi %197, %201 : vector<1x256xi1>
    %cst_89 = arith.constant 0.000000e+00 : f32
    %203 = vector.broadcast %cst_89 : f32 to vector<1x256xf32>
    %204 = arith.select %202, %193, %203 : vector<1x256xi1>, vector<1x256xf32>
    %cst_90 = arith.constant 0.000000e+00 : f32
    %205 = vector.broadcast %cst_90 : f32 to vector<1x2xf32>
    %206 = vector.extract_strided_slice %47 {offsets = [0, 2], sizes = [1, 254], strides = [1, 1]} : vector<1x256xf32> to vector<1x254xf32>
    %207 = tpu.concatenate %206, %205 in 1 : vector<1x254xf32>, vector<1x2xf32> -> vector<1x256xf32>
    %c2_i32_91 = arith.constant 2 : i32
    %208 = vector.broadcast %c2_i32_91 : i32 to vector<1x256xi32>
    %209 = arith.addi %64, %208 : vector<1x256xi32>
    %c0_i32_92 = arith.constant 0 : i32
    %210 = vector.broadcast %c0_i32_92 : i32 to vector<1x256xi32>
    %211 = arith.cmpi sge, %209, %210 : vector<1x256xi32>
    %c2_i32_93 = arith.constant 2 : i32
    %212 = vector.broadcast %c2_i32_93 : i32 to vector<1x256xi32>
    %213 = arith.addi %64, %212 : vector<1x256xi32>
    %c16_i32_94 = arith.constant 16 : i32
    %214 = vector.broadcast %c16_i32_94 : i32 to vector<1x256xi32>
    %215 = arith.cmpi slt, %213, %214 : vector<1x256xi32>
    %216 = arith.andi %211, %215 : vector<1x256xi1>
    %cst_95 = arith.constant 0.000000e+00 : f32
    %217 = vector.broadcast %cst_95 : f32 to vector<1x256xf32>
    %218 = arith.select %216, %207, %217 : vector<1x256xi1>, vector<1x256xf32>
    %cst_96 = arith.constant 0.000000e+00 : f32
    %219 = vector.broadcast %cst_96 : f32 to vector<1x3xf32>
    %220 = vector.extract_strided_slice %47 {offsets = [0, 3], sizes = [1, 253], strides = [1, 1]} : vector<1x256xf32> to vector<1x253xf32>
    %221 = tpu.concatenate %220, %219 in 1 : vector<1x253xf32>, vector<1x3xf32> -> vector<1x256xf32>
    %c3_i32_97 = arith.constant 3 : i32
    %222 = vector.broadcast %c3_i32_97 : i32 to vector<1x256xi32>
    %223 = arith.addi %64, %222 : vector<1x256xi32>
    %c0_i32_98 = arith.constant 0 : i32
    %224 = vector.broadcast %c0_i32_98 : i32 to vector<1x256xi32>
    %225 = arith.cmpi sge, %223, %224 : vector<1x256xi32>
    %c3_i32_99 = arith.constant 3 : i32
    %226 = vector.broadcast %c3_i32_99 : i32 to vector<1x256xi32>
    %227 = arith.addi %64, %226 : vector<1x256xi32>
    %c16_i32_100 = arith.constant 16 : i32
    %228 = vector.broadcast %c16_i32_100 : i32 to vector<1x256xi32>
    %229 = arith.cmpi slt, %227, %228 : vector<1x256xi32>
    %230 = arith.andi %225, %229 : vector<1x256xi1>
    %cst_101 = arith.constant 0.000000e+00 : f32
    %231 = vector.broadcast %cst_101 : f32 to vector<1x256xf32>
    %232 = arith.select %230, %221, %231 : vector<1x256xi1>, vector<1x256xf32>
    %c0_102 = arith.constant 0 : index
    %233 = memref.load %arg11[%c0_102] : memref<1xf32, #tpu.memory_space<smem>>
    %234 = vector.broadcast %233 : f32 to vector<1x256xf32>
    %c0_103 = arith.constant 0 : index
    %235 = memref.load %arg10[%c0_103] : memref<98xf32, #tpu.memory_space<smem>>
    %236 = vector.broadcast %235 : f32 to vector<1x256xf32>
    %237 = arith.mulf %236, %78 : vector<1x256xf32>
    %c1 = arith.constant 1 : index
    %238 = memref.load %arg10[%c1] : memref<98xf32, #tpu.memory_space<smem>>
    %239 = vector.broadcast %238 : f32 to vector<1x256xf32>
    %240 = arith.mulf %239, %92 : vector<1x256xf32>
    %241 = arith.addf %237, %240 : vector<1x256xf32>
    %c2 = arith.constant 2 : index
    %242 = memref.load %arg10[%c2] : memref<98xf32, #tpu.memory_space<smem>>
    %243 = vector.broadcast %242 : f32 to vector<1x256xf32>
    %244 = arith.mulf %243, %106 : vector<1x256xf32>
    %245 = arith.addf %241, %244 : vector<1x256xf32>
    %c3 = arith.constant 3 : index
    %246 = memref.load %arg10[%c3] : memref<98xf32, #tpu.memory_space<smem>>
    %247 = vector.broadcast %246 : f32 to vector<1x256xf32>
    %248 = arith.mulf %247, %44 : vector<1x256xf32>
    %249 = arith.addf %245, %248 : vector<1x256xf32>
    %c4 = arith.constant 4 : index
    %250 = memref.load %arg10[%c4] : memref<98xf32, #tpu.memory_space<smem>>
    %251 = vector.broadcast %250 : f32 to vector<1x256xf32>
    %252 = arith.mulf %251, %120 : vector<1x256xf32>
    %253 = arith.addf %249, %252 : vector<1x256xf32>
    %c5 = arith.constant 5 : index
    %254 = memref.load %arg10[%c5] : memref<98xf32, #tpu.memory_space<smem>>
    %255 = vector.broadcast %254 : f32 to vector<1x256xf32>
    %256 = arith.mulf %255, %134 : vector<1x256xf32>
    %257 = arith.addf %253, %256 : vector<1x256xf32>
    %c6 = arith.constant 6 : index
    %258 = memref.load %arg10[%c6] : memref<98xf32, #tpu.memory_space<smem>>
    %259 = vector.broadcast %258 : f32 to vector<1x256xf32>
    %260 = arith.mulf %259, %148 : vector<1x256xf32>
    %261 = arith.addf %257, %260 : vector<1x256xf32>
    %c49 = arith.constant 49 : index
    %262 = memref.load %arg10[%c49] : memref<98xf32, #tpu.memory_space<smem>>
    %263 = vector.broadcast %262 : f32 to vector<1x256xf32>
    %264 = arith.mulf %263, %162 : vector<1x256xf32>
    %265 = arith.addf %261, %264 : vector<1x256xf32>
    %c50 = arith.constant 50 : index
    %266 = memref.load %arg10[%c50] : memref<98xf32, #tpu.memory_space<smem>>
    %267 = vector.broadcast %266 : f32 to vector<1x256xf32>
    %268 = arith.mulf %267, %176 : vector<1x256xf32>
    %269 = arith.addf %265, %268 : vector<1x256xf32>
    %c51 = arith.constant 51 : index
    %270 = memref.load %arg10[%c51] : memref<98xf32, #tpu.memory_space<smem>>
    %271 = vector.broadcast %270 : f32 to vector<1x256xf32>
    %272 = arith.mulf %271, %190 : vector<1x256xf32>
    %273 = arith.addf %269, %272 : vector<1x256xf32>
    %c52 = arith.constant 52 : index
    %274 = memref.load %arg10[%c52] : memref<98xf32, #tpu.memory_space<smem>>
    %275 = vector.broadcast %274 : f32 to vector<1x256xf32>
    %276 = arith.mulf %275, %47 : vector<1x256xf32>
    %277 = arith.addf %273, %276 : vector<1x256xf32>
    %c53 = arith.constant 53 : index
    %278 = memref.load %arg10[%c53] : memref<98xf32, #tpu.memory_space<smem>>
    %279 = vector.broadcast %278 : f32 to vector<1x256xf32>
    %280 = arith.mulf %279, %204 : vector<1x256xf32>
    %281 = arith.addf %277, %280 : vector<1x256xf32>
    %c54 = arith.constant 54 : index
    %282 = memref.load %arg10[%c54] : memref<98xf32, #tpu.memory_space<smem>>
    %283 = vector.broadcast %282 : f32 to vector<1x256xf32>
    %284 = arith.mulf %283, %218 : vector<1x256xf32>
    %285 = arith.addf %281, %284 : vector<1x256xf32>
    %c55 = arith.constant 55 : index
    %286 = memref.load %arg10[%c55] : memref<98xf32, #tpu.memory_space<smem>>
    %287 = vector.broadcast %286 : f32 to vector<1x256xf32>
    %288 = arith.mulf %287, %232 : vector<1x256xf32>
    %289 = arith.addf %285, %288 : vector<1x256xf32>
    %cst_104 = arith.constant 0.000000e+00 : f32
    %290 = vector.broadcast %cst_104 : f32 to vector<1x48xf32>
    %291 = vector.extract_strided_slice %289 {offsets = [0, 0], sizes = [1, 208], strides = [1, 1]} : vector<1x256xf32> to vector<1x208xf32>
    %292 = tpu.concatenate %290, %291 in 1 : vector<1x48xf32>, vector<1x208xf32> -> vector<1x256xf32>
    %293 = arith.addf %234, %292 : vector<1x256xf32>
    %c7 = arith.constant 7 : index
    %294 = memref.load %arg10[%c7] : memref<98xf32, #tpu.memory_space<smem>>
    %295 = vector.broadcast %294 : f32 to vector<1x256xf32>
    %296 = arith.mulf %295, %78 : vector<1x256xf32>
    %c8 = arith.constant 8 : index
    %297 = memref.load %arg10[%c8] : memref<98xf32, #tpu.memory_space<smem>>
    %298 = vector.broadcast %297 : f32 to vector<1x256xf32>
    %299 = arith.mulf %298, %92 : vector<1x256xf32>
    %300 = arith.addf %296, %299 : vector<1x256xf32>
    %c9 = arith.constant 9 : index
    %301 = memref.load %arg10[%c9] : memref<98xf32, #tpu.memory_space<smem>>
    %302 = vector.broadcast %301 : f32 to vector<1x256xf32>
    %303 = arith.mulf %302, %106 : vector<1x256xf32>
    %304 = arith.addf %300, %303 : vector<1x256xf32>
    %c10 = arith.constant 10 : index
    %305 = memref.load %arg10[%c10] : memref<98xf32, #tpu.memory_space<smem>>
    %306 = vector.broadcast %305 : f32 to vector<1x256xf32>
    %307 = arith.mulf %306, %44 : vector<1x256xf32>
    %308 = arith.addf %304, %307 : vector<1x256xf32>
    %c11 = arith.constant 11 : index
    %309 = memref.load %arg10[%c11] : memref<98xf32, #tpu.memory_space<smem>>
    %310 = vector.broadcast %309 : f32 to vector<1x256xf32>
    %311 = arith.mulf %310, %120 : vector<1x256xf32>
    %312 = arith.addf %308, %311 : vector<1x256xf32>
    %c12 = arith.constant 12 : index
    %313 = memref.load %arg10[%c12] : memref<98xf32, #tpu.memory_space<smem>>
    %314 = vector.broadcast %313 : f32 to vector<1x256xf32>
    %315 = arith.mulf %314, %134 : vector<1x256xf32>
    %316 = arith.addf %312, %315 : vector<1x256xf32>
    %c13 = arith.constant 13 : index
    %317 = memref.load %arg10[%c13] : memref<98xf32, #tpu.memory_space<smem>>
    %318 = vector.broadcast %317 : f32 to vector<1x256xf32>
    %319 = arith.mulf %318, %148 : vector<1x256xf32>
    %320 = arith.addf %316, %319 : vector<1x256xf32>
    %c56 = arith.constant 56 : index
    %321 = memref.load %arg10[%c56] : memref<98xf32, #tpu.memory_space<smem>>
    %322 = vector.broadcast %321 : f32 to vector<1x256xf32>
    %323 = arith.mulf %322, %162 : vector<1x256xf32>
    %324 = arith.addf %320, %323 : vector<1x256xf32>
    %c57 = arith.constant 57 : index
    %325 = memref.load %arg10[%c57] : memref<98xf32, #tpu.memory_space<smem>>
    %326 = vector.broadcast %325 : f32 to vector<1x256xf32>
    %327 = arith.mulf %326, %176 : vector<1x256xf32>
    %328 = arith.addf %324, %327 : vector<1x256xf32>
    %c58 = arith.constant 58 : index
    %329 = memref.load %arg10[%c58] : memref<98xf32, #tpu.memory_space<smem>>
    %330 = vector.broadcast %329 : f32 to vector<1x256xf32>
    %331 = arith.mulf %330, %190 : vector<1x256xf32>
    %332 = arith.addf %328, %331 : vector<1x256xf32>
    %c59 = arith.constant 59 : index
    %333 = memref.load %arg10[%c59] : memref<98xf32, #tpu.memory_space<smem>>
    %334 = vector.broadcast %333 : f32 to vector<1x256xf32>
    %335 = arith.mulf %334, %47 : vector<1x256xf32>
    %336 = arith.addf %332, %335 : vector<1x256xf32>
    %c60 = arith.constant 60 : index
    %337 = memref.load %arg10[%c60] : memref<98xf32, #tpu.memory_space<smem>>
    %338 = vector.broadcast %337 : f32 to vector<1x256xf32>
    %339 = arith.mulf %338, %204 : vector<1x256xf32>
    %340 = arith.addf %336, %339 : vector<1x256xf32>
    %c61 = arith.constant 61 : index
    %341 = memref.load %arg10[%c61] : memref<98xf32, #tpu.memory_space<smem>>
    %342 = vector.broadcast %341 : f32 to vector<1x256xf32>
    %343 = arith.mulf %342, %218 : vector<1x256xf32>
    %344 = arith.addf %340, %343 : vector<1x256xf32>
    %c62 = arith.constant 62 : index
    %345 = memref.load %arg10[%c62] : memref<98xf32, #tpu.memory_space<smem>>
    %346 = vector.broadcast %345 : f32 to vector<1x256xf32>
    %347 = arith.mulf %346, %232 : vector<1x256xf32>
    %348 = arith.addf %344, %347 : vector<1x256xf32>
    %cst_105 = arith.constant 0.000000e+00 : f32
    %349 = vector.broadcast %cst_105 : f32 to vector<1x32xf32>
    %350 = vector.extract_strided_slice %348 {offsets = [0, 0], sizes = [1, 224], strides = [1, 1]} : vector<1x256xf32> to vector<1x224xf32>
    %351 = tpu.concatenate %349, %350 in 1 : vector<1x32xf32>, vector<1x224xf32> -> vector<1x256xf32>
    %352 = arith.addf %293, %351 : vector<1x256xf32>
    %c14 = arith.constant 14 : index
    %353 = memref.load %arg10[%c14] : memref<98xf32, #tpu.memory_space<smem>>
    %354 = vector.broadcast %353 : f32 to vector<1x256xf32>
    %355 = arith.mulf %354, %78 : vector<1x256xf32>
    %c15 = arith.constant 15 : index
    %356 = memref.load %arg10[%c15] : memref<98xf32, #tpu.memory_space<smem>>
    %357 = vector.broadcast %356 : f32 to vector<1x256xf32>
    %358 = arith.mulf %357, %92 : vector<1x256xf32>
    %359 = arith.addf %355, %358 : vector<1x256xf32>
    %c16 = arith.constant 16 : index
    %360 = memref.load %arg10[%c16] : memref<98xf32, #tpu.memory_space<smem>>
    %361 = vector.broadcast %360 : f32 to vector<1x256xf32>
    %362 = arith.mulf %361, %106 : vector<1x256xf32>
    %363 = arith.addf %359, %362 : vector<1x256xf32>
    %c17 = arith.constant 17 : index
    %364 = memref.load %arg10[%c17] : memref<98xf32, #tpu.memory_space<smem>>
    %365 = vector.broadcast %364 : f32 to vector<1x256xf32>
    %366 = arith.mulf %365, %44 : vector<1x256xf32>
    %367 = arith.addf %363, %366 : vector<1x256xf32>
    %c18 = arith.constant 18 : index
    %368 = memref.load %arg10[%c18] : memref<98xf32, #tpu.memory_space<smem>>
    %369 = vector.broadcast %368 : f32 to vector<1x256xf32>
    %370 = arith.mulf %369, %120 : vector<1x256xf32>
    %371 = arith.addf %367, %370 : vector<1x256xf32>
    %c19 = arith.constant 19 : index
    %372 = memref.load %arg10[%c19] : memref<98xf32, #tpu.memory_space<smem>>
    %373 = vector.broadcast %372 : f32 to vector<1x256xf32>
    %374 = arith.mulf %373, %134 : vector<1x256xf32>
    %375 = arith.addf %371, %374 : vector<1x256xf32>
    %c20 = arith.constant 20 : index
    %376 = memref.load %arg10[%c20] : memref<98xf32, #tpu.memory_space<smem>>
    %377 = vector.broadcast %376 : f32 to vector<1x256xf32>
    %378 = arith.mulf %377, %148 : vector<1x256xf32>
    %379 = arith.addf %375, %378 : vector<1x256xf32>
    %c63 = arith.constant 63 : index
    %380 = memref.load %arg10[%c63] : memref<98xf32, #tpu.memory_space<smem>>
    %381 = vector.broadcast %380 : f32 to vector<1x256xf32>
    %382 = arith.mulf %381, %162 : vector<1x256xf32>
    %383 = arith.addf %379, %382 : vector<1x256xf32>
    %c64 = arith.constant 64 : index
    %384 = memref.load %arg10[%c64] : memref<98xf32, #tpu.memory_space<smem>>
    %385 = vector.broadcast %384 : f32 to vector<1x256xf32>
    %386 = arith.mulf %385, %176 : vector<1x256xf32>
    %387 = arith.addf %383, %386 : vector<1x256xf32>
    %c65 = arith.constant 65 : index
    %388 = memref.load %arg10[%c65] : memref<98xf32, #tpu.memory_space<smem>>
    %389 = vector.broadcast %388 : f32 to vector<1x256xf32>
    %390 = arith.mulf %389, %190 : vector<1x256xf32>
    %391 = arith.addf %387, %390 : vector<1x256xf32>
    %c66 = arith.constant 66 : index
    %392 = memref.load %arg10[%c66] : memref<98xf32, #tpu.memory_space<smem>>
    %393 = vector.broadcast %392 : f32 to vector<1x256xf32>
    %394 = arith.mulf %393, %47 : vector<1x256xf32>
    %395 = arith.addf %391, %394 : vector<1x256xf32>
    %c67 = arith.constant 67 : index
    %396 = memref.load %arg10[%c67] : memref<98xf32, #tpu.memory_space<smem>>
    %397 = vector.broadcast %396 : f32 to vector<1x256xf32>
    %398 = arith.mulf %397, %204 : vector<1x256xf32>
    %399 = arith.addf %395, %398 : vector<1x256xf32>
    %c68 = arith.constant 68 : index
    %400 = memref.load %arg10[%c68] : memref<98xf32, #tpu.memory_space<smem>>
    %401 = vector.broadcast %400 : f32 to vector<1x256xf32>
    %402 = arith.mulf %401, %218 : vector<1x256xf32>
    %403 = arith.addf %399, %402 : vector<1x256xf32>
    %c69 = arith.constant 69 : index
    %404 = memref.load %arg10[%c69] : memref<98xf32, #tpu.memory_space<smem>>
    %405 = vector.broadcast %404 : f32 to vector<1x256xf32>
    %406 = arith.mulf %405, %232 : vector<1x256xf32>
    %407 = arith.addf %403, %406 : vector<1x256xf32>
    %cst_106 = arith.constant 0.000000e+00 : f32
    %408 = vector.broadcast %cst_106 : f32 to vector<1x16xf32>
    %409 = vector.extract_strided_slice %407 {offsets = [0, 0], sizes = [1, 240], strides = [1, 1]} : vector<1x256xf32> to vector<1x240xf32>
    %410 = tpu.concatenate %408, %409 in 1 : vector<1x16xf32>, vector<1x240xf32> -> vector<1x256xf32>
    %411 = arith.addf %352, %410 : vector<1x256xf32>
    %c21 = arith.constant 21 : index
    %412 = memref.load %arg10[%c21] : memref<98xf32, #tpu.memory_space<smem>>
    %413 = vector.broadcast %412 : f32 to vector<1x256xf32>
    %414 = arith.mulf %413, %78 : vector<1x256xf32>
    %c22 = arith.constant 22 : index
    %415 = memref.load %arg10[%c22] : memref<98xf32, #tpu.memory_space<smem>>
    %416 = vector.broadcast %415 : f32 to vector<1x256xf32>
    %417 = arith.mulf %416, %92 : vector<1x256xf32>
    %418 = arith.addf %414, %417 : vector<1x256xf32>
    %c23 = arith.constant 23 : index
    %419 = memref.load %arg10[%c23] : memref<98xf32, #tpu.memory_space<smem>>
    %420 = vector.broadcast %419 : f32 to vector<1x256xf32>
    %421 = arith.mulf %420, %106 : vector<1x256xf32>
    %422 = arith.addf %418, %421 : vector<1x256xf32>
    %c24 = arith.constant 24 : index
    %423 = memref.load %arg10[%c24] : memref<98xf32, #tpu.memory_space<smem>>
    %424 = vector.broadcast %423 : f32 to vector<1x256xf32>
    %425 = arith.mulf %424, %44 : vector<1x256xf32>
    %426 = arith.addf %422, %425 : vector<1x256xf32>
    %c25 = arith.constant 25 : index
    %427 = memref.load %arg10[%c25] : memref<98xf32, #tpu.memory_space<smem>>
    %428 = vector.broadcast %427 : f32 to vector<1x256xf32>
    %429 = arith.mulf %428, %120 : vector<1x256xf32>
    %430 = arith.addf %426, %429 : vector<1x256xf32>
    %c26 = arith.constant 26 : index
    %431 = memref.load %arg10[%c26] : memref<98xf32, #tpu.memory_space<smem>>
    %432 = vector.broadcast %431 : f32 to vector<1x256xf32>
    %433 = arith.mulf %432, %134 : vector<1x256xf32>
    %434 = arith.addf %430, %433 : vector<1x256xf32>
    %c27 = arith.constant 27 : index
    %435 = memref.load %arg10[%c27] : memref<98xf32, #tpu.memory_space<smem>>
    %436 = vector.broadcast %435 : f32 to vector<1x256xf32>
    %437 = arith.mulf %436, %148 : vector<1x256xf32>
    %438 = arith.addf %434, %437 : vector<1x256xf32>
    %c70 = arith.constant 70 : index
    %439 = memref.load %arg10[%c70] : memref<98xf32, #tpu.memory_space<smem>>
    %440 = vector.broadcast %439 : f32 to vector<1x256xf32>
    %441 = arith.mulf %440, %162 : vector<1x256xf32>
    %442 = arith.addf %438, %441 : vector<1x256xf32>
    %c71 = arith.constant 71 : index
    %443 = memref.load %arg10[%c71] : memref<98xf32, #tpu.memory_space<smem>>
    %444 = vector.broadcast %443 : f32 to vector<1x256xf32>
    %445 = arith.mulf %444, %176 : vector<1x256xf32>
    %446 = arith.addf %442, %445 : vector<1x256xf32>
    %c72 = arith.constant 72 : index
    %447 = memref.load %arg10[%c72] : memref<98xf32, #tpu.memory_space<smem>>
    %448 = vector.broadcast %447 : f32 to vector<1x256xf32>
    %449 = arith.mulf %448, %190 : vector<1x256xf32>
    %450 = arith.addf %446, %449 : vector<1x256xf32>
    %c73 = arith.constant 73 : index
    %451 = memref.load %arg10[%c73] : memref<98xf32, #tpu.memory_space<smem>>
    %452 = vector.broadcast %451 : f32 to vector<1x256xf32>
    %453 = arith.mulf %452, %47 : vector<1x256xf32>
    %454 = arith.addf %450, %453 : vector<1x256xf32>
    %c74 = arith.constant 74 : index
    %455 = memref.load %arg10[%c74] : memref<98xf32, #tpu.memory_space<smem>>
    %456 = vector.broadcast %455 : f32 to vector<1x256xf32>
    %457 = arith.mulf %456, %204 : vector<1x256xf32>
    %458 = arith.addf %454, %457 : vector<1x256xf32>
    %c75 = arith.constant 75 : index
    %459 = memref.load %arg10[%c75] : memref<98xf32, #tpu.memory_space<smem>>
    %460 = vector.broadcast %459 : f32 to vector<1x256xf32>
    %461 = arith.mulf %460, %218 : vector<1x256xf32>
    %462 = arith.addf %458, %461 : vector<1x256xf32>
    %c76 = arith.constant 76 : index
    %463 = memref.load %arg10[%c76] : memref<98xf32, #tpu.memory_space<smem>>
    %464 = vector.broadcast %463 : f32 to vector<1x256xf32>
    %465 = arith.mulf %464, %232 : vector<1x256xf32>
    %466 = arith.addf %462, %465 : vector<1x256xf32>
    %467 = arith.addf %411, %466 : vector<1x256xf32>
    %c28 = arith.constant 28 : index
    %468 = memref.load %arg10[%c28] : memref<98xf32, #tpu.memory_space<smem>>
    %469 = vector.broadcast %468 : f32 to vector<1x256xf32>
    %470 = arith.mulf %469, %78 : vector<1x256xf32>
    %c29 = arith.constant 29 : index
    %471 = memref.load %arg10[%c29] : memref<98xf32, #tpu.memory_space<smem>>
    %472 = vector.broadcast %471 : f32 to vector<1x256xf32>
    %473 = arith.mulf %472, %92 : vector<1x256xf32>
    %474 = arith.addf %470, %473 : vector<1x256xf32>
    %c30 = arith.constant 30 : index
    %475 = memref.load %arg10[%c30] : memref<98xf32, #tpu.memory_space<smem>>
    %476 = vector.broadcast %475 : f32 to vector<1x256xf32>
    %477 = arith.mulf %476, %106 : vector<1x256xf32>
    %478 = arith.addf %474, %477 : vector<1x256xf32>
    %c31 = arith.constant 31 : index
    %479 = memref.load %arg10[%c31] : memref<98xf32, #tpu.memory_space<smem>>
    %480 = vector.broadcast %479 : f32 to vector<1x256xf32>
    %481 = arith.mulf %480, %44 : vector<1x256xf32>
    %482 = arith.addf %478, %481 : vector<1x256xf32>
    %c32 = arith.constant 32 : index
    %483 = memref.load %arg10[%c32] : memref<98xf32, #tpu.memory_space<smem>>
    %484 = vector.broadcast %483 : f32 to vector<1x256xf32>
    %485 = arith.mulf %484, %120 : vector<1x256xf32>
    %486 = arith.addf %482, %485 : vector<1x256xf32>
    %c33 = arith.constant 33 : index
    %487 = memref.load %arg10[%c33] : memref<98xf32, #tpu.memory_space<smem>>
    %488 = vector.broadcast %487 : f32 to vector<1x256xf32>
    %489 = arith.mulf %488, %134 : vector<1x256xf32>
    %490 = arith.addf %486, %489 : vector<1x256xf32>
    %c34 = arith.constant 34 : index
    %491 = memref.load %arg10[%c34] : memref<98xf32, #tpu.memory_space<smem>>
    %492 = vector.broadcast %491 : f32 to vector<1x256xf32>
    %493 = arith.mulf %492, %148 : vector<1x256xf32>
    %494 = arith.addf %490, %493 : vector<1x256xf32>
    %c77 = arith.constant 77 : index
    %495 = memref.load %arg10[%c77] : memref<98xf32, #tpu.memory_space<smem>>
    %496 = vector.broadcast %495 : f32 to vector<1x256xf32>
    %497 = arith.mulf %496, %162 : vector<1x256xf32>
    %498 = arith.addf %494, %497 : vector<1x256xf32>
    %c78 = arith.constant 78 : index
    %499 = memref.load %arg10[%c78] : memref<98xf32, #tpu.memory_space<smem>>
    %500 = vector.broadcast %499 : f32 to vector<1x256xf32>
    %501 = arith.mulf %500, %176 : vector<1x256xf32>
    %502 = arith.addf %498, %501 : vector<1x256xf32>
    %c79 = arith.constant 79 : index
    %503 = memref.load %arg10[%c79] : memref<98xf32, #tpu.memory_space<smem>>
    %504 = vector.broadcast %503 : f32 to vector<1x256xf32>
    %505 = arith.mulf %504, %190 : vector<1x256xf32>
    %506 = arith.addf %502, %505 : vector<1x256xf32>
    %c80 = arith.constant 80 : index
    %507 = memref.load %arg10[%c80] : memref<98xf32, #tpu.memory_space<smem>>
    %508 = vector.broadcast %507 : f32 to vector<1x256xf32>
    %509 = arith.mulf %508, %47 : vector<1x256xf32>
    %510 = arith.addf %506, %509 : vector<1x256xf32>
    %c81 = arith.constant 81 : index
    %511 = memref.load %arg10[%c81] : memref<98xf32, #tpu.memory_space<smem>>
    %512 = vector.broadcast %511 : f32 to vector<1x256xf32>
    %513 = arith.mulf %512, %204 : vector<1x256xf32>
    %514 = arith.addf %510, %513 : vector<1x256xf32>
    %c82 = arith.constant 82 : index
    %515 = memref.load %arg10[%c82] : memref<98xf32, #tpu.memory_space<smem>>
    %516 = vector.broadcast %515 : f32 to vector<1x256xf32>
    %517 = arith.mulf %516, %218 : vector<1x256xf32>
    %518 = arith.addf %514, %517 : vector<1x256xf32>
    %c83 = arith.constant 83 : index
    %519 = memref.load %arg10[%c83] : memref<98xf32, #tpu.memory_space<smem>>
    %520 = vector.broadcast %519 : f32 to vector<1x256xf32>
    %521 = arith.mulf %520, %232 : vector<1x256xf32>
    %522 = arith.addf %518, %521 : vector<1x256xf32>
    %cst_107 = arith.constant 0.000000e+00 : f32
    %523 = vector.broadcast %cst_107 : f32 to vector<1x16xf32>
    %524 = vector.extract_strided_slice %522 {offsets = [0, 16], sizes = [1, 240], strides = [1, 1]} : vector<1x256xf32> to vector<1x240xf32>
    %525 = tpu.concatenate %524, %523 in 1 : vector<1x240xf32>, vector<1x16xf32> -> vector<1x256xf32>
    %526 = arith.addf %467, %525 : vector<1x256xf32>
    %c35 = arith.constant 35 : index
    %527 = memref.load %arg10[%c35] : memref<98xf32, #tpu.memory_space<smem>>
    %528 = vector.broadcast %527 : f32 to vector<1x256xf32>
    %529 = arith.mulf %528, %78 : vector<1x256xf32>
    %c36 = arith.constant 36 : index
    %530 = memref.load %arg10[%c36] : memref<98xf32, #tpu.memory_space<smem>>
    %531 = vector.broadcast %530 : f32 to vector<1x256xf32>
    %532 = arith.mulf %531, %92 : vector<1x256xf32>
    %533 = arith.addf %529, %532 : vector<1x256xf32>
    %c37 = arith.constant 37 : index
    %534 = memref.load %arg10[%c37] : memref<98xf32, #tpu.memory_space<smem>>
    %535 = vector.broadcast %534 : f32 to vector<1x256xf32>
    %536 = arith.mulf %535, %106 : vector<1x256xf32>
    %537 = arith.addf %533, %536 : vector<1x256xf32>
    %c38 = arith.constant 38 : index
    %538 = memref.load %arg10[%c38] : memref<98xf32, #tpu.memory_space<smem>>
    %539 = vector.broadcast %538 : f32 to vector<1x256xf32>
    %540 = arith.mulf %539, %44 : vector<1x256xf32>
    %541 = arith.addf %537, %540 : vector<1x256xf32>
    %c39 = arith.constant 39 : index
    %542 = memref.load %arg10[%c39] : memref<98xf32, #tpu.memory_space<smem>>
    %543 = vector.broadcast %542 : f32 to vector<1x256xf32>
    %544 = arith.mulf %543, %120 : vector<1x256xf32>
    %545 = arith.addf %541, %544 : vector<1x256xf32>
    %c40 = arith.constant 40 : index
    %546 = memref.load %arg10[%c40] : memref<98xf32, #tpu.memory_space<smem>>
    %547 = vector.broadcast %546 : f32 to vector<1x256xf32>
    %548 = arith.mulf %547, %134 : vector<1x256xf32>
    %549 = arith.addf %545, %548 : vector<1x256xf32>
    %c41 = arith.constant 41 : index
    %550 = memref.load %arg10[%c41] : memref<98xf32, #tpu.memory_space<smem>>
    %551 = vector.broadcast %550 : f32 to vector<1x256xf32>
    %552 = arith.mulf %551, %148 : vector<1x256xf32>
    %553 = arith.addf %549, %552 : vector<1x256xf32>
    %c84 = arith.constant 84 : index
    %554 = memref.load %arg10[%c84] : memref<98xf32, #tpu.memory_space<smem>>
    %555 = vector.broadcast %554 : f32 to vector<1x256xf32>
    %556 = arith.mulf %555, %162 : vector<1x256xf32>
    %557 = arith.addf %553, %556 : vector<1x256xf32>
    %c85 = arith.constant 85 : index
    %558 = memref.load %arg10[%c85] : memref<98xf32, #tpu.memory_space<smem>>
    %559 = vector.broadcast %558 : f32 to vector<1x256xf32>
    %560 = arith.mulf %559, %176 : vector<1x256xf32>
    %561 = arith.addf %557, %560 : vector<1x256xf32>
    %c86 = arith.constant 86 : index
    %562 = memref.load %arg10[%c86] : memref<98xf32, #tpu.memory_space<smem>>
    %563 = vector.broadcast %562 : f32 to vector<1x256xf32>
    %564 = arith.mulf %563, %190 : vector<1x256xf32>
    %565 = arith.addf %561, %564 : vector<1x256xf32>
    %c87 = arith.constant 87 : index
    %566 = memref.load %arg10[%c87] : memref<98xf32, #tpu.memory_space<smem>>
    %567 = vector.broadcast %566 : f32 to vector<1x256xf32>
    %568 = arith.mulf %567, %47 : vector<1x256xf32>
    %569 = arith.addf %565, %568 : vector<1x256xf32>
    %c88 = arith.constant 88 : index
    %570 = memref.load %arg10[%c88] : memref<98xf32, #tpu.memory_space<smem>>
    %571 = vector.broadcast %570 : f32 to vector<1x256xf32>
    %572 = arith.mulf %571, %204 : vector<1x256xf32>
    %573 = arith.addf %569, %572 : vector<1x256xf32>
    %c89 = arith.constant 89 : index
    %574 = memref.load %arg10[%c89] : memref<98xf32, #tpu.memory_space<smem>>
    %575 = vector.broadcast %574 : f32 to vector<1x256xf32>
    %576 = arith.mulf %575, %218 : vector<1x256xf32>
    %577 = arith.addf %573, %576 : vector<1x256xf32>
    %c90 = arith.constant 90 : index
    %578 = memref.load %arg10[%c90] : memref<98xf32, #tpu.memory_space<smem>>
    %579 = vector.broadcast %578 : f32 to vector<1x256xf32>
    %580 = arith.mulf %579, %232 : vector<1x256xf32>
    %581 = arith.addf %577, %580 : vector<1x256xf32>
    %cst_108 = arith.constant 0.000000e+00 : f32
    %582 = vector.broadcast %cst_108 : f32 to vector<1x32xf32>
    %583 = vector.extract_strided_slice %581 {offsets = [0, 32], sizes = [1, 224], strides = [1, 1]} : vector<1x256xf32> to vector<1x224xf32>
    %584 = tpu.concatenate %583, %582 in 1 : vector<1x224xf32>, vector<1x32xf32> -> vector<1x256xf32>
    %585 = arith.addf %526, %584 : vector<1x256xf32>
    %c42 = arith.constant 42 : index
    %586 = memref.load %arg10[%c42] : memref<98xf32, #tpu.memory_space<smem>>
    %587 = vector.broadcast %586 : f32 to vector<1x256xf32>
    %588 = arith.mulf %587, %78 : vector<1x256xf32>
    %c43 = arith.constant 43 : index
    %589 = memref.load %arg10[%c43] : memref<98xf32, #tpu.memory_space<smem>>
    %590 = vector.broadcast %589 : f32 to vector<1x256xf32>
    %591 = arith.mulf %590, %92 : vector<1x256xf32>
    %592 = arith.addf %588, %591 : vector<1x256xf32>
    %c44 = arith.constant 44 : index
    %593 = memref.load %arg10[%c44] : memref<98xf32, #tpu.memory_space<smem>>
    %594 = vector.broadcast %593 : f32 to vector<1x256xf32>
    %595 = arith.mulf %594, %106 : vector<1x256xf32>
    %596 = arith.addf %592, %595 : vector<1x256xf32>
    %c45 = arith.constant 45 : index
    %597 = memref.load %arg10[%c45] : memref<98xf32, #tpu.memory_space<smem>>
    %598 = vector.broadcast %597 : f32 to vector<1x256xf32>
    %599 = arith.mulf %598, %44 : vector<1x256xf32>
    %600 = arith.addf %596, %599 : vector<1x256xf32>
    %c46 = arith.constant 46 : index
    %601 = memref.load %arg10[%c46] : memref<98xf32, #tpu.memory_space<smem>>
    %602 = vector.broadcast %601 : f32 to vector<1x256xf32>
    %603 = arith.mulf %602, %120 : vector<1x256xf32>
    %604 = arith.addf %600, %603 : vector<1x256xf32>
    %c47 = arith.constant 47 : index
    %605 = memref.load %arg10[%c47] : memref<98xf32, #tpu.memory_space<smem>>
    %606 = vector.broadcast %605 : f32 to vector<1x256xf32>
    %607 = arith.mulf %606, %134 : vector<1x256xf32>
    %608 = arith.addf %604, %607 : vector<1x256xf32>
    %c48 = arith.constant 48 : index
    %609 = memref.load %arg10[%c48] : memref<98xf32, #tpu.memory_space<smem>>
    %610 = vector.broadcast %609 : f32 to vector<1x256xf32>
    %611 = arith.mulf %610, %148 : vector<1x256xf32>
    %612 = arith.addf %608, %611 : vector<1x256xf32>
    %c91 = arith.constant 91 : index
    %613 = memref.load %arg10[%c91] : memref<98xf32, #tpu.memory_space<smem>>
    %614 = vector.broadcast %613 : f32 to vector<1x256xf32>
    %615 = arith.mulf %614, %162 : vector<1x256xf32>
    %616 = arith.addf %612, %615 : vector<1x256xf32>
    %c92 = arith.constant 92 : index
    %617 = memref.load %arg10[%c92] : memref<98xf32, #tpu.memory_space<smem>>
    %618 = vector.broadcast %617 : f32 to vector<1x256xf32>
    %619 = arith.mulf %618, %176 : vector<1x256xf32>
    %620 = arith.addf %616, %619 : vector<1x256xf32>
    %c93 = arith.constant 93 : index
    %621 = memref.load %arg10[%c93] : memref<98xf32, #tpu.memory_space<smem>>
    %622 = vector.broadcast %621 : f32 to vector<1x256xf32>
    %623 = arith.mulf %622, %190 : vector<1x256xf32>
    %624 = arith.addf %620, %623 : vector<1x256xf32>
    %c94 = arith.constant 94 : index
    %625 = memref.load %arg10[%c94] : memref<98xf32, #tpu.memory_space<smem>>
    %626 = vector.broadcast %625 : f32 to vector<1x256xf32>
    %627 = arith.mulf %626, %47 : vector<1x256xf32>
    %628 = arith.addf %624, %627 : vector<1x256xf32>
    %c95 = arith.constant 95 : index
    %629 = memref.load %arg10[%c95] : memref<98xf32, #tpu.memory_space<smem>>
    %630 = vector.broadcast %629 : f32 to vector<1x256xf32>
    %631 = arith.mulf %630, %204 : vector<1x256xf32>
    %632 = arith.addf %628, %631 : vector<1x256xf32>
    %c96 = arith.constant 96 : index
    %633 = memref.load %arg10[%c96] : memref<98xf32, #tpu.memory_space<smem>>
    %634 = vector.broadcast %633 : f32 to vector<1x256xf32>
    %635 = arith.mulf %634, %218 : vector<1x256xf32>
    %636 = arith.addf %632, %635 : vector<1x256xf32>
    %c97 = arith.constant 97 : index
    %637 = memref.load %arg10[%c97] : memref<98xf32, #tpu.memory_space<smem>>
    %638 = vector.broadcast %637 : f32 to vector<1x256xf32>
    %639 = arith.mulf %638, %232 : vector<1x256xf32>
    %640 = arith.addf %636, %639 : vector<1x256xf32>
    %cst_109 = arith.constant 0.000000e+00 : f32
    %641 = vector.broadcast %cst_109 : f32 to vector<1x48xf32>
    %642 = vector.extract_strided_slice %640 {offsets = [0, 48], sizes = [1, 208], strides = [1, 1]} : vector<1x256xf32> to vector<1x208xf32>
    %643 = tpu.concatenate %642, %641 in 1 : vector<1x208xf32>, vector<1x48xf32> -> vector<1x256xf32>
    %644 = arith.addf %585, %643 : vector<1x256xf32>
    %645 = arith.negf %644 : vector<1x256xf32>
    %646 = math.exp %645 : vector<1x256xf32>
    %cst_110 = arith.constant 1.000000e+00 : f32
    %647 = vector.broadcast %cst_110 : f32 to vector<1x256xf32>
    %648 = arith.addf %647, %646 : vector<1x256xf32>
    %649 = arith.divf %647, %648 : vector<1x256xf32>
    %650 = vector.shape_cast %649 : vector<1x256xf32> to vector<1x1x256xf32>
    %651 = vector.broadcast %650 : vector<1x1x256xf32> to vector<1x4x256xf32>
    %652 = arith.mulf %651, %43 : vector<1x4x256xf32>
    %c0_111 = arith.constant 0 : index
    %c0_112 = arith.constant 0 : index
    %c0_113 = arith.constant 0 : index
    %653 = vector.load %arg12[%c0_111, %c0_112, %c0_113] : memref<1x4x256xf32, #tpu.memory_space<vmem>>, vector<1x4x256xf32>
    tpu.vector_store %arg12[%c0_111, %c0_112, %c0_113], %652 {strides = array<i32>} : memref<1x4x256xf32, #tpu.memory_space<vmem>>, vector<1x4x256xf32>,
    return
  }
  func.func @transform_0(%arg0: i32) -> (i32, i32, i32) {
    %c0_i32 = arith.constant 0 : i32
    %c0_i32_0 = arith.constant 0 : i32
    %c0_i32_1 = arith.constant 0 : i32
    return %arg0, %c0_i32, %c0_i32_0 : i32, i32, i32
  }
  func.func @transform_1(%arg0: i32) -> (i32, i32) {
    %c0_i32 = arith.constant 0 : i32
    %c0_i32_0 = arith.constant 0 : i32
    %c0_i32_1 = arith.constant 0 : i32
    return %c0_i32, %c0_i32_0 : i32, i32
  }
  func.func @transform_2(%arg0: i32) -> (i32, i32) {
    %c0_i32 = arith.constant 0 : i32
    %c0_i32_0 = arith.constant 0 : i32
    %c0_i32_1 = arith.constant 0 : i32
    return %c0_i32, %c0_i32_0 : i32, i32
  }
  func.func @transform_3(%arg0: i32) -> (i32, i32) {
    %c0_i32 = arith.constant 0 : i32
    %c0_i32_0 = arith.constant 0 : i32
    %c0_i32_1 = arith.constant 0 : i32
    return %c0_i32, %c0_i32_0 : i32, i32
  }
  func.func @transform_4(%arg0: i32) -> (i32, i32) {
    %c0_i32 = arith.constant 0 : i32
    %c0_i32_0 = arith.constant 0 : i32
    %c0_i32_1 = arith.constant 0 : i32
    return %c0_i32, %c0_i32_0 : i32, i32
  }
  func.func @transform_5(%arg0: i32) -> (i32, i32) {
    %c0_i32 = arith.constant 0 : i32
    %c0_i32_0 = arith.constant 0 : i32
    %c0_i32_1 = arith.constant 0 : i32
    return %c0_i32, %c0_i32_0 : i32, i32
  }
  func.func @transform_6(%arg0: i32) -> (i32, i32) {
    %c0_i32 = arith.constant 0 : i32
    %c0_i32_0 = arith.constant 0 : i32
    %c0_i32_1 = arith.constant 0 : i32
    return %c0_i32, %c0_i32_0 : i32, i32
  }
  func.func @transform_7(%arg0: i32) -> (i32, i32) {
    %c0_i32 = arith.constant 0 : i32
    %c0_i32_0 = arith.constant 0 : i32
    %c0_i32_1 = arith.constant 0 : i32
    return %c0_i32, %c0_i32_0 : i32, i32
  }
  func.func @transform_8(%arg0: i32) -> (i32, i32) {
    %c0_i32 = arith.constant 0 : i32
    %c0_i32_0 = arith.constant 0 : i32
    %c0_i32_1 = arith.constant 0 : i32
    return %c0_i32, %c0_i32_0 : i32, i32
  }
  func.func @transform_9(%arg0: i32) -> i32 {
    %c0_i32 = arith.constant 0 : i32
    %c0_i32_0 = arith.constant 0 : i32
    return %c0_i32 : i32
  }
  func.func @transform_10(%arg0: i32) -> i32 {
    %c0_i32 = arith.constant 0 : i32
    %c0_i32_0 = arith.constant 0 : i32
    return %c0_i32 : i32
  }
  func.func @transform_11(%arg0: i32) -> (i32, i32, i32) {
    %c0_i32 = arith.constant 0 : i32
    %c0_i32_0 = arith.constant 0 : i32
    %c0_i32_1 = arith.constant 0 : i32
    return %arg0, %c0_i32, %c0_i32_0 : i32, i32, i32
  }
}

</mosaic_0001>

<bundles_post_ra>
// kernel: tpu_custom_call.1
= control target key start
LH: loop header
LB: loop body
LE: loop exit
PB: predicated region body
PF: predicated region fallthrough
CT: control target
= control target key end

     0   :  { %s3635_s0 = inlined_call_operand.hbm [shape: f32[2,4,256], index: 0, kind: input, shape index: {}]   ;;  %s3636_s1 = inlined_call_operand.vmem [shape: f32[4,2], index: 1, kind: input, shape index: {}]   ;;  %s3637_s2 = inlined_call_operand.vmem [shape: f32[1,2], index: 2, kind: input, shape index: {}]   ;;  %s3638_s3 = inlined_call_operand.vmem [shape: f32[2,4], index: 3, kind: input, shape index: {}]   ;;  %s3639_s4 = inlined_call_operand.vmem [shape: f32[1,4], index: 4, kind: input, shape index: {}]   ;;  %s3640_s5 = inlined_call_operand.vmem [shape: f32[4,2], index: 5, kind: input, shape index: {}]   ;;  %s3641_s6 = inlined_call_operand.vmem [shape: f32[1,2], index: 6, kind: input, shape index: {}]   ;;  %s3642_s7 = inlined_call_operand.vmem [shape: f32[2,4], index: 7, kind: input, shape index: {}]   ;;  %s3643_s8 = inlined_call_operand.vmem [shape: f32[1,4], index: 8, kind: input, shape index: {}]   ;;  %s3644_s9 = inlined_call_operand.vmem [shape: f32[98], index: 9, kind: input, shape index: {}]   ;;  %s3645_s10 = inlined_call_operand.<no memory space> [shape: f32[1], index: 10, kind: input, shape index: {}]   ;;  %s3646_s11 = inlined_call_operand.hbm [shape: f32[2,4,256], index: 11, kind: output, shape index: {}]  }
   0x1   :  { %3783 = sst [smem:[#allocation120_spill]] %s3635_s0 }
   0x2   :  { %3784 = sst [smem:[#allocation121_spill]] %s3636_s1 }
   0x3   :  { %3785 = sst [smem:[#allocation122_spill]] %s3637_s2 }
   0x4   :  { %3786 = sst [smem:[#allocation123_spill]] %s3638_s3 }
   0x5   :  { %3787 = sst [smem:[#allocation124_spill]] %s3639_s4 }
   0x6   :  { %3788 = sst [smem:[#allocation125_spill]] %s3640_s5 }
   0x7   :  { %3789 = sst [smem:[#allocation126_spill]] %s3641_s6 }
   0x8   :  { %3790 = sst [smem:[#allocation127_spill]] %s3642_s7 }
   0x9   :  { %3791 = sst [smem:[#allocation128_spill]] %s3643_s8 }
   0xa   :  { %3792 = sst [smem:[#allocation129_spill]] %s3644_s9 }
   0xb   :  { %3793 = sst [smem:[#allocation130_spill]] %s3646_s11 }
   0xc   :  { %16 = sst [smem:[#allocation2]] %s3645_s10 }
   0xd   :  { %17 = vsyncpa [#allocation4], 0 }
   0xe   :  { %19 = vsyncpa [#allocation4 + $0x1], 0 }
   0xf   :  { %20 = vsyncpa [#allocation6], 0 }
  0x10   :  { %21 = vsyncpa [#allocation5], 0 }
  0x11   :  { %23 = vsyncpa [#allocation5 + $0x1], 0  ;;  %s2244_s19 = smov 0   ;;  %s2246_s20 = smov 0  }
  0x12   :  { %s2248_s21 = smov 0   ;;  %s2250_s22 = smov 0  }
  0x13 LB: > { %3794 = sst [smem:[#allocation12_spill]] %s2150_s19  ;;  %s2265_s10 = sadd.s32 4294967295, %s2162_s22   ;;  %s2162_s22 = sphi %s2250_s22, %s4248_s22   ;;  %s2158_s21 = sphi %s2248_s21, %s4251_s21   ;;  %s2154_s20 = sphi %s2246_s20, %s4250_s20   ;;  %s2150_s19 = sphi %s2244_s19, %s4249_s19  }
  0x14   : > { %3795 = sst [smem:[#allocation13_spill]] %s2154_s20  ;;  %s1803_s23 = sadd.s32 4294967294, %s2162_s22  }
  0x15   : > { %3796 = sst [smem:[#allocation14_spill]] %s2158_s21  ;;  %p49_p0 = scmp.ne.s32.totalorder %s2154_s20, %s2150_s19 }
  0x16   : > { %3797 = sst [smem:[#allocation15_spill]] %s2162_s22  ;;  %p3647_p1 = scmp.eq.s32.totalorder %s2265_s10, 0 }
  0x17   : > { %3798 = sst [smem:[#allocation16_spill]] %s2265_s10  ;;  %p289_p3 = scmp.eq.s32.totalorder %s1803_s23, 1 }
  0x18   : > { %p2274_p4 = por %p3647_p1, %p49_p0  ;;  %p1804_p5 = scmp.ge.s32.totalorder %s2162_s22, 1 }
  0x19   : > { %p2279_p6 = por %p289_p3, %p49_p0  ;;  %p296_p7 = scmp.lt.s32.totalorder %s2162_s22, 3 }
  0x1a   : > { %s3799_s24 = scalar_select %p2274_p4, 1, 0 }
  0x1b   : > { %s3800_s25 = scalar_select %p2279_p6, 1, 0 }
  0x1c   : > { %s3802_s9 = sld [smem:[#allocation129_spill]]  ;;  %p2287_p8 = pnand %p1804_p5, %p296_p7 }
  0x1d   : > { %3801 = sst [smem:[#allocation17_spill]] %s3800_s25  ;;  %s2295_s30 = sadd.s32 1, %s2162_s22  }
  0x1e   : > { %s3803_s29 = scalar_select %p2287_p8, 1, 0 }
  0x1f   : > { %p1967_p10 = pneg %p2287_p8  ;;  %3804 = sst [smem:[#allocation18_spill]] %s2295_s30 }
  0x20   : > { %s33_s13 = ssub.s32 %s2162_s22, %s2295_s30  ;;  %s36_s15 = sadd.s32 1, %s2158_s21 }
  0x21   : > { %p2299_p11 = pnand %p1967_p10, %p3647_p1  ;;  %p2305_p12 = scmp.eq.s32.totalorder %s33_s13, 0 }
  0x22   : > { %s333_s28 = sshll.u32 %s3802_s9, 4  ;;  %p43_p13 = scmp.ne.s32.totalorder %s2158_s21, %s2154_s20  ;;  %s334_s28 = int_to_ptr.vmem [resolvable:$true] %s333_s28 }
  0x23   : > { %s2051_s16 = scalar_lea.vmem %s334_s28, 16  ;;  %p2053_p3 = pneg %p2299_p11 }
  0x24   : > { %p2052_p0 = scmp.ne.s32.totalorder %s334_s28, %s2051_s16  ;;  %p2059_p9 = scmp.lt.s32.totalorder %s334_s28, %s334_s28 }
  0x25   : > { %p2060_p2 = scmp.lt.s32.totalorder %s2051_s16, %s2051_s16 }
  0x26   : > { %p2054_p5 = pnand %p2053_p3, %p2052_p0 }
  0x27   : > { %p2061_p10 = por %p2060_p2, %p2059_p9 }
  0x28   : > { %p2055_p7 = pneg %p2054_p5 }
  0x2a   : > { %p2062_p1 = pnand %p2061_p10, %p2055_p7 }
  0x2c   : > { %2065 = shalt.err (!%p2062_p1)
}
  0x2d   : > { %s2164_s17 = smov [#allocation7]   ;;  %p44_p2 = scmp.eq.s32.totalorder %s2162_s22, 0 }
  0x2e   : > { %1970 = dma.vmem_to_smem (!%p2299_p11), %s334_s28, 16, %s2164_s17, [#allocation6]  }
  0x2f   : > { %s2319_s18 = scalar_select %p2305_p12, %s2158_s21, %s36_s15  }
  0x30   : > { %p3808_p1 = scmp.eq.s32.totalorder %s2265_s10, 1  ;;  %p1980_p0 = scmp.lt.s32.totalorder %s2162_s22, 2 }
  0x31   : > { %3807 = sst [smem:[#allocation19_spill]] %s2319_s18  ;;  %s347_s26 = sand.u32 1, %s2158_s21  }
  0x32   : > { %p2327_p9 = por %p3808_p1, %p43_p13  ;;  %p45_p3 = por %p44_p2, %p43_p13 }
  0x33   : > { %s1807_s27 = sshll.u32 %s347_s26, 3  ;;  %s1929_s12 = sshll.u32 %s2162_s22, 7 }
  0x34   : > { %s3809_s23 = scalar_select %p2327_p9, 1, 0 }
  0x35   : > { %s3811_s0 = sld [smem:[#allocation120_spill]]  ;;  %s351_s14 = scalar_lea.vmem [#allocation3], %s1807_s27 }
  0x36   : > { %3810 = sst [smem:[#allocation20_spill]] %s3809_s23  ;;  %s359_s15 = sshll.u32 %s351_s14, 4  ;;  %s360_s15 = int_to_ptr.vmem [resolvable:$true] %s359_s15 }
  0x37   : > { %p2342_p11 = pnand %p1980_p0, %p45_p3  ;;  %s348_s9 = scalar_lea.sflag [#allocation4], %s347_s26 }
  0x39   : > { %p2068_p13 = pneg %p2342_p11 }
  0x3b   : > { %s2340_s28 = scalar_lea.hbm %s3811_s0, %s1929_s12  ;;  %s2071_s16 = scalar_lea.hbm %s3811_s0, 256 }
  0x3c   : > { %s2066_s18 = scalar_lea.hbm %s2340_s28, 128  ;;  %p2072_p10 = scmp.lt.s32.totalorder %s2340_s28, %s3811_s0 }
  0x3d   : > { %p2067_p12 = scmp.ne.s32.totalorder %s2340_s28, %s2066_s18  ;;  %p2073_p2 = scmp.lt.s32.totalorder %s2071_s16, %s2066_s18 }
  0x3f   : > { %p2069_p5 = pnand %p2068_p13, %p2067_p12  ;;  %p2074_p1 = por %p2073_p2, %p2072_p10 }
  0x41   : > { %p2070_p7 = pneg %p2069_p5 }
  0x43   : > { %p2075_p0 = pnand %p2074_p1, %p2070_p7 }
  0x45   : > { %2078 = shalt.err (!%p2075_p0)
}
  0x46   : > { %s2079_s14 = scalar_lea.vmem %s360_s15, 128  ;;  %s2165_s26 = smov [#allocation3]  }
  0x47   : > { %p2080_p3 = scmp.ne.s32.totalorder %s360_s15, %s2079_s14  ;;  %s2084_s30 = sshll.u32 %s2165_s26, 4  ;;  %s2085_s30 = int_to_ptr.vmem [resolvable:$false] %s2084_s30 }
  0x48   : > { %s2086_s22 = scalar_lea.vmem %s2085_s30, 256  ;;  %p2087_p12 = scmp.lt.s32.totalorder %s360_s15, %s2085_s30 }
  0x49   : > { %p2082_p6 = pnand %p2080_p3, %p2068_p13  ;;  %p2088_p5 = scmp.lt.s32.totalorder %s2086_s22, %s2079_s14 }
  0x4b   : > { %p2083_p9 = pneg %p2082_p6  ;;  %p2089_p4 = por %p2088_p5, %p2087_p12 }
  0x4d   : > { %p2090_p8 = pnand %p2089_p4, %p2083_p9 }
  0x4f   : > { %2093 = shalt.err (!%p2090_p8)
}
  0x50   : > { %1974 = dma.hbm_to_vmem [thread:$0]  (!%p2342_p11), %s2340_s28, 128, %s360_s15, %s348_s9  }
  0x51   : > { %p3813_p7 = scmp.ne.s32.totalorder %s3803_s29, 0 }
  0x53   : > { %368 = sbr.rel (%p3813_p7) target bundleno = 1261 (0x4ed), region = 64 }
  0x58   : > { %s2363_s21 = sand.u32 1, %s2154_s20   ;;  %p3815_p4 = scmp.ne.s32.totalorder %s3799_s24, 0 }
  0x59   : > { %3814 = sst [smem:[#allocation21_spill]] %s2363_s21  ;;  %s3655_s18 = sshll.u32 %s2363_s21, 3 }
  0x5a   : > { %s371_s30 = scalar_lea.sflag [#allocation4], %s2363_s21  ;;  %s374_s22 = scalar_lea.vmem [#allocation3], %s3655_s18 }
  0x5b   : > { %2137 = dma.done.wait (%p3815_p4), %s371_s30, 128  }
  0x5c   : > { %2139 = vsyncadd (%p3815_p4), %s371_s30, 4294967168  ;;  %p3816_p6 = scmp.eq.s32.totalorder %s2265_s10, 0 }
  0x5e   : > { %2141 = dma.done.wait (%p3816_p6), [#allocation6], 16   ;;  %p3817_p8 = pmov %p3816_p6 }
  0x60   : > { %2143 = vsyncadd (%p3817_p8), [#allocation6], 4294967280 }
  0x61   : > { %383 = sfence }
  0x62   : > { %v2377_v0 = vld [vmem:[%s374_s22] sm:$0xff]  ;;  %vm422_vm0 = vcmask 1043456   ;;  %v2166_v8 = vmov 0.0   ;;  %s3818_s1 = sld [smem:[#allocation121_spill]]  ;;  %vm2167_vm1 = vmmov 0   ;;  %v438_v10 = vlaneseq  ;;  %s3658_s29 = smov 3  }
  0x63   : > { %v2381_v1 = vcombine.high %v2377_v0, %v2377_v0  ;;  %v423_v2 = vsel %vm422_vm0, %v2377_v0, -inf  ;;  %v428_v4 = vsel %vm422_vm0, %v2377_v0, 0.0  ;;  %1939 = vmatprep.subr.mxu0 %v2166_v8  ;;  %1944 = vmatprep.subr.mxu1 %v2166_v8  ;;  %vm444_vm2 = vcmask 31744   ;;  %s3819_s5 = sld [smem:[#allocation125_spill]]  ;;  %s3662_s28 = smov 126  }
  0x64   : > { %1941 = vmatprep.mubr.msk.f32.mxu0 %vm2167_vm1, %v2166_v8  ;;  %1946 = vmatprep.mubr.msk.f32.mxu1 %vm2167_vm1, %v2166_v8  ;;  %v2397_v11 = vand.u32 127, %v438_v10  ;;  %v441_v12 = vshrl.u32 %v438_v10, 7  ;;  %s3820_s3 = sld [smem:[#allocation123_spill]]  ;;  %vm527_vm3 = vcmask 1041408   ;;  %vm523_vm4 = vcmask 15360   ;;  %s3657_s15 = smov 2  }
  0x65   : > { %v424_v3 = vsel %vm422_vm0, %v2381_v1, -inf  ;;  %v429_v5 = vsel %vm422_vm0, %v2381_v1, 0.0  ;;  %s3821_s2 = sld [smem:[#allocation122_spill]]  ;;  %s3659_s17 = smov 125   ;;  %vm852_vm5 = vcmask 23552   ;;  %vm889_vm10 = vcmask 7168  }
  0x66   : > { %v425_v6 = vmax.f32 %v423_v2, %v424_v3  ;;  %v430_v7 = vadd.f32 %v429_v5, %v428_v4  ;;  %v442_v13 = vsub.s32 %v2397_v11, %v441_v12  ;;  %s3822_s7 = sld [smem:[#allocation127_spill]]  ;;  %v2426_v52 = vsub.s32 0, %v441_v12  ;;  %s3656_s12 = smov 1  }
  0x67   : > { %s3823_s6 = sld [smem:[#allocation126_spill]]  ;;  %s3661_s14 = smov 127   ;;  %vm908_vm13 = vcmask 1039360  }
  0x68   : > { %426 = vmax.xlane.f32.xlu0 %v425_v6  ;;  %v435_v9 = vld [vmem:[%s3818_s1] sm:$0xf]  ;;  %s3824_s4 = sld [smem:[#allocation124_spill]]  ;;  %3826 = vst [vmem:[#allocation22_spill] sm:$0xff] %v2426_v52  ;;  %s3832_s1 = smov 125  }
  0x69   : > { %1940 = vmatpush3.msk.msra.mxu0 %vm422_vm0, %v435_v9  ;;  %v607_v16 = vld [vmem:[%s3819_s5] sm:$0xf]  ;;  %s3825_s8 = sld [smem:[#allocation128_spill]]  ;;  %s3837_s5 = smov 3  }
  0x6a   : > { %1949 = vmatprep.subr.mxu0 %v2166_v8  ;;  %v521_v20 = vld [vmem:[%s3820_s3] sm:$0x3]  ;;  %s2469_s13 = sld [smem:[#allocation7 + $0x3]]  ;;  %s3842_s25 = smov 2  }
  0x6b   : > { %1945 = vmatpush3.msk.msra.mxu1 %vm527_vm3, %v521_v20  ;;  %v436_v21 = vld [vmem:[%s3821_s2] sm:$0x1]  ;;  %s2471_s16 = sld [smem:[#allocation7 + $0xa]] }
  0x6c   : > { %431 = vadd.xlane.f32.xlu0 %v430_v7  ;;  %1954 = vmatprep.subr.mxu1 %v2166_v8  ;;  %v690_v26 = vld [vmem:[%s3822_s7] sm:$0x3]  ;;  %s2473_s27 = sld [smem:[#allocation7 + $0x11]] }
  0x6d   : > { %v608_v27 = vld [vmem:[%s3823_s6] sm:$0x1]  ;;  %s2479_s26 = sld [smem:[#allocation7 + $0x18]] }
  0x6e   : > { %v522_v32 = vld [vmem:[%s3824_s4] sm:$0x1]  ;;  %s2481_s30 = sld [smem:[#allocation7 + $0x1f]] }
  0x6f   : > { %v691_v37 = vld [vmem:[%s3825_s8] sm:$0x1]  ;;  %s2483_s22 = sld [smem:[#allocation7 + $0x26]] }
  0x70   : > { %s2485_s9 = sld [smem:[#allocation7 + $0x2d]] }
  0x71   : > { %s2491_s24 = sld [smem:[#allocation7 + $0x34]] }
  0x72   : > { %s2493_s18 = sld [smem:[#allocation7 + $0x3b]] }
  0x73   : > { %s2509_s0 = sld [smem:[#allocation7]] }
  0x74   : > { %s2515_s2 = sld [smem:[#allocation7 + $0x7]] }
  0x75   : > { %s2517_s3 = sld [smem:[#allocation7 + $0xe]] }
  0x76   : > { %s2523_s4 = sld [smem:[#allocation7 + $0x1c]] }
  0x77   : > { %s2527_s6 = sld [smem:[#allocation7 + $0x23]] }
  0x78   : > { %s2529_s7 = sld [smem:[#allocation7 + $0x2a]] }
  0x79   : > { %3831 = sst [smem:[#allocation27_spill]] %s2509_s0 }
  0x7a   : > { %3833 = sst [smem:[#allocation28_spill]] %s2515_s2 }
  0x7b   : > { %3834 = sst [smem:[#allocation29_spill]] %s2517_s3 }
  0x7c   : > { %3836 = sst [smem:[#allocation31_spill]] %s2523_s4 }
  0x7d   : > { %3838 = sst [smem:[#allocation32_spill]] %s2527_s6 }
  0x7e   : > { %3839 = sst [smem:[#allocation33_spill]] %s2529_s7 }
  0x7f   : > { %s2531_s8 = sld [smem:[#allocation7 + $0x1]] }
  0x80   : > { %s2533_s20 = sld [smem:[#allocation7 + $0x8]] }
  0x81   : > { %s2537_s19 = sld [smem:[#allocation7 + $0xf]] }
  0x82   : > { %s2539_s11 = sld [smem:[#allocation7 + $0x16]] }
  0x83   : > { %s2541_s23 = sld [smem:[#allocation7 + $0x1d]] }
  0x84   : > { %s2543_s21 = sld [smem:[#allocation7 + $0x24]] }
  0x85   : > { %3840 = sst [smem:[#allocation34_spill]] %s2531_s8 }
  0x86   : > { %3841 = sst [smem:[#allocation35_spill]] %s2533_s20 }
  0x87   : > { %3843 = sst [smem:[#allocation36_spill]] %s2537_s19 }
  0x88   : > { %3844 = sst [smem:[#allocation37_spill]] %s2539_s11 }
  0x89   : > { %3845 = sst [smem:[#allocation38_spill]] %s2541_s23 }
  0x8a   : > { %3846 = sst [smem:[#allocation39_spill]] %s2543_s21 }
  0x8b   : > { %s2547_s10 = sld [smem:[#allocation7 + $0x2b]] }
  0x8c   : > { %s2549_s7 = sld [smem:[#allocation7 + $0x31]] }
  0x8d   : > { %s2551_s8 = sld [smem:[#allocation7 + $0x38]] }
  0x8e   : > { %s2553_s20 = sld [smem:[#allocation7 + $0x3f]] }
  0x8f   : > { %s2557_s19 = sld [smem:[#allocation7 + $0x46]] }
  0x90   : > { %s2559_s11 = sld [smem:[#allocation7 + $0x4d]] }
  0x91   : > { %3848 = sst [smem:[#allocation40_spill]] %s2547_s10 }
  0x92   : > { %3849 = sst [smem:[#allocation41_spill]] %s2549_s7 }
  0x93   : > { %3850 = sst [smem:[#allocation42_spill]] %s2551_s8 }
  0x94   : > { %3851 = sst [smem:[#allocation43_spill]] %s2553_s20 }
  0x95   : > { %3853 = sst [smem:[#allocation44_spill]] %s2557_s19 }
  0x96   : > { %3854 = sst [smem:[#allocation45_spill]] %s2559_s11 }
  0x97   : > { %s2561_s23 = sld [smem:[#allocation7 + $0x54]] }
  0x98   : > { %s2563_s21 = sld [smem:[#allocation7 + $0x5b]] }
  0x99   : > { %s2567_s10 = sld [smem:[#allocation7 + $0x2]] }
  0x9a   : > { %s2569_s7 = sld [smem:[#allocation7 + $0x9]] }
  0x9b   : > { %s2571_s8 = sld [smem:[#allocation7 + $0x10]] }
  0x9c   : > { %s2573_s20 = sld [smem:[#allocation7 + $0x17]] }
  0x9d   : > { %3855 = sst [smem:[#allocation46_spill]] %s2561_s23 }
  0x9e   : > { %3856 = sst [smem:[#allocation47_spill]] %s2563_s21 }
  0x9f   : > { %3858 = sst [smem:[#allocation48_spill]] %s2567_s10 }
  0xa0   : > { %3859 = sst [smem:[#allocation49_spill]] %s2569_s7 }
  0xa1   : > { %3860 = sst [smem:[#allocation50_spill]] %s2571_s8 }
  0xa2   : > { %3861 = sst [smem:[#allocation51_spill]] %s2573_s20 }
  0xa3   : > { %s2579_s11 = sld [smem:[#allocation7 + $0x25]] }
  0xa4   : > { %s2581_s23 = sld [smem:[#allocation7 + $0x2c]] }
  0xa5   : > { %s2583_s21 = sld [smem:[#allocation7 + $0x32]] }
  0xa6   : > { %s2587_s10 = sld [smem:[#allocation7 + $0x40]] }
  0xa7   : > { %s2589_s7 = sld [smem:[#allocation7 + $0x47]] }
  0xa8   : > { %s2591_s8 = sld [smem:[#allocation7 + $0x4e]] }
  0xa9   : > { %3863 = sst [smem:[#allocation53_spill]] %s2579_s11 }
  0xaa   : > { %3864 = sst [smem:[#allocation54_spill]] %s2581_s23 }
  0xab   : > { %3865 = sst [smem:[#allocation55_spill]] %s2583_s21 }
  0xac   : > { %3867 = sst [smem:[#allocation57_spill]] %s2587_s10 }
  0xad   : > { %3868 = sst [smem:[#allocation58_spill]] %s2589_s7 }
  0xae   : > { %3869 = sst [smem:[#allocation59_spill]] %s2591_s8 }
  0xaf   : > { %s2593_s20 = sld [smem:[#allocation7 + $0x55]] }
  0xb0   : > { %s2595_s19 = sld [smem:[#allocation7 + $0x5c]] }
  0xb1   : > { %s2601_s11 = sld [smem:[#allocation7 + $0xb]] }
  0xb2   : > { %s2603_s23 = sld [smem:[#allocation7 + $0x12]] }
  0xb3   : > { %s2605_s21 = sld [smem:[#allocation7 + $0x19]] }
  0xb4   : > { %s2609_s10 = sld [smem:[#allocation7 + $0x27]] }
  0xb5   : > { %3870 = sst [smem:[#allocation60_spill]] %s2593_s20 }
  0xb6   : > { %3871 = sst [smem:[#allocation61_spill]] %s2595_s19 }
  0xb7   : > { %3874 = sst [smem:[#allocation64_spill]] %s2601_s11 }
  0xb8   : > { %s2611_s8 = sld [smem:[#allocation7 + $0x2e]] }
  0xb9   : > { %3875 = sst [smem:[#allocation65_spill]] %s2605_s21 }
  0xba   : > { %3877 = sst [smem:[#allocation67_spill]] %s2609_s10 }
  0xbb   : > { %s2613_s20 = sld [smem:[#allocation7 + $0x33]] }
  0xbc   : > { %s2615_s19 = sld [smem:[#allocation7 + $0x5]] }
  0xbd   : > { %s2619_s11 = sld [smem:[#allocation7 + $0x13]] }
  0xbe   : > { %3878 = sst [smem:[#allocation68_spill]] %s2611_s8 }
  0xbf   : > { %s2621_s21 = sld [smem:[#allocation7 + $0x1a]] }
  0xc0   : > { %s2625_s10 = sld [smem:[#allocation7 + $0x28]] }
  0xc1   : > { %3879 = sst [smem:[#allocation69_spill]] %s2613_s20 }
  0xc2   : > { %3880 = sst [smem:[#allocation70_spill]] %s2615_s19 }
  0xc3   : > { %3882 = sst [smem:[#allocation72_spill]] %s2619_s11 }
  0xc4   : > { %s2628_s20 = sld [smem:[#allocation7 + $0x2f]] }
  0xc5   : > { %3883 = sst [smem:[#allocation73_spill]] %s2621_s21 }
  0xc6   : > { %3885 = sst [smem:[#allocation75_spill]] %s2625_s10 }
  0xc7   : > { %s2630_s19 = sld [smem:[#allocation7 + $0x6]] }
  0xc8   : > { %s2634_s11 = sld [smem:[#allocation7 + $0x14]] }
  0xc9   : > { %s2642_s10 = sld [smem:[#allocation7 + $0x1b]] }
  0xca   : > { %3886 = sst [smem:[#allocation76_spill]] %s2628_s20 }
  0xcb   : > { %s2862_s7 = sld [smem:[#allocation7 + $0x59]] }
  0xcc   : > { %s2876_s6 = sld [smem:[#allocation7 + $0x5f]] }
  0xcd   : > { %3887 = sst [smem:[#allocation77_spill]] %s2630_s19 }
  0xce   : > { %3889 = sst [smem:[#allocation79_spill]] %s2634_s11 }
  0xcf   : > { %3890 = sst [smem:[#allocation80_spill]] %s2642_s10 }
  0xd0   : > { %s2652_s11 = sld [smem:[#allocation7 + $0x29]] }
  0xd1   : > { %3961 = sst [smem:[#allocation111_spill]] %s2862_s7 }
  0xd2   : > { %s2899_s8 = sld [smem:[#allocation7 + $0x4a]] }
  0xd3   : > { %s3999_s20 = sld [smem:[#allocation33_spill]] }
  0xd4   : > { %s4017_s10 = sld [smem:[#allocation48_spill]] }
  0xd5   : > { %s4020_s21 = sld [smem:[#allocation51_spill]] }
  0xd6   : > { %3892 = sst [smem:[#allocation82_spill]] %s2652_s11 }
  0xd7   : > { %s2684_s11 = sld [smem:[#allocation7 + $0x35]] }
  0xd8   : > { %s4034_s7 = sld [smem:[#allocation47_spill]] }
  0xf1   : > { %v427_v14 = vpop.xlane.xlu0 %426 }
  0xf2   : > { %v443_v15 = vrot.slane %v427_v14, %v442_v13 }
  0xf4   : > { %1942 = vmatmul.mubr.msk.f32.vlgmr.msra.gmra.mxu0 %vm444_vm2, %v443_v15 }
  0xf5   : > { %v432_v17 = vpop.xlane.xlu0 %431  ;;  %1950 = vmatpush3.msk.msra.mxu0 %vm422_vm0, %v607_v16  ;;  %1951 = vmatprep.mubr.msk.f32.mxu0 %vm2167_vm1, %v2166_v8 }
  0xf6   : > { %v434_v18 = vmul.f32 0.00390625, %v432_v17 }
  0xf8   : > { %v613_v19 = vrot.slane %v434_v18, %v442_v13 }
  0xfa   : > { %1952 = vmatmul.mubr.msk.f32.vlgmr.msra.gmra.mxu0 %vm444_vm2, %v613_v19 }
 0x1b4   : > { %v516_v22 = vpop.f32.mrf.mxu0 }
 0x1b5   : > { %v517_v23 = vadd.f32 %v516_v22, %v436_v21 }
 0x1b6   : > { %v1943_v24 = vpop.f32.mrf.mxu0 }
 0x1b7   : > { %v520_v25 = vmax.f32 %v517_v23, 0.0 }
 0x1b9   : > { %1947 = vmatmul.mubr.msk.f32.vlgmr.msra.gmra.mxu1 %vm523_vm4, %v520_v25  ;;  %v821_v25 = vadd.s32 128, %v2397_v11 }
 0x1ba   : > { %v685_v28 = vpop.f32.mrf.mxu0  ;;  %1955 = vmatpush3.msk.msra.mxu1 %vm527_vm3, %v690_v26  ;;  %1956 = vmatprep.mubr.msk.f32.mxu1 %vm2167_vm1, %v2166_v8  ;;  %v2637_v26 = vand.u32 15, %v2397_v11  ;;  %v1601_v11 = vstv %s2485_s9  ;;  %s2726_s9 = sld [smem:[#allocation7 + $0x56]]  ;;  %vm946_vm1 = vcmask 1022976  }
 0x1bb   : > { %v686_v29 = vadd.f32 %v685_v28, %v608_v27  ;;  %v2639_v27 = vand.u32 15, %v821_v25  ;;  %v1042_v28 = vstv %s2469_s13  ;;  %s2656_s13 = sld [smem:[#allocation7 + $0x30]] }
 0x1bc   : > { %v1953_v30 = vpop.f32.mrf.mxu0 }
 0x1bd   : > { %v689_v31 = vmax.f32 %v686_v29, 0.0  ;;  %v1137_v29 = vstv %s2471_s16  ;;  %v1232_v30 = vstv %s2473_s27  ;;  %s2700_s16 = sld [smem:[#allocation7 + $0x36]] }
 0x1be   : > { %s2762_s27 = sld [smem:[#allocation7 + $0x3e]] }
 0x1bf   : > { %1957 = vmatmul.mubr.msk.f32.vlgmr.msra.gmra.mxu1 %vm523_vm4, %v689_v31  ;;  %v1327_v31 = vstv %s2479_s26  ;;  %s3997_s26 = sld [smem:[#allocation40_spill]] }
 0x1c0   : > { %3910 = sst [smem:[#allocation88_spill]] %s2726_s9 }
 0x1c1   : > { %3893 = sst [smem:[#allocation83_spill]] %s2656_s13 }
 0x1c2   : > { %s2676_s13 = sld [smem:[#allocation7 + $0x41]] }
 0x1c3   : > { %s2846_s9 = sld [smem:[#allocation7 + $0x53]] }
 0x1c4   : > { %3919 = sst [smem:[#allocation94_spill]] %s2762_s27 }
 0x1c5   : > { %s2780_s27 = sld [smem:[#allocation7 + $0x43]] }
 0x1c8   : > { %3903 = sst [smem:[#allocation85_spill]] %s2676_s13 }
 0x1c9   : > { %s3996_s13 = sld [smem:[#allocation39_spill]] }
 0x1cb   : > { %3929 = sst [smem:[#allocation100_spill]] %s2780_s27 }
 0x1cc   : > { %s3939_s27 = sld [smem:[#allocation55_spill]] }
 0x279   : > { %v597_v33 = vpop.f32.mrf.mxu1 }
 0x27a   : > { %v598_v34 = vadd.f32 %v597_v33, %v522_v32  ;;  %v1411_v32 = vstv %s2481_s30  ;;  %v1506_v33 = vstv %s2483_s22  ;;  %s3899_s22 = sld [smem:[#allocation37_spill]] }
 0x27b   : > { %v1948_v35 = vpop.f32.mrf.mxu1  ;;  %s3968_s30 = sld [smem:[#allocation83_spill]] }
 0x27c   : > { %v1818_v36 = vmul.f32 -1.442695, %v598_v34  ;;  %v1084_v34 = vstv %s2491_s24  ;;  %v1179_v35 = vstv %s2493_s18  ;;  %s2669_s18 = sld [smem:[#allocation7 + $0x3a]] }
 0x27d   : > { %s2774_s24 = sld [smem:[#allocation7 + $0x5d]] }
 0x27e   : > { %2031 = vpow2.f32 %v1818_v36 }
 0x27f   : > { %v764_v38 = vpop.f32.mrf.mxu1 }
 0x280   : > { %v765_v39 = vadd.f32 %v764_v38, %v691_v37 }
 0x281   : > { %v1958_v40 = vpop.f32.mrf.mxu1 }
 0x282   : > { %v1823_v41 = vmul.f32 -1.442695, %v765_v39  ;;  %v2663_v40 = vadd.s32 4294967293, %v2637_v26 }
 0x283   : > { %3924 = sst [smem:[#allocation98_spill]] %s2774_s24 }
 0x284   : > { %2033 = vpow2.f32 %v1823_v41  ;;  %v2666_v41 = vadd.s32 4294967293, %v2639_v27  ;;  %s2791_s24 = sld [smem:[#allocation7 + $0x44]]  ;;  %vm859_vm6 = vcmp.ge.s32.totalorder %v2663_v40, 0 }
 0x286   : > { %3898 = vst [vmem:[#allocation84_spill] sm:$0xff] %v2666_v41  ;;  %vm860_vm7 = vcmp.ge.s32.totalorder %v2666_v41, 0 }
 0x28a   : > { %3934 = sst [smem:[#allocation103_spill]] %s2791_s24 }
 0x28b   : > { %v2032_v42 = vpop.eup %2031  ;;  %s2830_s24 = sld [smem:[#allocation7 + $0x51]] }
 0x28c   : > { %v604_v43 = vadd.f32 1.0, %v2032_v42  ;;  %v1026_v42 = vstv %s2509_s0  ;;  %s2738_s0 = sld [smem:[#allocation7 + $0x3c]] }
 0x28d   : > { %s3980_s19 = sld [smem:[#allocation103_spill]] }
 0x28e   : > { %2035 = vrcp.f32 %v604_v43 }
 0x291   : > { %v2034_v44 = vpop.eup %2033  ;;  %3949 = sst [smem:[#allocation110_spill]] %s2830_s24 }
 0x292   : > { %v771_v45 = vadd.f32 1.0, %v2034_v44  ;;  %v1121_v44 = vstv %s2515_s2  ;;  %3912 = sst [smem:[#allocation89_spill]] %s2738_s0 }
 0x293   : > { %s2809_s0 = sld [smem:[#allocation7 + $0x45]] }
 0x294   : > { %2037 = vrcp.f32 %v771_v45  ;;  %v1216_v45 = vstv %s2517_s3  ;;  %s2692_s3 = sld [smem:[#allocation7 + $0x4f]] }
 0x295   : > { %s2840_s2 = sld [smem:[#allocation7 + $0x52]] }
 0x296   : > { %s2887_s24 = sld [smem:[#allocation7 + $0x60]] }
 0x299   : > { %3940 = sst [smem:[#allocation55_spill]] %s2809_s0 }
 0x29a   : > { %3906 = sst [smem:[#allocation87_spill]] %s2692_s3 }
 0x29b   : > { %v2036_v46 = vpop.eup %2035  ;;  %s2893_s3 = sld [smem:[#allocation7 + $0x61]] }
 0x29c   : > { %s3978_s0 = sld [smem:[#allocation100_spill]] }
 0x2a1   : > { %v2038_v47 = vpop.eup %2037  ;;  %3971 = sst [smem:[#allocation83_spill]] %s2893_s3 }
 0x2a2   : > { %v774_v48 = vadd.f32 %v2038_v47, %v2036_v46  ;;  %v1395_v47 = vstv %s2523_s4  ;;  %s2750_s4 = sld [smem:[#allocation7 + $0x3d]] }
 0x2a3   : > { %s4033_s3 = sld [smem:[#allocation46_spill]] }
 0x2a4   : > { %v1824_v49 = vmul.f32 -1.442695, %v774_v48 }
 0x2a6   : > { %2039 = vpow2.f32 %v1824_v49 }
 0x2a8   : > { %3915 = sst [smem:[#allocation91_spill]] %s2750_s4 }
 0x2a9   : > { %s3976_s4 = sld [smem:[#allocation91_spill]] }
 0x2b3   : > { %v2040_v50 = vpop.eup %2039 }
 0x2b4   : > { %v778_v51 = vadd.f32 1.0, %v2040_v50  ;;  %v2681_v50 = vadd.s32 4294967294, %v2637_v26 }
 0x2b6   : > { %2041 = vrcp.f32 %v778_v51  ;;  %vm877_vm8 = vcmp.ge.s32.totalorder %v2681_v50, 0 }
 0x2c3   : > { %v2042_v53 = vpop.eup %2041 }
 0x2c4   : > { %v784_v54 = vrot.slane %v2042_v53, %v2426_v52 }
 0x2c6   : > { %786 = vbcast.lane.b32.xlu1 %v784_v54, 256 }
 0x338   : > { %v787_v55 = vpop.permute.xlu1 %786 }
 0x339   : > { %v2430_v56 = vmul.f32 %v787_v55, %v2377_v0  ;;  %v2433_v57 = vmul.f32 %v787_v55, %v2381_v1  ;;  %v3774_v55 = vstv %s3899_s22  ;;  %s3989_s22 = sld [smem:[#allocation37_spill]] }
 0x33b   : > { %3827 = vst [vmem:[#allocation23_spill] sm:$0xff] %v2430_v56  ;;  %3828 = vst [vmem:[#allocation24_spill] sm:$0xff] %v2433_v57  ;;  %v790_v58 = vsel %vm422_vm0, %v2430_v56, -inf  ;;  %v797_v59 = vsel %vm422_vm0, %v2433_v57, -inf  ;;  %v804_v60 = vsel %vm422_vm0, %v2430_v56, 0.0  ;;  %v811_v16 = vsel %vm422_vm0, %v2433_v57, 0.0 }
 0x33c   : > { %v791_v61 = vrot.slane %v790_v58, 4  ;;  %v798_v62 = vrot.slane %v797_v59, 4  ;;  %v805_v63 = vrot.slane %v804_v60, 4  ;;  %v812_v17 = vrot.slane %v811_v16, 4 }
 0x33d   : > { %vm927_vm0 = vcmask 1031168  }
 0x33e   : > { %v792_v2 = vmax.f32 %v790_v58, %v791_v61  ;;  %v799_v3 = vmax.f32 %v797_v59, %v798_v62  ;;  %v806_v4 = vadd.f32 %v805_v63, %v804_v60  ;;  %v813_v19 = vadd.f32 %v812_v17, %v811_v16 }
 0x33f   : > { %v2690_v58 = vadd.s32 4294967294, %v2639_v27  ;;  %v2698_v62 = vadd.s32 4294967295, %v2637_v26 }
 0x340   : > { %v793_v0 = vrot.slane %v792_v2, 2  ;;  %v800_v5 = vrot.slane %v799_v3, 2  ;;  %v807_v7 = vrot.slane %v806_v4, 2  ;;  %v814_v20 = vrot.slane %v813_v19, 2 }
 0x341   : > { %3905 = vst [vmem:[#allocation86_spill] sm:$0xff] %v2690_v58  ;;  %vm878_vm9 = vcmp.ge.s32.totalorder %v2690_v58, 0  ;;  %vm896_vm11 = vcmp.ge.s32.totalorder %v2698_v62, 0 }
 0x342   : > { %v794_v6 = vmax.f32 %v792_v2, %v793_v0  ;;  %v801_v1 = vmax.f32 %v799_v3, %v800_v5  ;;  %v808_v13 = vadd.f32 %v807_v7, %v806_v4  ;;  %v815_v21 = vadd.f32 %v814_v20, %v813_v19 }
 0x343   : > { %v2754_v19 = vadd.s32 4294967295, %v2639_v27  ;;  %v2868_v7 = vadd.s32 2, %v2639_v27  ;;  %v2885_v0 = vadd.s32 3, %v2639_v27 }
 0x344   : > { %v795_v8 = vrot.slane %v794_v6, 1  ;;  %v802_v9 = vrot.slane %v801_v1, 1  ;;  %v809_v14 = vrot.slane %v808_v13, 1  ;;  %v816_v22 = vrot.slane %v815_v21, 1 }
 0x345   : > { %3969 = vst [vmem:[#allocation113_spill] sm:$0xff] %v2885_v0  ;;  %vm897_vm12 = vcmp.ge.s32.totalorder %v2754_v19, 0  ;;  %vm937_vm3 = vcmp.lt.s32.totalorder %v2868_v7, 16 }
 0x346   : > { %v2441_v10 = vmax.f32 %v794_v6, %v795_v8  ;;  %v2443_v12 = vmax.f32 %v801_v1, %v802_v9  ;;  %v810_v15 = vadd.f32 %v809_v14, %v808_v13  ;;  %v817_v23 = vadd.f32 %v816_v22, %v815_v21 }
 0x347   : > { %v2882_v14 = vadd.s32 3, %v2637_v26 }
 0x348   : > { %850 = vrot.lane.b32.xlu0 %v2443_v12, %s3658_s29  ;;  %848 = vrot.lane.b32.xlu1 %v2441_v10, %s3658_s29  ;;  %v2459_v18 = vmul.f32 0.25, %v810_v15  ;;  %v2519_v24 = vmul.f32 0.25, %v817_v23  ;;  %v2703_v63 = vmul.f32 %v1042_v28, %v2443_v12  ;;  %v2706_v2 = vmul.f32 %v1137_v29, %v2443_v12 }
 0x349   : > { %v2709_v3 = vmul.f32 %v1232_v30, %v2443_v12  ;;  %v2712_v4 = vmul.f32 %v1327_v31, %v2443_v12  ;;  %v2718_v5 = vmul.f32 %v1411_v32, %v2443_v12  ;;  %v2721_v6 = vmul.f32 %v1506_v33, %v2443_v12 }
 0x34a   : > { %3829 = vst [vmem:[#allocation25_spill] sm:$0xff] %v2459_v18  ;;  %v2724_v1 = vmul.f32 %v1601_v11, %v2443_v12  ;;  %v2730_v8 = vmul.f32 %v1042_v28, %v2441_v10  ;;  %v2733_v9 = vmul.f32 %v1137_v29, %v2441_v10  ;;  %v2736_v13 = vmul.f32 %v1232_v30, %v2441_v10 }
 0x34b   : > { %v2745_v15 = vmul.f32 %v1411_v32, %v2441_v10  ;;  %v2748_v16 = vmul.f32 %v1506_v33, %v2441_v10  ;;  %v2757_v20 = vmul.f32 %v1601_v11, %v2441_v10  ;;  %v2760_v21 = vmul.f32 %v1084_v34, %v2519_v24 }
 0x34c   : > { %923 = vrot.lane.b32.xlu0 %v2441_v10, %s3662_s28  ;;  %867 = vrot.lane.b32.xlu1 %v2441_v10, %s3657_s15  ;;  %v2766_v23 = vmul.f32 %v1084_v34, %v2459_v18  ;;  %v2769_v25 = vmul.f32 %v1179_v35, %v2519_v24 }
 0x34d   : > { %3914 = vst [vmem:[#allocation90_spill] sm:$0xff] %v2748_v16  ;;  %3917 = vst [vmem:[#allocation92_spill] sm:$0xff] %v2757_v20 }
 0x34e   : > { %3918 = vst [vmem:[#allocation93_spill] sm:$0xff] %v2760_v21  ;;  %3921 = vst [vmem:[#allocation95_spill] sm:$0xff] %v2766_v23 }
 0x34f   : > { %3922 = vst [vmem:[#allocation96_spill] sm:$0xff] %v2769_v25  ;;  %v4010_v25 = vstv %s3999_s20  ;;  %s4031_s20 = sld [smem:[#allocation45_spill]] }
 0x350   : > { %942 = vrot.lane.b32.xlu0 %v2441_v10, %s3659_s17  ;;  %869 = vrot.lane.b32.xlu1 %v2443_v12, %s3657_s15  ;;  %s2505_s17 = sld [smem:[#allocation7 + $0x5e]] }
 0x354   : > { %963 = vrot.lane.b32.xlu0 %v2459_v18, %s3658_s29  ;;  %885 = vrot.lane.b32.xlu1 %v2441_v10, %s3656_s12  ;;  %s2503_s29 = sld [smem:[#allocation7 + $0x57]] }
 0x356   : > { %v1643_v39 = vstv %s2505_s17 }
 0x358   : > { %973 = vrot.lane.b32.xlu0 %v2459_v18, %s3657_s15  ;;  %887 = vrot.lane.b32.xlu1 %v2443_v12, %s3656_s12  ;;  %s2497_s15 = sld [smem:[#allocation7 + $0x50]] }
 0x35a   : > { %v1548_v38 = vstv %s2503_s29  ;;  %s3965_s29 = sld [smem:[#allocation79_spill]] }
 0x35b   : > { %v2801_v11 = vmul.f32 %v1548_v38, %v2519_v24  ;;  %v2806_v34 = vmul.f32 %v1548_v38, %v2459_v18  ;;  %3966 = sst [smem:[#allocation79_spill]] %s2876_s6 }
 0x35c   : > { %983 = vrot.lane.b32.xlu0 %v2459_v18, %s3656_s12  ;;  %904 = vrot.lane.b32.xlu1 %v2441_v10, %s3661_s14  ;;  %s2495_s12 = sld [smem:[#allocation7 + $0x42]] }
 0x35d   : > { %3937 = vst [vmem:[#allocation105_spill] sm:$0xff] %v2801_v11  ;;  %3938 = vst [vmem:[#allocation106_spill] sm:$0xff] %v2806_v34  ;;  %s3994_s6 = sld [smem:[#allocation36_spill]] }
 0x35e   : > { %v1453_v37 = vstv %s2497_s15  ;;  %s3973_s15 = sld [smem:[#allocation89_spill]] }
 0x35f   : > { %v2796_v33 = vmul.f32 %v1453_v37, %v2459_v18  ;;  %3975 = sst [smem:[#allocation89_spill]] %s2899_s8 }
 0x360   : > { %993 = vrot.lane.b32.xlu0 %v2459_v18, %s3661_s14  ;;  %906 = vrot.lane.b32.xlu1 %v2443_v12, %s3661_s14  ;;  %s2507_s14 = sld [smem:[#allocation7 + $0x49]] }
 0x361   : > { %3936 = vst [vmem:[#allocation104_spill] sm:$0xff] %v2796_v33  ;;  %s3995_s8 = sld [smem:[#allocation38_spill]] }
 0x362   : > { %v1274_v36 = vstv %s2495_s12  ;;  %s2714_s12 = sld [smem:[#allocation7 + $0x37]] }
 0x363   : > { %v2778_v29 = vmul.f32 %v1274_v36, %v2519_v24  ;;  %v2783_v30 = vmul.f32 %v1274_v36, %v2459_v18  ;;  %v2814_v36 = vmul.f32 %v1643_v39, %v2519_v24  ;;  %v4004_v11 = vstv %s3994_s6 }
 0x364   : > { %1003 = vrot.lane.b32.xlu0 %v2459_v18, %s3662_s28  ;;  %925 = vrot.lane.b32.xlu1 %v2443_v12, %s3662_s28  ;;  %s2521_s28 = sld [smem:[#allocation7 + $0x15]] }
 0x365   : > { %3927 = vst [vmem:[#allocation99_spill] sm:$0xff] %v2778_v29  ;;  %3931 = vst [vmem:[#allocation101_spill] sm:$0xff] %v2783_v30  ;;  %v4007_v30 = vstv %s3997_s26 }
 0x366   : > { %3830 = sst [smem:[#allocation26_spill]] %s2507_s14  ;;  %v3735_v43 = vstv %s2507_s14  ;;  %3942 = vst [vmem:[#allocation107_spill] sm:$0xff] %v2814_v36 }
 0x367   : > { %v2824_v17 = vmul.f32 %v3735_v43, %v2519_v24  ;;  %s3951_s14 = sld [smem:[#allocation64_spill]]  ;;  %v2860_v43 = vadd.s32 2, %v2637_v26  ;;  %v4013_v58 = vstv %s3995_s8 }
 0x368   : > { %1013 = vrot.lane.b32.xlu0 %v2459_v18, %s3832_s1  ;;  %944 = vrot.lane.b32.xlu1 %v2443_v12, %s3832_s1  ;;  %v2742_v12 = vmul.f32 %v1327_v31, %v2441_v10  ;;  %v2772_v10 = vmul.f32 %v1179_v35, %v2459_v18  ;;  %v2788_v31 = vmul.f32 %v1453_v37, %v2519_v24  ;;  %3956 = sst [smem:[#allocation64_spill]] %s2846_s9 }
 0x369   : > { %v2819_v37 = vmul.f32 %v1643_v39, %v2459_v18  ;;  %3945 = vst [vmem:[#allocation109_spill] sm:$0xff] %v2824_v17  ;;  %v2835_v39 = vadd.s32 1, %v2637_v26  ;;  %s3991_s9 = sld [smem:[#allocation32_spill]]  ;;  %vm936_vm2 = vcmp.lt.s32.totalorder %v2860_v43, 16 }
 0x36a   : > { %3835 = sst [smem:[#allocation30_spill]] %s2521_s28  ;;  %v1311_v46 = vstv %s2521_s28  ;;  %3923 = vst [vmem:[#allocation97_spill] sm:$0xff] %v2772_v10  ;;  %3932 = vst [vmem:[#allocation102_spill] sm:$0xff] %v2788_v31  ;;  %v4005_v31 = vstv %s3995_s8 }
 0x36b   : > { %3944 = vst [vmem:[#allocation108_spill] sm:$0xff] %v2819_v37  ;;  %s3967_s28 = sld [smem:[#allocation82_spill]]  ;;  %vm917_vm14 = vcmp.lt.s32.totalorder %v2835_v39, 16 }
 0x36c   : > { %965 = vrot.lane.b32.xlu1 %v2519_v24, %s3837_s5  ;;  %s3847_s5 = smov 1   ;;  %3970 = sst [smem:[#allocation82_spill]] %s2887_s24 }
 0x36d   : > { %s3993_s24 = sld [smem:[#allocation35_spill]] }
 0x36e   : > { %s4019_s8 = sld [smem:[#allocation50_spill]] }
 0x36f   : > { %v4000_v57 = vstv %s3991_s9  ;;  %s4023_s9 = sld [smem:[#allocation54_spill]] }
 0x370   : > { %975 = vrot.lane.b32.xlu1 %v2519_v24, %s3842_s25  ;;  %s3852_s25 = smov 127   ;;  %v4001_v18 = vmov %v4000_v57 }
 0x373   : > { %v4003_v34 = vstv %s3993_s24  ;;  %v4011_v23 = vstv %s3993_s24  ;;  %s4024_s24 = sld [smem:[#allocation41_spill]] }
 0x374   : > { %985 = vrot.lane.b32.xlu1 %v2519_v24, %s3847_s5  ;;  %s3857_s5 = smov 126  }
 0x378   : > { %995 = vrot.lane.b32.xlu1 %v2519_v24, %s3852_s25  ;;  %s2577_s25 = sld [smem:[#allocation7 + $0x1e]] }
 0x37c   : > { %1005 = vrot.lane.b32.xlu1 %v2519_v24, %s3857_s5  ;;  %s2585_s5 = sld [smem:[#allocation7 + $0x39]] }
 0x37e   : > { %3862 = sst [smem:[#allocation52_spill]] %s2577_s25 }
 0x37f   : > { %s2599_s25 = sld [smem:[#allocation7 + $0x4]] }
 0x380   : > { %1015 = vrot.lane.b32.xlu1 %v2519_v24, %s3832_s1  ;;  %s2597_s1 = sld [smem:[#allocation7 + $0x48]]  ;;  %v2838_v24 = vadd.s32 1, %v2639_v27 }
 0x382   : > { %3866 = sst [smem:[#allocation56_spill]] %s2585_s5  ;;  %vm918_vm15 = vcmp.lt.s32.totalorder %v2838_v24, 16 }
 0x383   : > { %s2607_s5 = sld [smem:[#allocation7 + $0x20]] }
 0x385   : > { %3873 = sst [smem:[#allocation63_spill]] %s2599_s25 }
 0x386   : > { %3872 = sst [smem:[#allocation62_spill]] %s2597_s1 }
 0x387   : > { %s2617_s25 = sld [smem:[#allocation7 + $0xc]] }
 0x388   : > { %s3950_s17 = sld [smem:[#allocation63_spill]] }
 0x389   : > { %3876 = sst [smem:[#allocation66_spill]] %s2607_s5 }
 0x38a   : > { %s2623_s5 = sld [smem:[#allocation7 + $0x21]] }
 0x38b   : > { %3952 = sst [smem:[#allocation63_spill]] %s2840_s2 }
 0x38c   : > { %s2853_s2 = sld [smem:[#allocation7 + $0x58]] }
 0x38d   : > { %3881 = sst [smem:[#allocation71_spill]] %s2617_s25 }
 0x38e   : > { %s2632_s25 = sld [smem:[#allocation7 + $0xd]] }
 0x38f   : > { %s2870_s1 = sld [smem:[#allocation7 + $0x5a]] }
 0x390   : > { %3884 = sst [smem:[#allocation74_spill]] %s2623_s5 }
 0x391   : > { %s3977_s5 = sld [smem:[#allocation94_spill]] }
 0x394   : > { %3888 = sst [smem:[#allocation78_spill]] %s2632_s25 }
 0x395   : > { %s2648_s25 = sld [smem:[#allocation7 + $0x22]] }
 0x396   : > { %3963 = sst [smem:[#allocation112_spill]] %s2870_s1 }
 0x397   : > { %s3992_s1 = sld [smem:[#allocation34_spill]] }
 0x39b   : > { %3891 = sst [smem:[#allocation81_spill]] %s2648_s25 }
 0x39c   : > { %s3983_s25 = sld [smem:[#allocation63_spill]] }
 0x39d   : > { %v4002_v17 = vstv %s3992_s1  ;;  %s4021_s1 = sld [smem:[#allocation52_spill]] }
 0x39e   : > { %v4008_v29 = vmov %v4002_v17 }
 0x3ba   : > { %v851_v35 = vpop.permute.xlu0 %850  ;;  %v849_v60 = vpop.permute.xlu1 %848 }
 0x3bb   : > { %v853_v27 = vsel %vm852_vm5, %v849_v60, %v851_v35  ;;  %v856_v22 = vsel %vm852_vm5, 0.0, %v849_v60 }
 0x3bc   : > { %v865_v32 = vsel %vm859_vm6, %v856_v22, 0.0  ;;  %v866_v49 = vsel %vm860_vm7, %v853_v27, 0.0 }
 0x3bd   : > { %v1027_v26 = vmul.f32 %v1026_v42, %v865_v32  ;;  %v1028_v61 = vmul.f32 %v1026_v42, %v866_v49  ;;  %v1122_v22 = vmul.f32 %v1121_v44, %v865_v32  ;;  %v1123_v35 = vmul.f32 %v1121_v44, %v866_v49 }
 0x3be   : > { %v2925_v59 = vpop.permute.xlu0 %923  ;;  %v868_v54 = vpop.permute.xlu1 %867  ;;  %v1217_v38 = vmul.f32 %v1216_v45, %v865_v32  ;;  %v1218_v53 = vmul.f32 %v1216_v45, %v866_v49  ;;  %v1312_v42 = vmul.f32 %v1311_v46, %v865_v32  ;;  %v1396_v48 = vmul.f32 %v1395_v47, %v865_v32 }
 0x3bf   : > { %3986 = vst [vmem:[#allocation114_spill] sm:$0xff] %v2925_v59  ;;  %v874_v27 = vsel %vm523_vm4, 0.0, %v868_v54  ;;  %v1397_v56 = vmul.f32 %v1395_v47, %v866_v49  ;;  %v1491_v52 = vmul.f32 %v4000_v57, %v865_v32  ;;  %v4006_v57 = vstv %s3996_s13 }
 0x3c0   : > { %v883_v60 = vsel %vm877_vm8, %v874_v27, 0.0  ;;  %v1313_v27 = vmul.f32 %v1311_v46, %v866_v49  ;;  %v4016_v59 = vstv %s3997_s26  ;;  %s4029_s26 = sld [smem:[#allocation43_spill]] }
 0x3c1   : > { %v1316_v51 = vmul.f32 %v3774_v55, %v883_v60  ;;  %v1492_v55 = vmul.f32 %v4001_v18, %v866_v49  ;;  %v1031_v37 = vmul.f32 %v4002_v17, %v883_v60  ;;  %v1126_v46 = vmul.f32 %v4003_v34, %v883_v60 }
 0x3c2   : > { %v2956_v28 = vpop.permute.xlu0 %942  ;;  %v870_v44 = vpop.permute.xlu1 %869  ;;  %v1221_v33 = vmul.f32 %v4004_v11, %v883_v60  ;;  %v1400_v47 = vmul.f32 %v4005_v31, %v883_v60  ;;  %v1590_v18 = vmul.f32 %v4007_v30, %v883_v60  ;;  %v4009_v17 = vstv %s3989_s22  ;;  %s4022_s22 = sld [smem:[#allocation53_spill]] }
 0x3c3   : > { %3998 = vst [vmem:[#allocation115_spill] sm:$0xff] %v2956_v28  ;;  %v871_v45 = vsel %vm523_vm4, %v868_v54, %v870_v44  ;;  %v1318_v36 = vadd.f32 %v1316_v51, %v1312_v42  ;;  %v1495_v44 = vmul.f32 %v4006_v57, %v883_v60  ;;  %v1586_v11 = vmul.f32 %v4010_v25, %v865_v32 }
 0x3c4   : > { %v884_v54 = vsel %vm878_vm9, %v871_v45, 0.0  ;;  %v4012_v31 = vstv %s3994_s6  ;;  %v4014_v45 = vmov %v4010_v25  ;;  %v4015_v60 = vstv %s3996_s13  ;;  %s4018_s6 = sld [smem:[#allocation49_spill]] }
 0x3c5   : > { %v1032_v10 = vmul.f32 %v4008_v29, %v884_v54  ;;  %v1317_v51 = vmul.f32 %v4009_v17, %v884_v54  ;;  %v1127_v21 = vmul.f32 %v4011_v23, %v884_v54  ;;  %v1222_v41 = vmul.f32 %v4012_v31, %v884_v54  ;;  %s4025_s13 = sld [smem:[#allocation42_spill]] }
 0x3c6   : > { %v2987_v42 = vpop.permute.xlu0 %963  ;;  %v886_v34 = vpop.permute.xlu1 %885  ;;  %v1401_v28 = vmul.f32 %v4013_v58, %v884_v54  ;;  %v1587_v57 = vmul.f32 %v4014_v45, %v866_v49  ;;  %v1496_v29 = vmul.f32 %v4015_v60, %v884_v54  ;;  %v1591_v17 = vmul.f32 %v4016_v59, %v884_v54 }
 0x3c7   : > { %v1319_v30 = vadd.f32 %v1317_v51, %v1313_v27  ;;  %v1033_v20 = vadd.f32 %v1031_v37, %v1027_v26  ;;  %v1128_v16 = vadd.f32 %v1126_v46, %v1122_v22  ;;  %v1223_v0 = vadd.f32 %v1221_v33, %v1217_v38 }
 0x3c8   : > { %v970_v23 = vsel %vm852_vm5, 0.0, %v2987_v42  ;;  %v1402_v25 = vadd.f32 %v1400_v47, %v1396_v48  ;;  %v1497_v58 = vadd.f32 %v1495_v44, %v1491_v52  ;;  %v1592_v32 = vadd.f32 %v1590_v18, %v1586_v11 }
 0x3c9   : > { %v1034_v31 = vadd.f32 %v1032_v10, %v1028_v61  ;;  %v1129_v27 = vadd.f32 %v1127_v21, %v1123_v35  ;;  %v1224_v59 = vadd.f32 %v1222_v41, %v1218_v53  ;;  %v1403_v37 = vadd.f32 %v1401_v28, %v1397_v56 }
 0x3ca   : > { %v888_v49 = vpop.permute.xlu1 %887  ;;  %v893_v33 = vsel %vm889_vm10, 0.0, %v886_v34  ;;  %v3007_v38 = vpop.permute.xlu0 %973  ;;  %v1498_v26 = vadd.f32 %v1496_v29, %v1492_v55  ;;  %v1593_v48 = vadd.f32 %v1591_v17, %v1587_v57  ;;  %v3011_v52 = vsel %vm859_vm6, %v970_v23, 0.0 }
 0x3cb   : > { %4026 = vst [vmem:[#allocation116_spill] sm:$0xff] %v3011_v52  ;;  %v902_v61 = vsel %vm896_vm11, %v893_v33, 0.0  ;;  %v4027_v10 = vstv %s4017_s10  ;;  %v4028_v35 = vstv %s4018_s6  ;;  %v4030_v41 = vstv %s4019_s8 }
 0x3cc   : > { %v1037_v21 = vmul.f32 %v4027_v10, %v902_v61  ;;  %v1132_v56 = vmul.f32 %v4028_v35, %v902_v61  ;;  %v1227_v53 = vmul.f32 %v4030_v41, %v902_v61  ;;  %v4032_v28 = vstv %s4020_s21 }
 0x3cd   : > { %v1322_v55 = vmul.f32 %v4032_v28, %v902_v61  ;;  %v4035_v22 = vstv %s4021_s1  ;;  %v4036_v46 = vstv %s4022_s22  ;;  %v4037_v54 = vstv %s4023_s9 }
 0x3ce   : > { %v1406_v40 = vmul.f32 %v4035_v22, %v902_v61  ;;  %v1501_v47 = vmul.f32 %v4036_v46, %v902_v61  ;;  %v1596_v44 = vmul.f32 %v4037_v54, %v902_v61  ;;  %v980_v18 = vsel %vm523_vm4, 0.0, %v3007_v38  ;;  %v905_v51 = vpop.permute.xlu1 %904  ;;  %v3082_v50 = vpop.permute.xlu0 %983 }
 0x3cf   : > { %v4038_v11 = vstv %s4024_s24  ;;  %v4039_v57 = vstv %s4025_s13  ;;  %v1324_v29 = vadd.f32 %v1322_v55, %v1318_v36  ;;  %v890_v17 = vsel %vm889_vm10, %v886_v34, %v888_v49 }
 0x3d0   : > { %v3035_v45 = vmul.f32 %v4038_v11, %v3011_v52  ;;  %v3040_v60 = vmul.f32 %v4039_v57, %v3011_v52  ;;  %v4040_v23 = vstv %s4029_s26  ;;  %v4041_v61 = vstv %s4031_s20 }
 0x3d1   : > { %v3047_v33 = vmul.f32 %v4040_v23, %v3011_v52  ;;  %v3052_v10 = vmul.f32 %v4041_v61, %v3011_v52  ;;  %v4043_v35 = vstv %s4033_s3  ;;  %v4045_v36 = vstv %s4034_s7 }
 0x3d2   : > { %v3057_v41 = vmul.f32 %v4043_v35, %v3011_v52  ;;  %v3062_v34 = vmul.f32 %v4045_v36, %v3011_v52  ;;  %v1039_v49 = vadd.f32 %v1037_v21, %v1033_v20  ;;  %v1134_v28 = vadd.f32 %v1132_v56, %v1128_v16  ;;  %v907_v23 = vpop.permute.xlu1 %906 }
 0x3d3   : > { %4042 = vst [vmem:[#allocation117_spill] sm:$0xff] %v3052_v10  ;;  %v1229_v55 = vadd.f32 %v1227_v53, %v1223_v0  ;;  %v3066_v22 = vsel %vm877_vm8, %v980_v18, 0.0  ;;  %v1408_v46 = vadd.f32 %v1406_v40, %v1402_v25  ;;  %v3068_v54 = vadd.f32 %v1501_v47, %v1497_v58 }
 0x3d4   : > { %4044 = vst [vmem:[#allocation118_spill] sm:$0xff] %v3057_v41  ;;  %4046 = vst [vmem:[#allocation119_spill] sm:$0xff] %v3062_v34  ;;  %v3070_v11 = vadd.f32 %v1596_v44, %v1592_v32  ;;  %v903_v57 = vsel %vm897_vm12, %v890_v17, 0.0  ;;  %v4047_v61 = vstv %s4017_s10  ;;  %v4048_v20 = vstv %s4018_s6  ;;  %s4055_s10 = sld [smem:[#allocation65_spill]] }
 0x3d5   : > { %v1038_v35 = vmul.f32 %v4047_v61, %v903_v57  ;;  %v1133_v21 = vmul.f32 %v4048_v20, %v903_v57  ;;  %v4049_v16 = vstv %s4019_s8  ;;  %v4050_v0 = vstv %s4020_s21  ;;  %s4059_s6 = sld [smem:[#allocation66_spill]] }
 0x3d6   : > { %v1228_v56 = vmul.f32 %v4049_v16, %v903_v57  ;;  %v1323_v53 = vmul.f32 %v4050_v0, %v903_v57  ;;  %v4051_v25 = vstv %s3939_s27  ;;  %v4052_v32 = vstv %s4021_s1  ;;  %v926_v10 = vpop.permute.xlu1 %925  ;;  %s4063_s8 = sld [smem:[#allocation67_spill]] }
 0x3d7   : > { %v3087_v58 = vmul.f32 %v4051_v25, %v3066_v22  ;;  %v1407_v40 = vmul.f32 %v4052_v32, %v903_v57  ;;  %v4053_v47 = vstv %s4022_s22  ;;  %v4054_v18 = vstv %s4023_s9  ;;  %s4077_s21 = sld [smem:[#allocation72_spill]] }
 0x3d8   : > { %v1502_v44 = vmul.f32 %v4053_v47, %v903_v57  ;;  %v1597_v17 = vmul.f32 %v4054_v18, %v903_v57  ;;  %v1040_v36 = vadd.f32 %v1038_v35, %v1034_v31  ;;  %v1135_v61 = vadd.f32 %v1133_v21, %v1129_v27  ;;  %s4079_s1 = sld [smem:[#allocation73_spill]] }
 0x3d9   : > { %v1230_v52 = vadd.f32 %v1228_v56, %v1224_v59  ;;  %v1325_v20 = vadd.f32 %v1323_v53, %v1319_v30  ;;  %v1409_v34 = vadd.f32 %v1407_v40, %v1403_v37  ;;  %v3097_v0 = vsel %vm889_vm10, 0.0, %v3082_v50  ;;  %s4085_s22 = sld [smem:[#allocation74_spill]] }
 0x3da   : > { %v1504_v16 = vadd.f32 %v1502_v44, %v1498_v26  ;;  %v1599_v41 = vadd.f32 %v1597_v17, %v1593_v48  ;;  %v1046_v25 = vadd.f32 %v2703_v63, %v1040_v36  ;;  %v1141_v32 = vadd.f32 %v2706_v2, %v1135_v61  ;;  %s4088_s9 = sld [smem:[#allocation75_spill]] }
 0x3db   : > { %v1236_v47 = vadd.f32 %v2709_v3, %v1230_v52  ;;  %v1331_v31 = vadd.f32 %v2712_v4, %v1325_v20  ;;  %v1415_v30 = vadd.f32 %v2718_v5, %v1409_v34  ;;  %v909_v63 = vsel %vm908_vm13, %v905_v51, %v907_v23  ;;  %v945_v51 = vpop.permute.xlu1 %944 }
 0x3dc   : > { %v1510_v27 = vadd.f32 %v2721_v6, %v1504_v16  ;;  %v1605_v59 = vadd.f32 %v2724_v1, %v1599_v41  ;;  %v912_v2 = vsel %vm908_vm13, %v907_v23, 0.0  ;;  %v921_v3 = vsel %vm917_vm14, %v909_v63, 0.0 }
 0x3dd   : > { %v1045_v4 = vadd.f32 %v2730_v8, %v1039_v49  ;;  %v1140_v5 = vadd.f32 %v2733_v9, %v1134_v28  ;;  %v922_v6 = vsel %vm918_vm15, %v912_v2, 0.0  ;;  %v4056_v1 = vstv %s3950_s17  ;;  %s4065_s17 = sld [smem:[#allocation68_spill]]  ;;  %v4068_v2 = vld [vmem:[#allocation113_spill] sm:$0xff] }
 0x3de   : > { %v1049_v37 = vmul.f32 %v4056_v1, %v921_v3  ;;  %v4057_v26 = vstv %s3951_s14  ;;  %v1235_v52 = vadd.f32 %v2736_v13, %v1229_v55  ;;  %v4058_v41 = vmov %v4056_v1  ;;  %s4076_s14 = sld [smem:[#allocation71_spill]] }
 0x3df   : > { %v1144_v48 = vmul.f32 %v4057_v26, %v921_v3  ;;  %v1050_v34 = vmul.f32 %v4058_v41, %v922_v6  ;;  %v4060_v57 = vmov %v4057_v26  ;;  %v4061_v35 = vstv %s2603_s23  ;;  %s4074_s23 = sld [smem:[#allocation70_spill]] }
 0x3e0   : > { %v1145_v23 = vmul.f32 %v4060_v57, %v922_v6  ;;  %v1239_v8 = vmul.f32 %v4061_v35, %v921_v3  ;;  %v4062_v49 = vmov %v4061_v35  ;;  %v1051_v28 = vadd.f32 %v1049_v37, %v1045_v4 }
 0x3e1   : > { %v1240_v9 = vmul.f32 %v4062_v49, %v922_v6  ;;  %v1146_v21 = vadd.f32 %v1144_v48, %v1140_v5  ;;  %v1330_v56 = vadd.f32 %v2742_v12, %v1324_v29  ;;  %v4064_v53 = vstv %s4055_s10  ;;  %v3139_v12 = vpop.permute.xlu1 %965  ;;  %s4091_s10 = sld [smem:[#allocation76_spill]] }
 0x3e2   : > { %v1334_v40 = vmul.f32 %v4064_v53, %v921_v3  ;;  %v1052_v13 = vadd.f32 %v1050_v34, %v1046_v25  ;;  %v1147_v55 = vadd.f32 %v1145_v23, %v1141_v32  ;;  %v1241_v44 = vadd.f32 %v1239_v8, %v1235_v52  ;;  %v4070_v32 = vld [vmem:[#allocation90_spill] sm:$0xff] }
 0x3e3   : > { %v1242_v18 = vadd.f32 %v1240_v9, %v1236_v47  ;;  %v4066_v17 = vmov %v4064_v53  ;;  %v1414_v20 = vadd.f32 %v2745_v15, %v1408_v46  ;;  %v4067_v16 = vstv %s4059_s6  ;;  %v4073_v46 = vld [vmem:[#allocation92_spill] sm:$0xff]  ;;  %s4094_s6 = sld [smem:[#allocation77_spill]] }
 0x3e4   : > { %v1335_v36 = vmul.f32 %v4066_v17, %v922_v6  ;;  %v1336_v61 = vadd.f32 %v1334_v40, %v1330_v56  ;;  %v1418_v63 = vmul.f32 %v4067_v16, %v921_v3  ;;  %vm955_vm6 = vcmp.lt.s32.totalorder %v2882_v14, 16  ;;  %v4081_v9 = vld [vmem:[#allocation115_spill] sm:$0xff] }
 0x3e5   : > { %vm956_vm8 = vcmp.lt.s32.totalorder %v4068_v2, 16  ;;  %v4069_v29 = vmov %v4067_v16  ;;  %v1509_v4 = vadd.f32 %v4070_v32, %v3068_v54  ;;  %v4071_v47 = vstv %s4063_s8  ;;  %v3160_v56 = vpop.permute.xlu1 %975  ;;  %s4098_s8 = sld [smem:[#allocation78_spill]] }
 0x3e6   : > { %v1419_v25 = vmul.f32 %v4069_v29, %v922_v6  ;;  %v1513_v5 = vmul.f32 %v4071_v47, %v921_v3  ;;  %v4072_v1 = vmov %v4071_v47  ;;  %v1337_v26 = vadd.f32 %v1335_v36, %v1331_v31  ;;  %v4080_v31 = vld [vmem:[#allocation114_spill] sm:$0xff] }
 0x3e7   : > { %v1514_v37 = vmul.f32 %v4072_v1, %v922_v6  ;;  %v1420_v15 = vadd.f32 %v1418_v63, %v1414_v20  ;;  %v1604_v48 = vadd.f32 %v4073_v46, %v3070_v11  ;;  %v4075_v52 = vstv %s4065_s17  ;;  %s4101_s17 = sld [smem:[#allocation80_spill]] }
 0x3e8   : > { %v1608_v41 = vmul.f32 %v4075_v52, %v921_v3  ;;  %v1421_v34 = vadd.f32 %v1419_v25, %v1415_v30  ;;  %v1515_v57 = vadd.f32 %v1513_v5, %v1509_v4  ;;  %v4078_v54 = vmov %v4075_v52 }
 0x3e9   : > { %v1516_v23 = vadd.f32 %v1514_v37, %v1510_v27  ;;  %v1609_v35 = vmul.f32 %v4078_v54, %v922_v6  ;;  %v928_v49 = vsel %vm927_vm0, %v4080_v31, %v926_v10  ;;  %v931_v11 = vsel %vm927_vm0, %v926_v10, 0.0 }
 0x3ea   : > { %v1610_v8 = vadd.f32 %v1608_v41, %v1604_v48  ;;  %v947_v3 = vsel %vm946_vm1, %v4081_v9, %v945_v51  ;;  %v940_v27 = vsel %vm936_vm2, %v928_v49, 0.0  ;;  %v941_v6 = vsel %vm937_vm3, %v931_v11, 0.0  ;;  %v3183_v41 = vpop.permute.xlu1 %985 }
 0x3eb   : > { %v1611_v30 = vadd.f32 %v1609_v35, %v1605_v59  ;;  %v950_v53 = vsel %vm946_vm1, %v945_v51, 0.0  ;;  %v4082_v40 = vstv %s4074_s23  ;;  %v4084_v16 = vstv %s4076_s14  ;;  %s4104_s23 = sld [smem:[#allocation81_spill]] }
 0x3ec   : > { %v1055_v17 = vmul.f32 %v4082_v40, %v940_v27  ;;  %v4083_v36 = vmov %v4082_v40  ;;  %v1150_v10 = vmul.f32 %v4084_v16, %v940_v27  ;;  %v4086_v63 = vmov %v4084_v16  ;;  %s4115_s14 = sld [smem:[#allocation57_spill]] }
 0x3ed   : > { %v1056_v20 = vmul.f32 %v4083_v36, %v941_v6  ;;  %v1151_v29 = vmul.f32 %v4086_v63, %v941_v6  ;;  %v4087_v25 = vstv %s4077_s21  ;;  %v4090_v47 = vstv %s4079_s1  ;;  %s4117_s21 = sld [smem:[#allocation59_spill]] }
 0x3ee   : > { %v1245_v59 = vmul.f32 %v4087_v25, %v940_v27  ;;  %v4089_v32 = vmov %v4087_v25  ;;  %v1340_v5 = vmul.f32 %v4090_v47, %v940_v27  ;;  %v4092_v51 = vmov %v4090_v47  ;;  %s4120_s1 = sld [smem:[#allocation60_spill]] }
 0x3ef   : > { %v1246_v4 = vmul.f32 %v4089_v32, %v941_v6  ;;  %v1341_v1 = vmul.f32 %v4092_v51, %v941_v6  ;;  %v1057_v37 = vadd.f32 %v1055_v17, %v1051_v28  ;;  %v1058_v46 = vadd.f32 %v1056_v20, %v1052_v13 }
 0x3f0   : > { %v1152_v48 = vadd.f32 %v1150_v10, %v1146_v21  ;;  %v1153_v52 = vadd.f32 %v1151_v29, %v1147_v55  ;;  %v1247_v54 = vadd.f32 %v1245_v59, %v1241_v44  ;;  %v1342_v31 = vadd.f32 %v1340_v5, %v1336_v61  ;;  %v996_v29 = vpop.permute.xlu1 %995  ;;  %v994_v5 = vpop.permute.xlu0 %993 }
 0x3f1   : > { %v1248_v35 = vadd.f32 %v1246_v4, %v1242_v18  ;;  %v1343_v49 = vadd.f32 %v1341_v1, %v1337_v26  ;;  %v4093_v11 = vstv %s4085_s22  ;;  %v4096_v16 = vstv %s4088_s9  ;;  %s4121_s22 = sld [smem:[#allocation61_spill]] }
 0x3f2   : > { %v1424_v9 = vmul.f32 %v4093_v11, %v940_v27  ;;  %v4095_v40 = vmov %v4093_v11  ;;  %v1519_v63 = vmul.f32 %v4096_v16, %v940_v27  ;;  %v4097_v25 = vmov %v4096_v16  ;;  %s4122_s9 = sld [smem:[#allocation44_spill]] }
 0x3f3   : > { %v1425_v36 = vmul.f32 %v4095_v40, %v941_v6  ;;  %v1520_v28 = vmul.f32 %v4097_v25, %v941_v6  ;;  %v4099_v13 = vstv %s4091_s10  ;;  %v959_v18 = vsel %vm955_vm6, %v947_v3, 0.0  ;;  %s4213_s10 = sld [smem:[#allocation83_spill]] }
 0x3f4   : > { %v1614_v21 = vmul.f32 %v4099_v13, %v940_v27  ;;  %v4100_v55 = vmov %v4099_v13  ;;  %v960_v61 = vsel %vm956_vm8, %v950_v53, 0.0  ;;  %v1426_v26 = vadd.f32 %v1424_v9, %v1420_v15 }
 0x3f5   : > { %v1615_v44 = vmul.f32 %v4100_v55, %v941_v6  ;;  %v1427_v17 = vadd.f32 %v1425_v36, %v1421_v34  ;;  %v1521_v20 = vadd.f32 %v1519_v63, %v1515_v57  ;;  %v1522_v10 = vadd.f32 %v1520_v28, %v1516_v23 }
 0x3f6   : > { %v1616_v59 = vadd.f32 %v1614_v21, %v1610_v8  ;;  %v4102_v27 = vstv %s4094_s6  ;;  %v4105_v51 = vstv %s4098_s8  ;;  %v4107_v53 = vstv %s3965_s29  ;;  %s4113_s29 = sld [smem:[#allocation56_spill]]  ;;  %s2178_s8 = smov 96  }
 0x3f7   : > { %v1617_v32 = vadd.f32 %v1615_v44, %v1611_v30  ;;  %v1061_v4 = vmul.f32 %v4102_v27, %v959_v18  ;;  %v4103_v47 = vmov %v4102_v27  ;;  %v1156_v3 = vmul.f32 %v4105_v51, %v959_v18  ;;  %s4218_s6 = sld [smem:[#allocation89_spill]] }
 0x3f8   : > { %v1062_v6 = vmul.f32 %v4103_v47, %v960_v61  ;;  %v4106_v1 = vmov %v4105_v51  ;;  %v1251_v34 = vmul.f32 %v4107_v53, %v959_v18  ;;  %v4108_v57 = vmov %v4107_v53 }
 0x3f9   : > { %v1157_v15 = vmul.f32 %v4106_v1, %v960_v61  ;;  %v1252_v23 = vmul.f32 %v4108_v57, %v960_v61  ;;  %v3213_v8 = vadd.f32 %v1061_v4, %v1057_v37  ;;  %v4109_v11 = vstv %s4101_s17  ;;  %s4226_s17 = sld [smem:[#allocation26_spill]] }
 0x3fa   : > { %v1064_v30 = vadd.f32 %v1062_v6, %v1058_v46  ;;  %v1346_v9 = vmul.f32 %v4109_v11, %v959_v18  ;;  %v4110_v40 = vmov %v4109_v11  ;;  %v3219_v16 = vadd.f32 %v1156_v3, %v1152_v48 }
 0x3fb   : > { %v1347_v36 = vmul.f32 %v4110_v40, %v960_v61  ;;  %v3221_v63 = vadd.f32 %v1157_v15, %v1153_v52  ;;  %v3223_v25 = vadd.f32 %v1251_v34, %v1247_v54  ;;  %v3225_v28 = vadd.f32 %v1252_v23, %v1248_v35 }
 0x3fc   : > { %v3227_v13 = vadd.f32 %v1346_v9, %v1342_v31  ;;  %v4111_v55 = vstv %s4104_s23  ;;  %v4114_v27 = vstv %s3967_s28  ;;  %v4118_v52 = vstv %s3968_s30  ;;  %v1006_v31 = vpop.permute.xlu1 %1005  ;;  %s4140_s28 = sld [smem:[#allocation69_spill]]  ;;  %s2179_s23 = smov 80  }
 0x3fd   : > { %v1349_v21 = vadd.f32 %v1347_v36, %v1343_v49  ;;  %v1430_v44 = vmul.f32 %v4111_v55, %v959_v18  ;;  %v4112_v37 = vmov %v4111_v55  ;;  %v1525_v4 = vmul.f32 %v4114_v27, %v959_v18  ;;  %s4189_s30 = sld [smem:[#allocation111_spill]] }
 0x3fe   : > { %v1431_v46 = vmul.f32 %v4112_v37, %v960_v61  ;;  %v4116_v47 = vmov %v4114_v27  ;;  %v1620_v6 = vmul.f32 %v4118_v52, %v959_v18  ;;  %v4119_v54 = vmov %v4118_v52  ;;  %v1004_v18 = vpop.permute.xlu0 %1003 }
 0x3ff   : > { %v1526_v48 = vmul.f32 %v4116_v47, %v960_v61  ;;  %v1621_v35 = vmul.f32 %v4119_v54, %v960_v61  ;;  %v3241_v49 = vadd.f32 %v1430_v44, %v1426_v26  ;;  %v967_v3 = vsel %vm852_vm5, %v2987_v42, %v3139_v12 }
 0x400   : > { %v3243_v51 = vadd.f32 %v1431_v46, %v1427_v17  ;;  %v977_v1 = vsel %vm523_vm4, %v3007_v38, %v3160_v56  ;;  %v3251_v15 = vadd.f32 %v1525_v4, %v1521_v20  ;;  %v3255_v26 = vadd.f32 %v1620_v6, %v1616_v59 }
 0x401   : > { %v3253_v61 = vadd.f32 %v1526_v48, %v1522_v10  ;;  %v3257_v17 = vadd.f32 %v1621_v35, %v1617_v32  ;;  %v4123_v53 = vstv %s4113_s29  ;;  %v4124_v12 = vstv %s4115_s14 }
 0x402   : > { %v1168_v42 = vmul.f32 %v4123_v53, %v3066_v22  ;;  %v3265_v34 = vmul.f32 %v4124_v12, %v3066_v22  ;;  %v4125_v38 = vstv %s4117_s21  ;;  %v972_v10 = vsel %vm860_vm7, %v967_v3, 0.0 }
 0x403   : > { %v3270_v56 = vmul.f32 %v4125_v38, %v3066_v22  ;;  %v4127_v59 = vstv %s4120_s1  ;;  %v4128_v57 = vstv %s4121_s22  ;;  %v4129_v11 = vstv %s4122_s9  ;;  %v1014_v38 = vpop.permute.xlu0 %1013 }
 0x404   : > { %v3277_v32 = vmul.f32 %v4127_v59, %v3066_v22  ;;  %v3282_v23 = vmul.f32 %v4128_v57, %v3066_v22  ;;  %v1353_v9 = vmul.f32 %v4129_v11, %v972_v10  ;;  %v3288_v36 = vsel %vm878_vm9, %v977_v1, 0.0 }
 0x405   : > { %v3293_v55 = vsel %vm896_vm11, %v3097_v0, 0.0  ;;  %v4131_v44 = vstv %s4024_s24  ;;  %v987_v46 = vsel %vm889_vm10, %v3082_v50, %v3183_v41  ;;  %v997_v27 = vsel %vm908_vm13, %v994_v5, %v996_v29  ;;  %v1016_v0 = vpop.permute.xlu1 %1015  ;;  %s4203_s24 = sld [smem:[#allocation79_spill]] }
 0x406   : > { %v1068_v37 = vmul.f32 %v4131_v44, %v972_v10  ;;  %v4132_v4 = vstv %s4025_s13  ;;  %v4133_v48 = vstv %s4029_s26  ;;  %v3305_v6 = vadd.f32 %v1353_v9, %v1349_v21  ;;  %s4206_s13 = sld [smem:[#allocation62_spill]]  ;;  %s2177_s26 = smov 112  }
 0x407   : > { %v1163_v47 = vmul.f32 %v4132_v4, %v972_v10  ;;  %v1258_v52 = vmul.f32 %v4133_v48, %v972_v10  ;;  %v4134_v54 = vstv %s4031_s20  ;;  %v4135_v35 = vstv %s4033_s3  ;;  %s4151_s3 = sld [smem:[#allocation85_spill]] }
 0x408   : > { %v3309_v62 = vmul.f32 %v4134_v54, %v972_v10  ;;  %v3313_v3 = vmul.f32 %v4135_v35, %v972_v10  ;;  %v4136_v1 = vstv %s4034_s7  ;;  %v4137_v50 = vstv %s3939_s27  ;;  %s4168_s7 = sld [smem:[#allocation55_spill]] }
 0x409   : > { %v3317_v53 = vmul.f32 %v4136_v1, %v972_v10  ;;  %v1074_v41 = vmul.f32 %v4137_v50, %v3288_v36  ;;  %v4138_v5 = vstv %s4113_s29  ;;  %v4139_v21 = vstv %s4115_s14  ;;  %s4180_s27 = sld [smem:[#allocation64_spill]] }
 0x40a   : > { %v1169_v12 = vmul.f32 %v4138_v5, %v3288_v36  ;;  %v1264_v20 = vmul.f32 %v4139_v21, %v3288_v36  ;;  %v3330_v59 = vsel %vm897_vm12, %v987_v46, 0.0  ;;  %v1000_v57 = vsel %vm908_vm13, %v996_v29, 0.0  ;;  %s4208_s20 = sld [smem:[#allocation82_spill]] }
 0x40b   : > { %v1007_v10 = vsel %vm927_vm0, %v1004_v18, %v1006_v31  ;;  %v4141_v11 = vstv %s4117_s21  ;;  %v3341_v40 = vsel %vm918_vm15, %v1000_v57, 0.0  ;;  %v1010_v44 = vsel %vm927_vm0, %v1006_v31, 0.0  ;;  %s1023_s29 = sld [smem:[#allocation2]] }
 0x40c   : > { %v3337_v9 = vmul.f32 %v4141_v11, %v3288_v36  ;;  %v1017_v19 = vsel %vm946_vm1, %v1014_v38, %v1016_v0  ;;  %v4142_v29 = vstv %s4120_s1  ;;  %v3352_v18 = vsel %vm937_vm3, %v1010_v44, 0.0  ;;  %s4234_s14 = sld [smem:[#allocation16_spill]] }
 0x40d   : > { %v3348_v46 = vmul.f32 %v4142_v29, %v3288_v36  ;;  %v1020_v4 = vsel %vm946_vm1, %v1016_v0, 0.0  ;;  %v1070_v24 = vadd.f32 %v1068_v37, %v1064_v30  ;;  %v3357_v48 = vsel %vm917_vm14, %v997_v27, 0.0  ;;  %s4235_s21 = sld [smem:[#allocation21_spill]] }
 0x40e   : > { %v3361_v31 = vsel %vm936_vm2, %v1007_v10, 0.0  ;;  %v3365_v7 = vsel %vm956_vm8, %v1020_v4, 0.0  ;;  %v4143_v54 = vstv %s4140_s28  ;;  %v3372_v30 = vsel %vm955_vm6, %v1017_v19, 0.0  ;;  %s4237_s1 = sld [smem:[#allocation20_spill]] }
 0x40f   : > { %v1080_v0 = vmul.f32 %v4143_v54, %v3330_v59  ;;  %v1076_v39 = vadd.f32 %v1074_v41, %v1070_v24  ;;  %v4144_v37 = vstv %s2684_s11  ;;  %v1069_v43 = vadd.f32 %v3035_v45, %v3213_v8  ;;  %s2174_s11 = smov 48  }
 0x410   : > { %v1092_v27 = vmul.f32 %v4144_v37, %v3341_v40  ;;  %v4145_v2 = vstv %s2700_s16  ;;  %v4146_v1 = vstv %s2714_s12  ;;  %v4147_v5 = vmov %v4143_v54  ;;  %s2175_s16 = smov 32   ;;  %s4196_s12 = sld [smem:[#allocation58_spill]] }
 0x411   : > { %v1098_v35 = vmul.f32 %v4145_v2, %v3352_v18  ;;  %v1104_v50 = vmul.f32 %v4146_v1, %v3365_v7  ;;  %v1079_v14 = vmul.f32 %v4147_v5, %v3293_v55  ;;  %v1165_v41 = vadd.f32 %v1163_v47, %v3221_v63  ;;  %v4153_v47 = vld [vmem:[#allocation93_spill] sm:$0xff] }
 0x412   : > { %v1082_v38 = vadd.f32 %v1080_v0, %v1076_v39  ;;  %v1075_v21 = vadd.f32 %v3087_v58, %v1069_v43  ;;  %v4148_v57 = vmov %v4144_v37  ;;  %v4149_v8 = vstv %s2669_s18  ;;  %s4191_s18 = sld [smem:[#allocation98_spill]] }
 0x413   : > { %v1091_v45 = vmul.f32 %v4148_v57, %v3357_v48  ;;  %v1175_v10 = vmul.f32 %v4149_v8, %v3330_v59  ;;  %v4150_v11 = vmov %v4145_v2  ;;  %v4152_v19 = vmov %v4146_v1 }
 0x414   : > { %v1097_v44 = vmul.f32 %v4150_v11, %v3361_v31  ;;  %v1103_v29 = vmul.f32 %v4152_v19, %v3372_v30  ;;  %v1171_v4 = vadd.f32 %v1169_v12, %v1165_v41  ;;  %v1164_v63 = vadd.f32 %v3040_v60, %v3219_v16  ;;  %v4158_v41 = vld [vmem:[#allocation95_spill] sm:$0xff]  ;;  %p4242_p11 = scmp.ne.s32.totalorder %s4237_s1, 0 }
 0x415   : > { %v1088_v58 = vadd.f32 %v4153_v47, %v1082_v38  ;;  %v1081_v24 = vadd.f32 %v1079_v14, %v1075_v21  ;;  %v4154_v54 = vstv %s3973_s15  ;;  %v4155_v39 = vstv %s3976_s4  ;;  %s4166_s4 = sld [smem:[#allocation87_spill]] }
 0x416   : > { %v1187_v0 = vmul.f32 %v4154_v54, %v3341_v40  ;;  %v1193_v37 = vmul.f32 %v4155_v39, %v3352_v18  ;;  %v1177_v43 = vadd.f32 %v1175_v10, %v1171_v4  ;;  %v4156_v2 = vstv %s3977_s5  ;;  %s4173_s5 = sld [smem:[#allocation110_spill]] }
 0x417   : > { %v1199_v1 = vmul.f32 %v4156_v2, %v3365_v7  ;;  %v1170_v12 = vadd.f32 %v1168_v42, %v1164_v63  ;;  %v4157_v5 = vmov %v4149_v8  ;;  %v1094_v16 = vadd.f32 %v1092_v27, %v1088_v58  ;;  %v4160_v8 = vld [vmem:[#allocation96_spill] sm:$0xff]  ;;  %s3505_s15 = sld [smem:[#allocation7 + $0x4b]] }
 0x418   : > { %v1174_v60 = vmul.f32 %v4157_v5, %v3293_v55  ;;  %v1087_v38 = vadd.f32 %v4158_v41, %v1081_v24  ;;  %v1260_v14 = vadd.f32 %v1258_v52, %v3225_v28  ;;  %v4159_v21 = vstv %s4151_s3 }
 0x419   : > { %v1270_v57 = vmul.f32 %v4159_v21, %v3330_v59  ;;  %v1183_v11 = vadd.f32 %v4160_v8, %v1177_v43  ;;  %v4161_v19 = vmov %v4154_v54  ;;  %v4162_v42 = vmov %v4155_v39  ;;  %v4164_v54 = vld [vmem:[#allocation97_spill] sm:$0xff] }
 0x41a   : > { %v1176_v10 = vadd.f32 %v1174_v60, %v1170_v12  ;;  %v1186_v4 = vmul.f32 %v4161_v19, %v3357_v48  ;;  %v1192_v63 = vmul.f32 %v4162_v42, %v3361_v31  ;;  %v1100_v47 = vadd.f32 %v1098_v35, %v1094_v16 }
 0x41b   : > { %v1093_v27 = vadd.f32 %v1091_v45, %v1087_v38  ;;  %v4163_v58 = vmov %v4156_v2  ;;  %v1266_v28 = vadd.f32 %v1264_v20, %v1260_v14  ;;  %v1189_v52 = vadd.f32 %v1187_v0, %v1183_v11 }
 0x41c   : > { %v1198_v24 = vmul.f32 %v4163_v58, %v3372_v30  ;;  %v1182_v39 = vadd.f32 %v4164_v54, %v1176_v10  ;;  %v4165_v43 = vstv %s3978_s0  ;;  %v1259_v12 = vadd.f32 %v3047_v33, %v3223_v25  ;;  %v4170_v25 = vld [vmem:[#allocation99_spill] sm:$0xff]  ;;  %s4179_s0 = sld [smem:[#allocation88_spill]] }
 0x41d   : > { %v1282_v2 = vmul.f32 %v4165_v43, %v3341_v40  ;;  %v1106_v5 = vadd.f32 %v1104_v50, %v1100_v47  ;;  %v1099_v60 = vadd.f32 %v1097_v44, %v1093_v27  ;;  %v1272_v41 = vadd.f32 %v1270_v57, %v1266_v28  ;;  %v4178_v28 = vld [vmem:[#allocation117_spill] sm:$0xff] }
 0x41e   : > { %v4167_v35 = vstv %s3980_s19  ;;  %v1195_v16 = vadd.f32 %v1193_v37, %v1189_v52  ;;  %v1188_v20 = vadd.f32 %v1186_v4, %v1182_v39  ;;  %v1265_v0 = vadd.f32 %v3265_v34, %v1259_v12  ;;  %s2176_s19 = smov 16  }
 0x41f   : > { %v1288_v45 = vmul.f32 %v4167_v35, %v3352_v18  ;;  %v4169_v38 = vmov %v4159_v21  ;;  %1111 = vrot.lane.b32.xlu1 %v1106_v5, %s2174_s11  ;;  %v1105_v33 = vadd.f32 %v1103_v29, %v1099_v60  ;;  %v1278_v50 = vadd.f32 %v4170_v25, %v1272_v41 }
 0x420   : > { %v1269_v14 = vmul.f32 %v4169_v38, %v3293_v55  ;;  %v4171_v44 = vmov %v4165_v43  ;;  %v1439_v57 = vadd.f32 %v3309_v62, %v3243_v51  ;;  %v1201_v37 = vadd.f32 %v1199_v1, %v1195_v16  ;;  %v4176_v1 = vld [vmem:[#allocation101_spill] sm:$0xff]  ;;  %v4185_v16 = vld [vmem:[#allocation102_spill] sm:$0xff] }
 0x421   : > { %v1281_v21 = vmul.f32 %v4171_v44, %v3357_v48  ;;  %v1194_v8 = vadd.f32 %v1192_v63, %v1188_v20  ;;  %v4172_v34 = vstv %s4166_s4  ;;  %v4174_v19 = vstv %s4121_s22  ;;  %1109 = vrot.lane.b32.xlu0 %v1105_v33, %s2174_s11  ;;  %s1930_s22 = sshll.u32 %s4234_s14, 7  ;;  %s4241_s11 = sld [smem:[#allocation130_spill]] }
 0x422   : > { %v1271_v11 = vadd.f32 %v1269_v14, %v1265_v0  ;;  %v1449_v10 = vmul.f32 %v4172_v34, %v3330_v59  ;;  %v1633_v4 = vmul.f32 %v4174_v19, %v3288_v36  ;;  %v1284_v29 = vadd.f32 %v1282_v2, %v1278_v50 }
 0x423   : > { %v4175_v42 = vstv %s4168_s7  ;;  %v1445_v51 = vadd.f32 %v3337_v9, %v1439_v57  ;;  %v1200_v62 = vadd.f32 %v1198_v24, %v1194_v8  ;;  %v4177_v27 = vmov %v4167_v35  ;;  %1206 = vrot.lane.b32.xlu1 %v1201_v37, %s2175_s16 }
 0x424   : > { %v1294_v47 = vmul.f32 %v4175_v42, %v3365_v7  ;;  %v1277_v63 = vadd.f32 %v4176_v1, %v1271_v11  ;;  %v1287_v58 = vmul.f32 %v4177_v27, %v3361_v31  ;;  %v1438_v52 = vadd.f32 %v4178_v28, %v3241_v49 }
 0x425   : > { %v1290_v54 = vadd.f32 %v1288_v45, %v1284_v29  ;;  %v4181_v39 = vmov %v4175_v42  ;;  %v1451_v2 = vadd.f32 %v1449_v10, %v1445_v51  ;;  %v4182_v9 = vstv %s4173_s5  ;;  %1204 = vrot.lane.b32.xlu0 %v1200_v62, %s2175_s16  ;;  %v4193_v10 = vld [vmem:[#allocation104_spill] sm:$0xff] }
 0x426   : > { %v1293_v43 = vmul.f32 %v4181_v39, %v3372_v30  ;;  %v1461_v24 = vmul.f32 %v4182_v9, %v3341_v40  ;;  %v1283_v12 = vadd.f32 %v1281_v21, %v1277_v63  ;;  %v4183_v5 = vstv %s3983_s25  ;;  %s4197_s25 = sld [smem:[#allocation112_spill]] }
 0x427   : > { %v1467_v60 = vmul.f32 %v4183_v5, %v3352_v18  ;;  %v1444_v41 = vadd.f32 %v3270_v56, %v1438_v52  ;;  %v4184_v49 = vmov %v4172_v34  ;;  %v1296_v45 = vadd.f32 %v1294_v47, %v1290_v54  ;;  %s1719_s5 = scalar_lea.hbm %s4241_s11, %s1930_s22 }
 0x428   : > { %v1448_v35 = vmul.f32 %v4184_v49, %v3293_v55  ;;  %v1457_v20 = vadd.f32 %v4185_v16, %v1451_v2  ;;  %v1534_v0 = vadd.f32 %v3313_v3, %v3253_v61  ;;  %v4186_v38 = vstv %s4179_s0  ;;  %v4192_v3 = vld [vmem:[#allocation118_spill] sm:$0xff]  ;;  %v4201_v2 = vld [vmem:[#allocation105_spill] sm:$0xff]  ;;  %s1707_s0 = scalar_lea.sflag [#allocation5], %s4235_s21 }
 0x429   : > { %v1544_v14 = vmul.f32 %v4186_v38, %v3330_v59  ;;  %v1289_v33 = vadd.f32 %v1287_v58, %v1283_v12  ;;  %v4187_v25 = vstv %s4180_s27  ;;  %v4188_v44 = vmov %v4182_v9  ;;  %1301 = vrot.lane.b32.xlu1 %v1296_v45, %s2176_s19  ;;  %v4207_v45 = vld [vmem:[#allocation106_spill] sm:$0xff]  ;;  %s2180_s27 = smov [#allocation8]  }
 0x42a   : > { %v1473_v50 = vmul.f32 %v4187_v25, %v3365_v7  ;;  %v1450_v56 = vadd.f32 %v1448_v35, %v1444_v41  ;;  %v1460_v21 = vmul.f32 %v4188_v44, %v3357_v48  ;;  %v1463_v57 = vadd.f32 %v1461_v24, %v1457_v20 }
 0x42b   : > { %v4190_v37 = vmov %v4183_v5  ;;  %v1540_v61 = vadd.f32 %v3348_v46, %v1534_v0  ;;  %v1533_v11 = vadd.f32 %v4192_v3, %v3251_v15  ;;  %v1295_v34 = vadd.f32 %v1293_v43, %v1289_v33  ;;  %v4216_v3 = vld [vmem:[#allocation107_spill] sm:$0xff] }
 0x42c   : > { %v1466_v8 = vmul.f32 %v4190_v37, %v3361_v31  ;;  %v1456_v19 = vadd.f32 %v4193_v10, %v1450_v56  ;;  %v4194_v29 = vmov %v4187_v25  ;;  %v4195_v47 = vstv %s2853_s2  ;;  %s3535_s2 = sld [smem:[#allocation7 + $0x4c]] }
 0x42d   : > { %v1472_v42 = vmul.f32 %v4194_v29, %v3372_v30  ;;  %v1556_v51 = vmul.f32 %v4195_v47, %v3341_v40  ;;  %v1469_v62 = vadd.f32 %v1467_v60, %v1463_v57  ;;  %v1546_v1 = vadd.f32 %v1544_v14, %v1540_v61  ;;  %1299 = vrot.lane.b32.xlu0 %v1295_v34, %s2176_s19  ;;  %s2098_s19 = sshll.u32 %s2180_s27, 4  ;;  %s2099_s19 = int_to_ptr.vmem [resolvable:$false] %s2098_s19 }
 0x42e   : > { %v1539_v46 = vadd.f32 %v3277_v32, %v1533_v11  ;;  %v4198_v15 = vmov %v4186_v38  ;;  %v1462_v27 = vadd.f32 %v1460_v21, %v1456_v19  ;;  %v4199_v58 = vstv %s4189_s30  ;;  %v4210_v38 = vld [vmem:[#allocation119_spill] sm:$0xff]  ;;  %s2100_s30 = scalar_lea.vmem %s2099_s19, 256 }
 0x42f   : > { %v1543_v63 = vmul.f32 %v4198_v15, %v3293_v55  ;;  %v1562_v28 = vmul.f32 %v4199_v58, %v3352_v18  ;;  %v1629_v52 = vadd.f32 %v3317_v53, %v3257_v17  ;;  %v4200_v54 = vstv %s4191_s18 }
 0x430   : > { %v1639_v39 = vmul.f32 %v4200_v54, %v3330_v59  ;;  %v1475_v43 = vadd.f32 %v1473_v50, %v1469_v62  ;;  %v1552_v9 = vadd.f32 %v4201_v2, %v1546_v1  ;;  %v4202_v24 = vmov %v4195_v47  ;;  %v4220_v62 = vld [vmem:[#allocation116_spill] sm:$0xff] }
 0x431   : > { %v1545_v32 = vadd.f32 %v1543_v63, %v1539_v46  ;;  %v1555_v12 = vmul.f32 %v4202_v24, %v3357_v48  ;;  %v4204_v5 = vstv %s4196_s12  ;;  %v1468_v41 = vadd.f32 %v1466_v8, %v1462_v27 }
 0x432   : > { %v1359_v60 = vmul.f32 %v4204_v5, %v3288_v36  ;;  %v4205_v49 = vstv %s4197_s25  ;;  %v1635_v17 = vadd.f32 %v1633_v4, %v1629_v52  ;;  %1480 = vrot.lane.b32.xlu1 %v1475_v43, %s2177_s26  ;;  %v1558_v53 = vadd.f32 %v1556_v51, %v1552_v9 }
 0x433   : > { %v1568_v35 = vmul.f32 %v4205_v49, %v3365_v7  ;;  %v1551_v16 = vadd.f32 %v4207_v45, %v1545_v32  ;;  %v4209_v20 = vmov %v4199_v58  ;;  %v1628_v36 = vadd.f32 %v4210_v38, %v3255_v26 }
 0x434   : > { %v1561_v0 = vmul.f32 %v4209_v20, %v3361_v31  ;;  %v1474_v14 = vadd.f32 %v1472_v42, %v1468_v41  ;;  %v4211_v33 = vmov %v4205_v49  ;;  %v1641_v25 = vadd.f32 %v1639_v39, %v1635_v17 }
 0x435   : > { %v1567_v4 = vmul.f32 %v4211_v33, %v3372_v30  ;;  %v4212_v50 = vstv %s4203_s24  ;;  %v1564_v44 = vadd.f32 %v1562_v28, %v1558_v53  ;;  %v1557_v21 = vadd.f32 %v1555_v12, %v1551_v16  ;;  %v4230_v53 = vld [vmem:[#allocation109_spill] sm:$0xff] }
 0x436   : > { %v1651_v56 = vmul.f32 %v4212_v50, %v3341_v40  ;;  %v1634_v57 = vadd.f32 %v3282_v23, %v1628_v36  ;;  %v4214_v26 = vmov %v4200_v54  ;;  %v4215_v8 = vstv %s4206_s13  ;;  %1478 = vrot.lane.b32.xlu0 %v1474_v14, %s2177_s26  ;;  %v4224_v54 = vld [vmem:[#allocation108_spill] sm:$0xff] }
 0x437   : > { %v1638_v37 = vmul.f32 %v4214_v26, %v3293_v55  ;;  %v1365_v61 = vmul.f32 %v4215_v8, %v3330_v59  ;;  %v1647_v11 = vadd.f32 %v4216_v3, %v1641_v25  ;;  %v4217_v34 = vstv %s4208_s20 }
 0x438   : > { %v1657_v10 = vmul.f32 %v4217_v34, %v3352_v18  ;;  %v1381_v19 = vstv %s3505_s15  ;;  %v1570_v29 = vadd.f32 %v1568_v35, %v1564_v44  ;;  %v1563_v42 = vadd.f32 %v1561_v0, %v1557_v21 }
 0x439   : > { %v1640_v47 = vadd.f32 %v1638_v37, %v1634_v57  ;;  %v4219_v23 = vmov %v4212_v50  ;;  %v4221_v1 = vstv %s4122_s9  ;;  %v1653_v59 = vadd.f32 %v1651_v56, %v1647_v11  ;;  %s4239_s9 = sshll.u32 %s4235_s21, 3 }
 0x43a   : > { %v1650_v51 = vmul.f32 %v4219_v23, %v3357_v48  ;;  %v1352_v46 = vmul.f32 %v4221_v1, %v4220_v62  ;;  %v4222_v15 = vstv %s4213_s10  ;;  %v1361_v27 = vadd.f32 %v1359_v60, %v3305_v6  ;;  %1575 = vrot.lane.b32.xlu1 %v1570_v29, %s2178_s8  ;;  %s417_s28 = scalar_lea.vmem [#allocation8], %s4239_s9 }
 0x43b   : > { %v1663_v63 = vmul.f32 %v4222_v15, %v3365_v7  ;;  %v4223_v58 = vmov %v4204_v5  ;;  %v1569_v52 = vadd.f32 %v1567_v4, %v1563_v42  ;;  %v1646_v39 = vadd.f32 %v4224_v54, %v1640_v47  ;;  %s1721_s3 = sshll.u32 %s417_s28, 4  ;;  %s1722_s3 = int_to_ptr.vmem [resolvable:$true] %s1721_s3 }
 0x43c   : > { %v1358_v28 = vmul.f32 %v4223_v58, %v3066_v22  ;;  %v4225_v43 = vmov %v4217_v34  ;;  %v1659_v9 = vadd.f32 %v1657_v10, %v1653_v59  ;;  %v1367_v32 = vadd.f32 %v1365_v61, %v1361_v27  ;;  %s2094_s16 = scalar_lea.vmem %s1722_s3, 128  ;;  %p2101_p2 = scmp.lt.s32.totalorder %s1722_s3, %s2099_s19 }
 0x43d   : > { %v1656_v2 = vmul.f32 %v4225_v43, %v3361_v31  ;;  %v4227_v24 = vstv %s4218_s6  ;;  %v1354_v5 = vadd.f32 %v1352_v46, %v3227_v13  ;;  %v4228_v6 = vmov %v4215_v8  ;;  %1573 = vrot.lane.b32.xlu0 %v1569_v52, %s2178_s8  ;;  %p2095_p9 = scmp.ne.s32.totalorder %s1722_s3, %s2094_s16  ;;  %p2102_p1 = scmp.lt.s32.totalorder %s2100_s30, %s2094_s16 }
 0x43e   : > { %v1377_v12 = vmul.f32 %v4227_v24, %v3341_v40  ;;  %v1364_v60 = vmul.f32 %v4228_v6, %v3293_v55  ;;  %v1652_v22 = vadd.f32 %v1650_v51, %v1646_v39  ;;  %v4229_v41 = vmov %v4222_v15  ;;  %v4231_v40 = vld [vmem:[#allocation25_spill] sm:$0xff] }
 0x43f   : > { %v1662_v49 = vmul.f32 %v4229_v41, %v3372_v30  ;;  %v1387_v35 = vstv %s3535_s2  ;;  %v1665_v17 = vadd.f32 %v1663_v63, %v1659_v9  ;;  %v1373_v45 = vadd.f32 %v4230_v53, %v1367_v32  ;;  %p2096_p13 = pnand %p2095_p9, %p4242_p11  ;;  %p2103_p0 = por %p2102_p1, %p2101_p2 }
 0x440   : > { %v1383_v16 = vmul.f32 %v1381_v19, %v3352_v18  ;;  %v1360_v20 = vadd.f32 %v1358_v28, %v1354_v5  ;;  %v1658_v0 = vadd.f32 %v1656_v2, %v1652_v22  ;;  %v4232_v38 = vstv %s4226_s17 }
 0x441   : > { %v1370_v13 = vmul.f32 %v4232_v38, %v4231_v40  ;;  %1670 = vrot.lane.b32.xlu1 %v1665_v17, %s2179_s23  ;;  %v1379_v55 = vadd.f32 %v1377_v12, %v1373_v45  ;;  %v1389_v36 = vmul.f32 %v1387_v35, %v3365_v7  ;;  %v4233_v33 = vmov %v4227_v24  ;;  %p2097_p10 = pneg %p2096_p13 }
 0x442   : > { %v1366_v14 = vadd.f32 %v1364_v60, %v1360_v20  ;;  %v1376_v4 = vmul.f32 %v4233_v33, %v3357_v48  ;;  %v1664_v25 = vadd.f32 %v1662_v49, %v1658_v0  ;;  %v1382_v44 = vmul.f32 %v1381_v19, %v3361_v31  ;;  %v4236_v0 = vld [vmem:[#allocation22_spill] sm:$0xff] }
 0x443   : > { %v1385_v50 = vadd.f32 %v1383_v16, %v1379_v55  ;;  %v1388_v57 = vmul.f32 %v1387_v35, %v3372_v30  ;;  %vm1113_vm4 = vcmask 392192   ;;  %vm1208_vm5 = vcmask 261120   ;;  %v4238_v55 = vld [vmem:[#allocation24_spill] sm:$0xff]  ;;  %p2104_p3 = pnand %p2103_p0, %p2097_p10 }
 0x444   : > { %v1372_v56 = vadd.f32 %v1370_v13, %v1366_v14  ;;  %1668 = vrot.lane.b32.xlu0 %v1664_v25, %s2179_s23  ;;  %v1024_v48 = vstv %s1023_s29  ;;  %vm1303_vm7 = vcmask 130048   ;;  %vm1482_vm9 = vcmask 916480   ;;  %v4240_v14 = vld [vmem:[#allocation23_spill] sm:$0xff] }
 0x445   : > { %v1391_v18 = vadd.f32 %v1389_v36, %v1385_v50  ;;  %vm1577_vm10 = vcmask 785408   ;;  %vm1672_vm11 = vcmask 654336  }
 0x446   : > { %v1378_v21 = vadd.f32 %v1376_v4, %v1372_v56 }
 0x448   : > { %v1384_v26 = vadd.f32 %v1382_v44, %v1378_v21 }
 0x44a   : > { %v1390_v37 = vadd.f32 %v1388_v57, %v1384_v26 }
 0x491   : > { %v1112_v8 = vpop.permute.xlu1 %1111 }
 0x493   : > { %v1110_v61 = vpop.permute.xlu0 %1109 }
 0x494   : > { %v1114_v11 = vsel %vm1113_vm4, %v1110_v61, %v1112_v8  ;;  %v1117_v31 = vsel %vm1113_vm4, 0.0, %v1110_v61 }
 0x495   : > { %v1207_v7 = vpop.permute.xlu1 %1206  ;;  %v1119_v19 = vadd.f32 %v1114_v11, %v1024_v48  ;;  %v1118_v23 = vadd.f32 %v1117_v31, %v1024_v48 }
 0x497   : > { %v1205_v3 = vpop.permute.xlu0 %1204 }
 0x498   : > { %v1209_v10 = vsel %vm1208_vm5, %v1205_v3, %v1207_v7  ;;  %v1212_v47 = vsel %vm1208_vm5, 0.0, %v1205_v3 }
 0x499   : > { %v1214_v30 = vadd.f32 %v1209_v10, %v1119_v19  ;;  %v1213_v46 = vadd.f32 %v1212_v47, %v1118_v23 }
 0x49b   : > { %v1302_v34 = vpop.permute.xlu1 %1301 }
 0x49f   : > { %v1300_v29 = vpop.permute.xlu0 %1299 }
 0x4a0   : > { %v1304_v42 = vsel %vm1303_vm7, %v1300_v29, %v1302_v34  ;;  %v1307_v62 = vsel %vm1303_vm7, 0.0, %v1300_v29 }
 0x4a1   : > { %v1309_v1 = vadd.f32 %v1304_v42, %v1214_v30  ;;  %v1308_v15 = vadd.f32 %v1307_v62, %v1213_v46 }
 0x4a3   : > { %v1393_v63 = vadd.f32 %v1391_v18, %v1309_v1  ;;  %v1392_v28 = vadd.f32 %v1390_v37, %v1308_v15 }
 0x4a4   : > { %v1481_v51 = vpop.permute.xlu1 %1480 }
 0x4a5   : > { %v1486_v27 = vsel %vm1482_vm9, %v1481_v51, 0.0 }
 0x4a6   : > { %v1488_v39 = vadd.f32 %v1486_v27, %v1393_v63 }
 0x4a8   : > { %v1479_v59 = vpop.permute.xlu0 %1478 }
 0x4a9   : > { %v1483_v43 = vsel %vm1482_vm9, %v1479_v59, %v1481_v51 }
 0x4aa   : > { %v1487_v24 = vadd.f32 %v1483_v43, %v1392_v28 }
 0x4ac   : > { %v1576_v58 = vpop.permute.xlu1 %1575 }
 0x4ad   : > { %v1581_v52 = vsel %vm1577_vm10, %v1576_v58, 0.0 }
 0x4ae   : > { %v1583_v2 = vadd.f32 %v1581_v52, %v1488_v39 }
 0x4af   : > { %v1574_v54 = vpop.permute.xlu0 %1573 }
 0x4b0   : > { %v1578_v9 = vsel %vm1577_vm10, %v1574_v54, %v1576_v58 }
 0x4b1   : > { %v1582_v6 = vadd.f32 %v1578_v9, %v1487_v24 }
 0x4b3   : > { %v1671_v32 = vpop.permute.xlu1 %1670 }
 0x4b4   : > { %v1676_v12 = vsel %vm1672_vm11, %v1671_v32, 0.0 }
 0x4b5   : > { %v1678_v5 = vadd.f32 %v1676_v12, %v1583_v2 }
 0x4b6   : > { %v1669_v60 = vpop.permute.xlu0 %1668 }
 0x4b7   : > { %v1923_v22 = vmul.f32 -1.442695, %v1678_v5  ;;  %v1673_v41 = vsel %vm1672_vm11, %v1669_v60, %v1671_v32 }
 0x4b8   : > { %v1677_v49 = vadd.f32 %v1673_v41, %v1582_v6 }
 0x4b9   : > { %2043 = vpow2.f32 %v1923_v22 }
 0x4ba   : > { %v1922_v35 = vmul.f32 -1.442695, %v1677_v49 }
 0x4bc   : > { %2045 = vpow2.f32 %v1922_v35 }
 0x4c6   : > { %v2044_v17 = vpop.eup %2043 }
 0x4c7   : > { %v1686_v53 = vadd.f32 1.0, %v2044_v17 }
 0x4c9   : > { %v2046_v45 = vpop.eup %2045  ;;  %2047 = vrcp.f32 %v1686_v53 }
 0x4ca   : > { %v1685_v16 = vadd.f32 1.0, %v2046_v45 }
 0x4cc   : > { %2049 = vrcp.f32 %v1685_v16 }
 0x4d6   : > { %v2048_v20 = vpop.eup %2047 }
 0x4d7   : > { %v1698_v40 = vrot.slane %v2048_v20, %v4236_v0 }
 0x4d9   : > { %v2050_v38 = vpop.eup %2049  ;;  %v1700_v36 = vmul.f32 %v1698_v40, %v4238_v55 }
 0x4da   : > { %v1694_v13 = vrot.slane %v2050_v38, %v4236_v0 }
 0x4dc   : > { %v1699_v33 = vmul.f32 %v1694_v13, %v4240_v14 }
 0x4de   : > { %v1703_v4 = vcombine.low %v1699_v33, %v1700_v36 }
 0x4e0   : > { %1705 = vst [vmem:[%s417_s28] sm:$0xff] %v1703_v4 }
 0x4e1   : > { %2107 = shalt.err (!%p2104_p3)
}
 0x4e2   : > { %s2108_s18 = scalar_lea.hbm %s1719_s5, 128  ;;  %s2112_s25 = scalar_lea.hbm %s4241_s11, 256 }
 0x4e3   : > { %p2109_p12 = scmp.ne.s32.totalorder %s1719_s5, %s2108_s18  ;;  %p2113_p4 = scmp.lt.s32.totalorder %s1719_s5, %s4241_s11 }
 0x4e4   : > { %p2114_p6 = scmp.lt.s32.totalorder %s2112_s25, %s2108_s18 }
 0x4e5   : > { %p2110_p5 = pnand %p2109_p12, %p4242_p11 }
 0x4e6   : > { %p2115_p8 = por %p2114_p6, %p2113_p4 }
 0x4e7   : > { %p2111_p7 = pneg %p2110_p5 }
 0x4e9   : > { %p2116_p9 = pnand %p2115_p8, %p2111_p7 }
 0x4eb   : > { %2119 = shalt.err (!%p2116_p9)
}
 0x4ec   : > { %1965 = dma.vmem_to_hbm [thread:$0]  (%p4242_p11), %s1722_s3, 128, %s1719_s5, %s1707_s0  }
 0x4ed PF: > { %s4243_s26 = sld [smem:[#allocation12_spill]] }
 0x4ee   : > { %s4244_s20 = sld [smem:[#allocation17_spill]] }
 0x4ef   : > { %s4245_s2 = sld [smem:[#allocation15_spill]] }
 0x4f3   : > { %s1733_s10 = sand.u32 1, %s4243_s26  }
 0x4f4   : > { %p4246_p13 = scmp.ne.s32.totalorder %s4244_s20, 0  ;;  %s1734_s6 = scalar_lea.sflag [#allocation5], %s1733_s10 }
 0x4f5   : > { %p4247_p10 = scmp.ge.s32.totalorder %s4245_s2, 2 }
 0x4f7   : > { %p1976_p2 = pnand %p4247_p10, %p4246_p13 }
 0x4f9   : > { %p1977_p1 = pneg %p1976_p2 }
 0x4fb   : > { %2145 = dma.done.wait (%p1977_p1), %s1734_s6, 128  }
 0x4fc   : > { %2147 = vsyncadd (%p1977_p1), %s1734_s6, 4294967168  ;;  %s4248_s22 = sld [smem:[#allocation18_spill]] }
 0x4fd   : > { %s4249_s19 = sld [smem:[#allocation13_spill]] }
 0x4fe   : > { %s4250_s20 = sld [smem:[#allocation14_spill]] }
 0x4ff   : > { %s4251_s21 = sld [smem:[#allocation19_spill]] }
 0x502   : > { %p26_p0 = scmp.ge.s32.totalorder %s4248_s22, 4  }
 0x504   :  { %28 = sbr.rel (!%p26_p0) target bundleno = 19 (0x13), region = 114 }
 0x509   :  { %1739 = vsyncpa [#allocation4], 1 }
 0x50a   :  { %1741 = vsyncpa [#allocation4 + $0x1], 1 }
 0x50b   :  { %1742 = vsyncpa [#allocation5], 1 }
 0x50c   :  { %1744 = vsyncpa [#allocation5 + $0x1], 1 }
 0x50d   :  { %1745 = vsyncpa [#allocation6], 1 }
 0x50e   :  { %1747 = vsyncpa [#allocation6 + $0x1], 1 }

</bundles_post_ra>
